<compile_context>
chip_gen: v7x
topology: tpu7x:2x2x1
jax: 0.10.0
libtpu: 0.0.40
codegen_flags: <defaults>
</compile_context>

<pallas_src>
import jax
import jax.numpy as jnp
from jax.experimental import pallas as pl
from jax.experimental.pallas import tpu as pltpu


IN_CHANNELS = 11   # Board.shape[0]
H, W = 11, 10      # hexz board spatial dims
FILTERS = 128      # torch default; keeps the channel axis lane-dense
BLOCKS = 3         # small for the synthetic example (torch default 5)
KSIZE = 3
BN_EPS = 1e-5

HP, WP = H + 2, W + 2          # 'same'-padded plane dims
PLANE = HP * WP                # flat padded rows per sample
GUARD = 8                      # leading guard rows so every tap slice stays in-bounds


def _round_up(x, m):
    return (x + m - 1) // m * m


def _geometry(n):
    """Static row geometry of the flat padded-pixel layout for batch size n."""
    nreal = n * PLANE                              # real padded-geometry rows
    win_lo = (WP + 1) // 8 * 8                     # window start (real coords), mult of 8
    win_hi = _round_up(nreal - WP - 1, 8)          # window end, covers last interior row
    pix = win_hi - win_lo                          # compute-window rows (mult of 8)
    ws = GUARD + win_lo                            # window start inside the act buffer
    tot = _round_up(max(GUARD + nreal, ws + pix + WP + 1), 8)   # act buffer rows
    return nreal, win_lo, pix, ws, tot


def _make_kernel(num_stages, pix, ws, nreal, f, inv_count):
    """Build the fused residual-layer kernel for static geometry."""
    # Tap flat-row offsets, ordered (ky, kx) to match the packed weight rows.
    taps = [(ky - 1) * WP + (kx - 1) for ky in range(KSIZE) for kx in range(KSIZE)]

    def kernel(x_ref, mask_ref, w_ref, gamma_ref, beta_ref, o_ref,
               act_ref, patch_ref, acc_ref, res_ref):
        s = pl.program_id(0)

        # Stage 0: load the input (already in padded flat geometry, zero halo /
        # guards) into the persistent activation scratch; zero the residual.
        @pl.when(s == 0)
        def _init():
            act_ref[...] = x_ref[...]
            res_ref[...] = jnp.zeros_like(res_ref)

        # Block entry (conv1 stages, s odd): stash the block input as residual.
        @pl.when(s % 2 == 1)
        def _save_residual():
            res_ref[...] = act_ref[ws:ws + pix, :]

        # im2col: each 3x3 tap is a flat row shift of the padded activation.
        # Lane-dense (128) stores into the bf16 patch; single cast per tap.
        for t, off in enumerate(taps):
            patch_ref[:, t * f:(t + 1) * f] = (
                act_ref[ws + off: ws + off + pix, :].astype(jnp.bfloat16))

        # One deep-K MXU matmul: (PIX, 9F) bf16 @ (9F, F) bf16 -> f32.
        acc_ref[...] = jnp.dot(patch_ref[...], w_ref[0],
                               preferred_element_type=jnp.float32)

        # BatchNorm2d (training mode): batch stats over the real pixels only
        # (interior mask zeroes the halo rows inside the compute window).
        mask = mask_ref[...]                                    # (PIX, F) 0/1
        a = acc_ref[...]                                        # (PIX, F) f32
        mean = jnp.sum(a * mask, axis=0, keepdims=True) * inv_count
        d = (a - mean) * mask                                   # two-pass variance
        var = jnp.sum(d * d, axis=0, keepdims=True) * inv_count
        scale = gamma_ref[0] * jax.lax.rsqrt(var + BN_EPS)      # (1, F)
        shift = beta_ref[0] - mean * scale

        # Residual add only on conv2 stages (s even, s > 0).
        res_gate = jnp.where(jnp.logical_and(s > 0, s % 2 == 0),
                             jnp.float32(1.0), jnp.float32(0.0))
        z = a * scale + shift + res_gate * res_ref[...]
        # ReLU, then re-zero halo rows so the next conv's 'same' padding holds.
        y = jnp.maximum(z, 0.0) * mask
        act_ref[ws:ws + pix, :] = y

        # Final stage: emit the whole real padded geometry (halo already zero);
        # the wrapper slices out the interior.
        @pl.when(s == num_stages - 1)
        def _finalize():
            o_ref[...] = act_ref[GUARD:GUARD + nreal, :]

    return kernel


@jax.jit
def residual_layer_forward(x_nchw, w_stack, gamma_stack, beta_stack):
    """x_nchw: (N, 11, 11, 10) f32 -> (N, FILTERS, 11, 10) f32."""
    n, c_in, h, w = x_nchw.shape
    f = w_stack.shape[-1]
    num_stages = w_stack.shape[0]
    nreal, win_lo, pix, ws, tot = _geometry(n)

    # Input in the flat padded-pixel geometry: NCHW -> NHWC, spatial halo pad,
    # channel pad to F, flatten rows, add guard rows.  All zeros stay zero.
    x = jnp.transpose(x_nchw, (0, 2, 3, 1))
    x = jnp.pad(x, ((0, 0), (1, 1), (1, 1), (0, f - c_in)))
    x = x.reshape(nreal, f)
    x = jnp.pad(x, ((GUARD, tot - GUARD - nreal), (0, 0))).astype(jnp.float32)

    # Interior mask over the compute window (1 = real output pixel, 0 = halo).
    rows = win_lo + jnp.arange(pix)
    qq = rows % PLANE
    yy, xx = qq // WP, qq % WP
    interior = (yy >= 1) & (yy <= H) & (xx >= 1) & (xx <= W)
    mask = jnp.broadcast_to(interior[:, None], (pix, f)).astype(jnp.float32)

    kernel = _make_kernel(num_stages, pix, ws, nreal, f, 1.0 / float(n * H * W))

    out_flat = pl.pallas_call(
        kernel,
        out_shape=jax.ShapeDtypeStruct((nreal, f), jnp.float32),
        grid=(num_stages,),
        in_specs=[
            pl.BlockSpec((tot, f), lambda s: (0, 0)),                     # x (resident)
            pl.BlockSpec((pix, f), lambda s: (0, 0)),                     # interior mask
            pl.BlockSpec((1, KSIZE * KSIZE * f, f), lambda s: (s, 0, 0)),  # stage weights
            pl.BlockSpec((1, 1, f), lambda s: (s, 0, 0)),                 # gamma
            pl.BlockSpec((1, 1, f), lambda s: (s, 0, 0)),                 # beta
        ],
        out_specs=pl.BlockSpec((nreal, f), lambda s: (0, 0)),
        scratch_shapes=[
            pltpu.VMEM((tot, f), jnp.float32),                    # padded activation
            pltpu.VMEM((pix, KSIZE * KSIZE * f), jnp.bfloat16),   # im2col patch
            pltpu.VMEM((pix, f), jnp.float32),                    # conv accumulator
            pltpu.VMEM((pix, f), jnp.float32),                    # residual
        ],
        compiler_params=pltpu.CompilerParams(
            dimension_semantics=("arbitrary",),
            vmem_limit_bytes=32 * 1024 * 1024),
    )(x, mask, w_stack, gamma_stack, beta_stack)

    out = out_flat.reshape(n, HP, WP, f)[:, 1:1 + H, 1:1 + W, :]
    return jnp.transpose(out, (0, 3, 1, 2))                       # NHWC -> NCHW


def _pack_stage_params(stages, filters):
    """Stack per-stage (HWIO conv weight, gamma, beta) into kernel operands."""
    ws, gs, bs = [], [], []
    for (w_hwio, gamma, beta) in stages:
        c_in = w_hwio.shape[2]
        if c_in < filters:   # stage 0: Board channels zero-padded to F
            w_hwio = jnp.pad(w_hwio, ((0, 0), (0, 0), (0, filters - c_in), (0, 0)))
        ws.append(w_hwio.reshape(KSIZE * KSIZE * filters, filters))   # rows: (ky, kx, c_in)
        gs.append(gamma.reshape(1, filters))
        bs.append(beta.reshape(1, filters))
    return (jnp.stack(ws).astype(jnp.bfloat16),
            jnp.stack(gs).astype(jnp.float32),
            jnp.stack(bs).astype(jnp.float32))


def init_params(key, blocks=BLOCKS, filters=FILTERS, in_channels=IN_CHANNELS):
    """Synthetic params matching the torch module's shapes, flattened into
    execution-order stages: [head conv/bn] + [conv1/bn1, conv2/bn2] per block.
    Conv weights are HWIO (ky, kx, C_in, C_out)."""
    def conv_init(k, c_in):
        fan_in = c_in * KSIZE * KSIZE
        bound = 1.0 / float(fan_in) ** 0.5   # kaiming-uniform-like
        return jax.random.uniform(k, (KSIZE, KSIZE, c_in, filters),
                                  jnp.float32, -bound, bound)
    stages = []
    c_in = in_channels
    n_stages = 1 + 2 * (blocks - 1)
    for _ in range(n_stages):
        key, kw, kg, kb = jax.random.split(key, 4)
        wgt = conv_init(kw, c_in)
        gamma = 1.0 + 0.1 * jax.random.normal(kg, (filters,), jnp.float32)
        beta = 0.1 * jax.random.normal(kb, (filters,), jnp.float32)
        stages.append((wgt, gamma, beta))
        c_in = filters
    return stages


if __name__ == "__main__":
    key = jax.random.PRNGKey(0)
    key, kx = jax.random.split(key)
    # (N, C=11, H=11, W=10) hexz boards, NCHW like the PyTorch module.
    x = jax.random.normal(kx, (2, IN_CHANNELS, H, W), jnp.float32)
    stages = init_params(key)
    w_stack, gamma_stack, beta_stack = _pack_stage_params(stages, FILTERS)

    out = residual_layer_forward(x, w_stack, gamma_stack, beta_stack)
    out = jax.block_until_ready(out)

    assert out.shape == (2, FILTERS, H, W), out.shape
    assert out.dtype == jnp.float32
    assert bool(jnp.all(jnp.isfinite(out)))
    assert bool(jnp.all(out >= 0.0))  # final op is ReLU
    print("KERNEL_OK")
</pallas_src>

<mosaic_0001>
module attributes {stable_mosaic.version = 11 : i64} {
  func.func @kernel(%arg0: i32, %arg1: memref<328x128xf32, #tpu.memory_space<vmem>>, %arg2: memref<296x128xf32, #tpu.memory_space<vmem>>, %arg3: memref<1x1152x128xbf16, #tpu.memory_space<vmem>>, %arg4: memref<1x1x128xf32, #tpu.memory_space<vmem>>, %arg5: memref<1x1x128xf32, #tpu.memory_space<vmem>>, %arg6: memref<312x128xf32, #tpu.memory_space<vmem>>, %arg7: memref<328x128xf32, #tpu.memory_space<vmem>>, %arg8: memref<296x1152xbf16, #tpu.memory_space<vmem>>, %arg9: memref<296x128xf32, #tpu.memory_space<vmem>>, %arg10: memref<296x128xf32, #tpu.memory_space<vmem>>) attributes {dimension_semantics = [#tpu.dimension_semantics<arbitrary>], iteration_bounds = array<i64: 5>, scalar_prefetch = 0 : i64, scratch_operands = 4 : i64, tpu.core_type = #tpu.core_type<tc>, window_params = [{pipeline_mode = #tpu.pipeline_mode<synchronous>, transform_indices = @transform_0, window_bounds = array<i64: 328, 128>}, {pipeline_mode = #tpu.pipeline_mode<synchronous>, transform_indices = @transform_1, window_bounds = array<i64: 296, 128>}, {transform_indices = @transform_2, window_bounds = array<i64: 1, 1152, 128>}, {transform_indices = @transform_3, window_bounds = array<i64: 1, 1, 128>}, {transform_indices = @transform_4, window_bounds = array<i64: 1, 1, 128>}, {pipeline_mode = #tpu.pipeline_mode<synchronous>, transform_indices = @transform_5, window_bounds = array<i64: 312, 128>}]} {
    %c0_i32 = arith.constant 0 : i32
    %0 = arith.cmpi eq, %arg0, %c0_i32 : i32
    %1 = arith.extui %0 : i1 to i32
    %c0_i32_0 = arith.constant 0 : i32
    %2 = arith.cmpi ne, %1, %c0_i32_0 : i32
    scf.if %2 {
      %c0_63 = arith.constant 0 : index
      %c0_64 = arith.constant 0 : index
      %102 = vector.load %arg1[%c0_63, %c0_64] : memref<328x128xf32, #tpu.memory_space<vmem>>, vector<328x128xf32>
      %c0_65 = arith.constant 0 : index
      %c0_66 = arith.constant 0 : index
      %103 = vector.load %arg7[%c0_65, %c0_66] : memref<328x128xf32, #tpu.memory_space<vmem>>, vector<328x128xf32>
      tpu.vector_store %arg7[%c0_65, %c0_66], %102 {strides = array<i32>} : memref<328x128xf32, #tpu.memory_space<vmem>>, vector<328x128xf32>,
      %cst_67 = arith.constant 0.000000e+00 : f32
      %104 = vector.broadcast %cst_67 : f32 to vector<296x128xf32>
      %c0_68 = arith.constant 0 : index
      %c0_69 = arith.constant 0 : index
      %105 = vector.load %arg10[%c0_68, %c0_69] : memref<296x128xf32, #tpu.memory_space<vmem>>, vector<296x128xf32>
      tpu.vector_store %arg10[%c0_68, %c0_69], %104 {strides = array<i32>} : memref<296x128xf32, #tpu.memory_space<vmem>>, vector<296x128xf32>,
    } else {
    }
    %c2_i32 = arith.constant 2 : i32
    %c0_i32_1 = arith.constant 0 : i32
    %3 = arith.cmpi eq, %c2_i32, %c0_i32_1 : i32
    %c1_i32 = arith.constant 1 : i32
    %4 = arith.select %3, %c1_i32, %c2_i32 : i32
    %5 = arith.remsi %arg0, %4 : i32
    %c0_i32_2 = arith.constant 0 : i32
    %6 = arith.cmpi ne, %5, %c0_i32_2 : i32
    %c0_i32_3 = arith.constant 0 : i32
    %7 = arith.cmpi slt, %5, %c0_i32_3 : i32
    %c0_i32_4 = arith.constant 0 : i32
    %8 = arith.cmpi slt, %4, %c0_i32_4 : i32
    %9 = arith.xori %7, %8 : i1
    %10 = arith.andi %9, %6 : i1
    %11 = arith.addi %5, %4 : i32
    %12 = arith.select %10, %11, %5 : i32
    %c1_i32_5 = arith.constant 1 : i32
    %13 = arith.cmpi eq, %12, %c1_i32_5 : i32
    %14 = arith.extui %13 : i1 to i32
    %c0_i32_6 = arith.constant 0 : i32
    %15 = arith.cmpi ne, %14, %c0_i32_6 : i32
    scf.if %15 {
      %c16_63 = arith.constant 16 : index
      %c0_64 = arith.constant 0 : index
      %102 = vector.load %arg7[%c16_63, %c0_64] : memref<328x128xf32, #tpu.memory_space<vmem>>, vector<296x128xf32>
      %c0_65 = arith.constant 0 : index
      %c0_66 = arith.constant 0 : index
      %103 = vector.load %arg10[%c0_65, %c0_66] : memref<296x128xf32, #tpu.memory_space<vmem>>, vector<296x128xf32>
      tpu.vector_store %arg10[%c0_65, %c0_66], %102 {strides = array<i32>} : memref<296x128xf32, #tpu.memory_space<vmem>>, vector<296x128xf32>,
    } else {
    }
    %c3 = arith.constant 3 : index
    %c0 = arith.constant 0 : index
    %16 = vector.load %arg7[%c3, %c0] : memref<328x128xf32, #tpu.memory_space<vmem>>, vector<296x128xf32>
    %17 = arith.truncf %16 : vector<296x128xf32> to vector<296x128xbf16>
    %c0_7 = arith.constant 0 : index
    %c0_8 = arith.constant 0 : index
    %18 = vector.load %arg8[%c0_7, %c0_8] : memref<296x1152xbf16, #tpu.memory_space<vmem>>, vector<296x128xbf16>
    tpu.vector_store %arg8[%c0_7, %c0_8], %17 {strides = array<i32>} : memref<296x1152xbf16, #tpu.memory_space<vmem>>, vector<296x128xbf16>,
    %c4 = arith.constant 4 : index
    %c0_9 = arith.constant 0 : index
    %19 = vector.load %arg7[%c4, %c0_9] : memref<328x128xf32, #tpu.memory_space<vmem>>, vector<296x128xf32>
    %20 = arith.truncf %19 : vector<296x128xf32> to vector<296x128xbf16>
    %c0_10 = arith.constant 0 : index
    %c128 = arith.constant 128 : index
    %21 = vector.load %arg8[%c0_10, %c128] : memref<296x1152xbf16, #tpu.memory_space<vmem>>, vector<296x128xbf16>
    tpu.vector_store %arg8[%c0_10, %c128], %20 {strides = array<i32>} : memref<296x1152xbf16, #tpu.memory_space<vmem>>, vector<296x128xbf16>,
    %c5 = arith.constant 5 : index
    %c0_11 = arith.constant 0 : index
    %22 = vector.load %arg7[%c5, %c0_11] : memref<328x128xf32, #tpu.memory_space<vmem>>, vector<296x128xf32>
    %23 = arith.truncf %22 : vector<296x128xf32> to vector<296x128xbf16>
    %c0_12 = arith.constant 0 : index
    %c256 = arith.constant 256 : index
    %24 = vector.load %arg8[%c0_12, %c256] : memref<296x1152xbf16, #tpu.memory_space<vmem>>, vector<296x128xbf16>
    tpu.vector_store %arg8[%c0_12, %c256], %23 {strides = array<i32>} : memref<296x1152xbf16, #tpu.memory_space<vmem>>, vector<296x128xbf16>,
    %c15 = arith.constant 15 : index
    %c0_13 = arith.constant 0 : index
    %25 = vector.load %arg7[%c15, %c0_13] : memref<328x128xf32, #tpu.memory_space<vmem>>, vector<296x128xf32>
    %26 = arith.truncf %25 : vector<296x128xf32> to vector<296x128xbf16>
    %c0_14 = arith.constant 0 : index
    %c384 = arith.constant 384 : index
    %27 = vector.load %arg8[%c0_14, %c384] : memref<296x1152xbf16, #tpu.memory_space<vmem>>, vector<296x128xbf16>
    tpu.vector_store %arg8[%c0_14, %c384], %26 {strides = array<i32>} : memref<296x1152xbf16, #tpu.memory_space<vmem>>, vector<296x128xbf16>,
    %c16 = arith.constant 16 : index
    %c0_15 = arith.constant 0 : index
    %28 = vector.load %arg7[%c16, %c0_15] : memref<328x128xf32, #tpu.memory_space<vmem>>, vector<296x128xf32>
    %29 = arith.truncf %28 : vector<296x128xf32> to vector<296x128xbf16>
    %c0_16 = arith.constant 0 : index
    %c512 = arith.constant 512 : index
    %30 = vector.load %arg8[%c0_16, %c512] : memref<296x1152xbf16, #tpu.memory_space<vmem>>, vector<296x128xbf16>
    tpu.vector_store %arg8[%c0_16, %c512], %29 {strides = array<i32>} : memref<296x1152xbf16, #tpu.memory_space<vmem>>, vector<296x128xbf16>,
    %c17 = arith.constant 17 : index
    %c0_17 = arith.constant 0 : index
    %31 = vector.load %arg7[%c17, %c0_17] : memref<328x128xf32, #tpu.memory_space<vmem>>, vector<296x128xf32>
    %32 = arith.truncf %31 : vector<296x128xf32> to vector<296x128xbf16>
    %c0_18 = arith.constant 0 : index
    %c640 = arith.constant 640 : index
    %33 = vector.load %arg8[%c0_18, %c640] : memref<296x1152xbf16, #tpu.memory_space<vmem>>, vector<296x128xbf16>
    tpu.vector_store %arg8[%c0_18, %c640], %32 {strides = array<i32>} : memref<296x1152xbf16, #tpu.memory_space<vmem>>, vector<296x128xbf16>,
    %c27 = arith.constant 27 : index
    %c0_19 = arith.constant 0 : index
    %34 = vector.load %arg7[%c27, %c0_19] : memref<328x128xf32, #tpu.memory_space<vmem>>, vector<296x128xf32>
    %35 = arith.truncf %34 : vector<296x128xf32> to vector<296x128xbf16>
    %c0_20 = arith.constant 0 : index
    %c768 = arith.constant 768 : index
    %36 = vector.load %arg8[%c0_20, %c768] : memref<296x1152xbf16, #tpu.memory_space<vmem>>, vector<296x128xbf16>
    tpu.vector_store %arg8[%c0_20, %c768], %35 {strides = array<i32>} : memref<296x1152xbf16, #tpu.memory_space<vmem>>, vector<296x128xbf16>,
    %c28 = arith.constant 28 : index
    %c0_21 = arith.constant 0 : index
    %37 = vector.load %arg7[%c28, %c0_21] : memref<328x128xf32, #tpu.memory_space<vmem>>, vector<296x128xf32>
    %38 = arith.truncf %37 : vector<296x128xf32> to vector<296x128xbf16>
    %c0_22 = arith.constant 0 : index
    %c896 = arith.constant 896 : index
    %39 = vector.load %arg8[%c0_22, %c896] : memref<296x1152xbf16, #tpu.memory_space<vmem>>, vector<296x128xbf16>
    tpu.vector_store %arg8[%c0_22, %c896], %38 {strides = array<i32>} : memref<296x1152xbf16, #tpu.memory_space<vmem>>, vector<296x128xbf16>,
    %c29 = arith.constant 29 : index
    %c0_23 = arith.constant 0 : index
    %40 = vector.load %arg7[%c29, %c0_23] : memref<328x128xf32, #tpu.memory_space<vmem>>, vector<296x128xf32>
    %41 = arith.truncf %40 : vector<296x128xf32> to vector<296x128xbf16>
    %c0_24 = arith.constant 0 : index
    %c1024 = arith.constant 1024 : index
    %42 = vector.load %arg8[%c0_24, %c1024] : memref<296x1152xbf16, #tpu.memory_space<vmem>>, vector<296x128xbf16>
    tpu.vector_store %arg8[%c0_24, %c1024], %41 {strides = array<i32>} : memref<296x1152xbf16, #tpu.memory_space<vmem>>, vector<296x128xbf16>,
    %c0_25 = arith.constant 0 : index
    %c0_26 = arith.constant 0 : index
    %43 = vector.load %arg8[%c0_25, %c0_26] : memref<296x1152xbf16, #tpu.memory_space<vmem>>, vector<296x1152xbf16>
    %c0_27 = arith.constant 0 : index
    %c0_28 = arith.constant 0 : index
    %c0_29 = arith.constant 0 : index
    %44 = vector.load %arg3[%c0_27, %c0_28, %c0_29] : memref<1x1152x128xbf16, #tpu.memory_space<vmem>>, vector<1x1152x128xbf16>
    %45 = vector.shape_cast %44 : vector<1x1152x128xbf16> to vector<1152x128xbf16>
    %cst = arith.constant dense<0.000000e+00> : vector<296x128xf32>
    %46 = tpu.matmul %43, %45, %cst {dimension_numbers = #tpu.dot_dimension_numbers<[1], [0], [0], [1], [0, 0, 1, 1], [], []>} : vector<296x1152xbf16>, vector<1152x128xbf16>, vector<296x128xf32> -> vector<296x128xf32>
    %c0_30 = arith.constant 0 : index
    %c0_31 = arith.constant 0 : index
    %47 = vector.load %arg9[%c0_30, %c0_31] : memref<296x128xf32, #tpu.memory_space<vmem>>, vector<296x128xf32>
    tpu.vector_store %arg9[%c0_30, %c0_31], %46 {strides = array<i32>} : memref<296x128xf32, #tpu.memory_space<vmem>>, vector<296x128xf32>,
    %c0_32 = arith.constant 0 : index
    %c0_33 = arith.constant 0 : index
    %48 = vector.load %arg2[%c0_32, %c0_33] : memref<296x128xf32, #tpu.memory_space<vmem>>, vector<296x128xf32>
    %c0_34 = arith.constant 0 : index
    %c0_35 = arith.constant 0 : index
    %49 = vector.load %arg9[%c0_34, %c0_35] : memref<296x128xf32, #tpu.memory_space<vmem>>, vector<296x128xf32>
    %50 = arith.mulf %49, %48 : vector<296x128xf32>
    %cst_36 = arith.constant dense<0.000000e+00> : vector<128xf32>
    %51 = vector.multi_reduction <add>, %50, %cst_36 [0] : vector<296x128xf32> to vector<128xf32>
    %52 = vector.shape_cast %51 : vector<128xf32> to vector<1x128xf32>
    %cst_37 = arith.constant 0.0045454544 : f32
    %53 = vector.broadcast %cst_37 : f32 to vector<1x128xf32>
    %54 = arith.mulf %52, %53 : vector<1x128xf32>
    %55 = vector.broadcast %54 : vector<1x128xf32> to vector<296x128xf32>
    %56 = arith.subf %49, %55 : vector<296x128xf32>
    %57 = arith.mulf %56, %48 : vector<296x128xf32>
    %58 = arith.mulf %57, %57 : vector<296x128xf32>
    %cst_38 = arith.constant dense<0.000000e+00> : vector<128xf32>
    %59 = vector.multi_reduction <add>, %58, %cst_38 [0] : vector<296x128xf32> to vector<128xf32>
    %60 = vector.shape_cast %59 : vector<128xf32> to vector<1x128xf32>
    %cst_39 = arith.constant 0.0045454544 : f32
    %61 = vector.broadcast %cst_39 : f32 to vector<1x128xf32>
    %62 = arith.mulf %60, %61 : vector<1x128xf32>
    %c0_40 = arith.constant 0 : index
    %c0_41 = arith.constant 0 : index
    %c0_42 = arith.constant 0 : index
    %63 = vector.load %arg4[%c0_40, %c0_41, %c0_42] : memref<1x1x128xf32, #tpu.memory_space<vmem>>, vector<1x1x128xf32>
    %64 = vector.shape_cast %63 : vector<1x1x128xf32> to vector<1x128xf32>
    %cst_43 = arith.constant 9.99999974E-6 : f32
    %65 = vector.broadcast %cst_43 : f32 to vector<1x128xf32>
    %66 = arith.addf %62, %65 : vector<1x128xf32>
    %67 = math.rsqrt %66 : vector<1x128xf32>
    %68 = arith.mulf %64, %67 : vector<1x128xf32>
    %c0_44 = arith.constant 0 : index
    %c0_45 = arith.constant 0 : index
    %c0_46 = arith.constant 0 : index
    %69 = vector.load %arg5[%c0_44, %c0_45, %c0_46] : memref<1x1x128xf32, #tpu.memory_space<vmem>>, vector<1x1x128xf32>
    %70 = vector.shape_cast %69 : vector<1x1x128xf32> to vector<1x128xf32>
    %71 = arith.mulf %54, %68 : vector<1x128xf32>
    %72 = arith.subf %70, %71 : vector<1x128xf32>
    %c0_i32_47 = arith.constant 0 : i32
    %73 = arith.cmpi sgt, %arg0, %c0_i32_47 : i32
    %c2_i32_48 = arith.constant 2 : i32
    %c0_i32_49 = arith.constant 0 : i32
    %74 = arith.cmpi eq, %c2_i32_48, %c0_i32_49 : i32
    %c1_i32_50 = arith.constant 1 : i32
    %75 = arith.select %74, %c1_i32_50, %c2_i32_48 : i32
    %76 = arith.remsi %arg0, %75 : i32
    %c0_i32_51 = arith.constant 0 : i32
    %77 = arith.cmpi ne, %76, %c0_i32_51 : i32
    %c0_i32_52 = arith.constant 0 : i32
    %78 = arith.cmpi slt, %76, %c0_i32_52 : i32
    %c0_i32_53 = arith.constant 0 : i32
    %79 = arith.cmpi slt, %75, %c0_i32_53 : i32
    %80 = arith.xori %78, %79 : i1
    %81 = arith.andi %80, %77 : i1
    %82 = arith.addi %76, %75 : i32
    %83 = arith.select %81, %82, %76 : i32
    %c0_i32_54 = arith.constant 0 : i32
    %84 = arith.cmpi eq, %83, %c0_i32_54 : i32
    %85 = arith.andi %73, %84 : i1
    %cst_55 = arith.constant 1.000000e+00 : f32
    %cst_56 = arith.constant 0.000000e+00 : f32
    %86 = arith.select %85, %cst_55, %cst_56 : f32
    %87 = vector.broadcast %68 : vector<1x128xf32> to vector<296x128xf32>
    %88 = arith.mulf %49, %87 : vector<296x128xf32>
    %89 = vector.broadcast %72 : vector<1x128xf32> to vector<296x128xf32>
    %90 = arith.addf %88, %89 : vector<296x128xf32>
    %c0_57 = arith.constant 0 : index
    %c0_58 = arith.constant 0 : index
    %91 = vector.load %arg10[%c0_57, %c0_58] : memref<296x128xf32, #tpu.memory_space<vmem>>, vector<296x128xf32>
    %92 = vector.broadcast %86 : f32 to vector<296x128xf32>
    %93 = arith.mulf %92, %91 : vector<296x128xf32>
    %94 = arith.addf %90, %93 : vector<296x128xf32>
    %cst_59 = arith.constant 0.000000e+00 : f32
    %95 = vector.broadcast %cst_59 : f32 to vector<296x128xf32>
    %96 = arith.maximumf %94, %95 : vector<296x128xf32>
    %97 = arith.mulf %96, %48 : vector<296x128xf32>
    %c16_60 = arith.constant 16 : index
    %c0_61 = arith.constant 0 : index
    %98 = vector.load %arg7[%c16_60, %c0_61] : memref<328x128xf32, #tpu.memory_space<vmem>>, vector<296x128xf32>
    tpu.vector_store %arg7[%c16_60, %c0_61], %97 {strides = array<i32>} : memref<328x128xf32, #tpu.memory_space<vmem>>, vector<296x128xf32>,
    %c4_i32 = arith.constant 4 : i32
    %99 = arith.cmpi eq, %arg0, %c4_i32 : i32
    %100 = arith.extui %99 : i1 to i32
    %c0_i32_62 = arith.constant 0 : i32
    %101 = arith.cmpi ne, %100, %c0_i32_62 : i32
    scf.if %101 {
      %c8 = arith.constant 8 : index
      %c0_63 = arith.constant 0 : index
      %102 = vector.load %arg7[%c8, %c0_63] : memref<328x128xf32, #tpu.memory_space<vmem>>, vector<312x128xf32>
      %c0_64 = arith.constant 0 : index
      %c0_65 = arith.constant 0 : index
      %103 = vector.load %arg6[%c0_64, %c0_65] : memref<312x128xf32, #tpu.memory_space<vmem>>, vector<312x128xf32>
      tpu.vector_store %arg6[%c0_64, %c0_65], %102 {strides = array<i32>} : memref<312x128xf32, #tpu.memory_space<vmem>>, vector<312x128xf32>,
    } else {
    }
    return
  }
  func.func @transform_0(%arg0: i32) -> (i32, i32) {
    %c0_i32 = arith.constant 0 : i32
    %c0_i32_0 = arith.constant 0 : i32
    %c0_i32_1 = arith.constant 0 : i32
    return %c0_i32, %c0_i32_0 : i32, i32
  }
  func.func @transform_1(%arg0: i32) -> (i32, i32) {
    %c0_i32 = arith.constant 0 : i32
    %c0_i32_0 = arith.constant 0 : i32
    %c0_i32_1 = arith.constant 0 : i32
    return %c0_i32, %c0_i32_0 : i32, i32
  }
  func.func @transform_2(%arg0: i32) -> (i32, i32, i32) {
    %c0_i32 = arith.constant 0 : i32
    %c0_i32_0 = arith.constant 0 : i32
    %c0_i32_1 = arith.constant 0 : i32
    return %arg0, %c0_i32, %c0_i32_0 : i32, i32, i32
  }
  func.func @transform_3(%arg0: i32) -> (i32, i32, i32) {
    %c0_i32 = arith.constant 0 : i32
    %c0_i32_0 = arith.constant 0 : i32
    %c0_i32_1 = arith.constant 0 : i32
    return %arg0, %c0_i32, %c0_i32_0 : i32, i32, i32
  }
  func.func @transform_4(%arg0: i32) -> (i32, i32, i32) {
    %c0_i32 = arith.constant 0 : i32
    %c0_i32_0 = arith.constant 0 : i32
    %c0_i32_1 = arith.constant 0 : i32
    return %arg0, %c0_i32, %c0_i32_0 : i32, i32, i32
  }
  func.func @transform_5(%arg0: i32) -> (i32, i32) {
    %c0_i32 = arith.constant 0 : i32
    %c0_i32_0 = arith.constant 0 : i32
    %c0_i32_1 = arith.constant 0 : i32
    return %c0_i32, %c0_i32_0 : i32, i32
  }
}

</mosaic_0001>

<bundles_post_ra>
// kernel: residual_layer_forward.1
= control target key start
LH: loop header
LB: loop body
LE: loop exit
PB: predicated region body
PF: predicated region fallthrough
CT: control target
= control target key end

     0   :  { %s7549_s18 = smov 0   ;;  %s8975_s0 = inlined_call_operand.vmem [shape: f32[328,128], index: 0, kind: input, shape index: {}]   ;;  %s8976_s1 = inlined_call_operand.vmem [shape: f32[296,128], index: 1, kind: input, shape index: {}]   ;;  %s8977_s2 = inlined_call_operand.vmem [shape: bf16[5,1152,128], index: 2, kind: input, shape index: {}]   ;;  %s8978_s3 = inlined_call_operand.vmem [shape: f32[5,1,128], index: 3, kind: input, shape index: {}]   ;;  %s8979_s4 = inlined_call_operand.vmem [shape: f32[5,1,128], index: 4, kind: input, shape index: {}]   ;;  %s8980_s5 = inlined_call_operand.vmem [shape: f32[312,128], index: 5, kind: output, shape index: {}]  }
   0x1 LB: > { %s7555_s19 = sadd.s32 4294967295, %s7513_s18   ;;  %p5797_p0 = scmp.ge.s32.totalorder %s7513_s18, 1  ;;  %s7513_s18 = sphi %s7549_s18, %s15_s18  }
   0x2   : > { %p198_p1 = scmp.lt.s32.totalorder %s7513_s18, 6 }
   0x4   : > { %p199_p2 = pnand %p5797_p0, %p198_p1 }
   0x6   : > { %202 = sbr.rel (%p199_p2) target bundleno = 947 (0x3b3), region = 40 }
   0xd   : > { %p227_p3 = scmp.lt.s32.totalorder %s7555_s19, 4  ;;  %p5799_p4 = scmp.ne.s32.totalorder %s7555_s19, 0 }
   0xe   : > { %v243_v0 = vld [vmem:[%s8975_s0] sm:$0xff] (!%p5799_p4)  ;;  %v244_v1 = vld [vmem:[%s8975_s0 + $0x8] sm:$0xff] (!%p5799_p4)  ;;  %v245_v2 = vld [vmem:[%s8975_s0 + $0x10] sm:$0xff] (!%p5799_p4)  ;;  %v7515_v6 = vmov (!%p5799_p4), 0.0  }
   0xf   : > { %s7561_s20 = scalar_select %p227_p3, %s7555_s19, 4 }
  0x10   : > { %242 = sbr.rel (%p5799_p4) target bundleno = 55 (0x37), region = 44  ;;  %284 = vst [vmem:[#allocation2] sm:$0xff] (!%p5799_p4), %v243_v0  ;;  %285 = vst [vmem:[#allocation2 + $0x8] sm:$0xff] (!%p5799_p4), %v244_v1  ;;  %v246_v3 = vld [vmem:[%s8975_s0 + $0x18] sm:$0xff] (!%p5799_p4)  ;;  %v247_v4 = vld [vmem:[%s8975_s0 + $0x20] sm:$0xff] (!%p5799_p4) }
  0x11   : > { %s7133_s21 = smul.u32 576, %s7561_s20  ;;  %s234_s24 = scalar_lea.vmem %s8978_s3, %s7561_s20  ;;  %286 = vst [vmem:[#allocation2 + $0x10] sm:$0xff] (!%p5799_p4), %v245_v2  ;;  %v248_v5 = vld [vmem:[%s8975_s0 + $0x28] sm:$0xff] (!%p5799_p4)  ;;  %325 = vst [vmem:[#allocation5] sm:$0xff] (!%p5799_p4), %v7515_v6  ;;  %v249_v7 = vld [vmem:[%s8975_s0 + $0x30] sm:$0xff] (!%p5799_p4) }
  0x12   : > { %s237_s27 = scalar_lea.vmem %s8979_s4, %s7561_s20  ;;  %326 = vst [vmem:[#allocation5 + $0x8] sm:$0xff] (!%p5799_p4), %v7515_v6  ;;  %327 = vst [vmem:[#allocation5 + $0x10] sm:$0xff] (!%p5799_p4), %v7515_v6  ;;  %v250_v8 = vld [vmem:[%s8975_s0 + $0x38] sm:$0xff] (!%p5799_p4)  ;;  %v251_v9 = vld [vmem:[%s8975_s0 + $0x40] sm:$0xff] (!%p5799_p4) }
  0x13   : > { %s7575_s30 = scalar_lea.vmem %s8977_s2, %s7133_s21  ;;  %328 = vst [vmem:[#allocation5 + $0x18] sm:$0xff] (!%p5799_p4), %v7515_v6  ;;  %329 = vst [vmem:[#allocation5 + $0x20] sm:$0xff] (!%p5799_p4), %v7515_v6  ;;  %v252_v10 = vld [vmem:[%s8975_s0 + $0x48] sm:$0xff] (!%p5799_p4)  ;;  %v253_v11 = vld [vmem:[%s8975_s0 + $0x50] sm:$0xff] (!%p5799_p4) }
  0x14   : > { %330 = vst [vmem:[#allocation5 + $0x28] sm:$0xff] (!%p5799_p4), %v7515_v6  ;;  %331 = vst [vmem:[#allocation5 + $0x30] sm:$0xff] (!%p5799_p4), %v7515_v6  ;;  %v254_v12 = vld [vmem:[%s8975_s0 + $0x58] sm:$0xff] (!%p5799_p4)  ;;  %v255_v13 = vld [vmem:[%s8975_s0 + $0x60] sm:$0xff] (!%p5799_p4) }
  0x15   : > { %332 = vst [vmem:[#allocation5 + $0x38] sm:$0xff] (!%p5799_p4), %v7515_v6  ;;  %333 = vst [vmem:[#allocation5 + $0x40] sm:$0xff] (!%p5799_p4), %v7515_v6  ;;  %v256_v14 = vld [vmem:[%s8975_s0 + $0x68] sm:$0xff] (!%p5799_p4)  ;;  %v257_v15 = vld [vmem:[%s8975_s0 + $0x70] sm:$0xff] (!%p5799_p4) }
  0x16   : > { %334 = vst [vmem:[#allocation5 + $0x48] sm:$0xff] (!%p5799_p4), %v7515_v6  ;;  %335 = vst [vmem:[#allocation5 + $0x50] sm:$0xff] (!%p5799_p4), %v7515_v6  ;;  %v258_v16 = vld [vmem:[%s8975_s0 + $0x78] sm:$0xff] (!%p5799_p4)  ;;  %v259_v17 = vld [vmem:[%s8975_s0 + $0x80] sm:$0xff] (!%p5799_p4) }
  0x17   : > { %336 = vst [vmem:[#allocation5 + $0x58] sm:$0xff] %v7515_v6  ;;  %337 = vst [vmem:[#allocation5 + $0x60] sm:$0xff] %v7515_v6  ;;  %v260_v18 = vld [vmem:[%s8975_s0 + $0x88] sm:$0xff]  ;;  %v261_v19 = vld [vmem:[%s8975_s0 + $0x90] sm:$0xff] }
  0x18   : > { %338 = vst [vmem:[#allocation5 + $0x68] sm:$0xff] %v7515_v6  ;;  %339 = vst [vmem:[#allocation5 + $0x70] sm:$0xff] %v7515_v6  ;;  %v262_v20 = vld [vmem:[%s8975_s0 + $0x98] sm:$0xff]  ;;  %v263_v21 = vld [vmem:[%s8975_s0 + $0xa0] sm:$0xff] }
  0x19   : > { %340 = vst [vmem:[#allocation5 + $0x78] sm:$0xff] %v7515_v6  ;;  %341 = vst [vmem:[#allocation5 + $0x80] sm:$0xff] %v7515_v6  ;;  %v264_v22 = vld [vmem:[%s8975_s0 + $0xa8] sm:$0xff]  ;;  %v265_v23 = vld [vmem:[%s8975_s0 + $0xb0] sm:$0xff] }
  0x1a   : > { %342 = vst [vmem:[#allocation5 + $0x88] sm:$0xff] %v7515_v6  ;;  %343 = vst [vmem:[#allocation5 + $0x90] sm:$0xff] %v7515_v6  ;;  %v266_v24 = vld [vmem:[%s8975_s0 + $0xb8] sm:$0xff]  ;;  %v267_v25 = vld [vmem:[%s8975_s0 + $0xc0] sm:$0xff] }
  0x1b   : > { %344 = vst [vmem:[#allocation5 + $0x98] sm:$0xff] %v7515_v6  ;;  %345 = vst [vmem:[#allocation5 + $0xa0] sm:$0xff] %v7515_v6  ;;  %v268_v26 = vld [vmem:[%s8975_s0 + $0xc8] sm:$0xff]  ;;  %v269_v27 = vld [vmem:[%s8975_s0 + $0xd0] sm:$0xff] }
  0x1c   : > { %346 = vst [vmem:[#allocation5 + $0xa8] sm:$0xff] %v7515_v6  ;;  %347 = vst [vmem:[#allocation5 + $0xb0] sm:$0xff] %v7515_v6  ;;  %v270_v28 = vld [vmem:[%s8975_s0 + $0xd8] sm:$0xff]  ;;  %v271_v29 = vld [vmem:[%s8975_s0 + $0xe0] sm:$0xff] }
  0x1d   : > { %348 = vst [vmem:[#allocation5 + $0xb8] sm:$0xff] %v7515_v6  ;;  %349 = vst [vmem:[#allocation5 + $0xc0] sm:$0xff] %v7515_v6  ;;  %v272_v30 = vld [vmem:[%s8975_s0 + $0xe8] sm:$0xff]  ;;  %v273_v31 = vld [vmem:[%s8975_s0 + $0xf0] sm:$0xff] }
  0x1e   : > { %350 = vst [vmem:[#allocation5 + $0xc8] sm:$0xff] %v7515_v6  ;;  %351 = vst [vmem:[#allocation5 + $0xd0] sm:$0xff] %v7515_v6  ;;  %v274_v32 = vld [vmem:[%s8975_s0 + $0xf8] sm:$0xff]  ;;  %v275_v33 = vld [vmem:[%s8975_s0 + $0x100] sm:$0xff] }
  0x1f   : > { %352 = vst [vmem:[#allocation5 + $0xd8] sm:$0xff] %v7515_v6  ;;  %353 = vst [vmem:[#allocation5 + $0xe0] sm:$0xff] %v7515_v6  ;;  %v276_v34 = vld [vmem:[%s8975_s0 + $0x108] sm:$0xff]  ;;  %v277_v35 = vld [vmem:[%s8975_s0 + $0x110] sm:$0xff] }
  0x20   : > { %354 = vst [vmem:[#allocation5 + $0xe8] sm:$0xff] %v7515_v6  ;;  %355 = vst [vmem:[#allocation5 + $0xf0] sm:$0xff] %v7515_v6  ;;  %v278_v36 = vld [vmem:[%s8975_s0 + $0x118] sm:$0xff]  ;;  %v279_v37 = vld [vmem:[%s8975_s0 + $0x120] sm:$0xff] }
  0x21   : > { %356 = vst [vmem:[#allocation5 + $0xf8] sm:$0xff] %v7515_v6  ;;  %357 = vst [vmem:[#allocation5 + $0x100] sm:$0xff] %v7515_v6  ;;  %v280_v38 = vld [vmem:[%s8975_s0 + $0x128] sm:$0xff]  ;;  %v281_v39 = vld [vmem:[%s8975_s0 + $0x130] sm:$0xff] }
  0x22   : > { %358 = vst [vmem:[#allocation5 + $0x108] sm:$0xff] %v7515_v6  ;;  %359 = vst [vmem:[#allocation5 + $0x110] sm:$0xff] %v7515_v6  ;;  %v282_v40 = vld [vmem:[%s8975_s0 + $0x138] sm:$0xff]  ;;  %v283_v41 = vld [vmem:[%s8975_s0 + $0x140] sm:$0xff] }
  0x23   : > { %360 = vst [vmem:[#allocation5 + $0x118] sm:$0xff] %v7515_v6  ;;  %361 = vst [vmem:[#allocation5 + $0x120] sm:$0xff] %v7515_v6 }
  0x24   : > { %287 = vst [vmem:[#allocation2 + $0x18] sm:$0xff] %v246_v3  ;;  %288 = vst [vmem:[#allocation2 + $0x20] sm:$0xff] %v247_v4 }
  0x25   : > { %289 = vst [vmem:[#allocation2 + $0x28] sm:$0xff] %v248_v5  ;;  %290 = vst [vmem:[#allocation2 + $0x30] sm:$0xff] %v249_v7 }
  0x26   : > { %291 = vst [vmem:[#allocation2 + $0x38] sm:$0xff] %v250_v8  ;;  %292 = vst [vmem:[#allocation2 + $0x40] sm:$0xff] %v251_v9 }
  0x27   : > { %293 = vst [vmem:[#allocation2 + $0x48] sm:$0xff] %v252_v10  ;;  %294 = vst [vmem:[#allocation2 + $0x50] sm:$0xff] %v253_v11 }
  0x28   : > { %295 = vst [vmem:[#allocation2 + $0x58] sm:$0xff] %v254_v12  ;;  %296 = vst [vmem:[#allocation2 + $0x60] sm:$0xff] %v255_v13 }
  0x29   : > { %297 = vst [vmem:[#allocation2 + $0x68] sm:$0xff] %v256_v14  ;;  %298 = vst [vmem:[#allocation2 + $0x70] sm:$0xff] %v257_v15 }
  0x2a   : > { %299 = vst [vmem:[#allocation2 + $0x78] sm:$0xff] %v258_v16  ;;  %300 = vst [vmem:[#allocation2 + $0x80] sm:$0xff] %v259_v17 }
  0x2b   : > { %301 = vst [vmem:[#allocation2 + $0x88] sm:$0xff] %v260_v18  ;;  %302 = vst [vmem:[#allocation2 + $0x90] sm:$0xff] %v261_v19 }
  0x2c   : > { %303 = vst [vmem:[#allocation2 + $0x98] sm:$0xff] %v262_v20  ;;  %304 = vst [vmem:[#allocation2 + $0xa0] sm:$0xff] %v263_v21 }
  0x2d   : > { %305 = vst [vmem:[#allocation2 + $0xa8] sm:$0xff] %v264_v22  ;;  %306 = vst [vmem:[#allocation2 + $0xb0] sm:$0xff] %v265_v23 }
  0x2e   : > { %307 = vst [vmem:[#allocation2 + $0xb8] sm:$0xff] %v266_v24  ;;  %308 = vst [vmem:[#allocation2 + $0xc0] sm:$0xff] %v267_v25 }
  0x2f   : > { %309 = vst [vmem:[#allocation2 + $0xc8] sm:$0xff] %v268_v26  ;;  %310 = vst [vmem:[#allocation2 + $0xd0] sm:$0xff] %v269_v27 }
  0x30   : > { %311 = vst [vmem:[#allocation2 + $0xd8] sm:$0xff] %v270_v28  ;;  %312 = vst [vmem:[#allocation2 + $0xe0] sm:$0xff] %v271_v29 }
  0x31   : > { %313 = vst [vmem:[#allocation2 + $0xe8] sm:$0xff] %v272_v30  ;;  %314 = vst [vmem:[#allocation2 + $0xf0] sm:$0xff] %v273_v31 }
  0x32   : > { %315 = vst [vmem:[#allocation2 + $0xf8] sm:$0xff] %v274_v32  ;;  %316 = vst [vmem:[#allocation2 + $0x100] sm:$0xff] %v275_v33 }
  0x33   : > { %317 = vst [vmem:[#allocation2 + $0x108] sm:$0xff] %v276_v34  ;;  %318 = vst [vmem:[#allocation2 + $0x110] sm:$0xff] %v277_v35 }
  0x34   : > { %319 = vst [vmem:[#allocation2 + $0x118] sm:$0xff] %v278_v36  ;;  %320 = vst [vmem:[#allocation2 + $0x120] sm:$0xff] %v279_v37 }
  0x35   : > { %321 = vst [vmem:[#allocation2 + $0x128] sm:$0xff] %v280_v38  ;;  %322 = vst [vmem:[#allocation2 + $0x130] sm:$0xff] %v281_v39 }
  0x36   : > { %323 = vst [vmem:[#allocation2 + $0x138] sm:$0xff] %v282_v40  ;;  %324 = vst [vmem:[#allocation2 + $0x140] sm:$0xff] %v283_v41 }
  0x37 PF: > { %p362_p5 = scmp.lt.s32.totalorder %s7555_s19, 0  ;;  %s363_s12 = ssub.s32 0, %s7555_s19 }
  0x38   : > { %s5800_s13 = smin.u32 %s7555_s19, %s363_s12 }
  0x39   : > { %s365_s14 = sand.u32 1, %s5800_s13  }
  0x3a   : > { %s366_s15 = ssub.s32 0, %s365_s14 }
  0x3b   : > { %s9169_s15 = smov (!%p362_p5, %s366_s15), %s365_s14 }
  0x3c   : > { %p5802_p6 = scmp.lt.s32.totalorder %s9169_s15, 0  ;;  %s372_s16 = sadd.s32 2, %s9169_s15 }
  0x3e   : > { %s9171_s16 = smov (!%p5802_p6, %s372_s16), %s9169_s15 }
  0x3f   : > { %p5803_p7 = scmp.ne.s32.totalorder %s9171_s16, 1 }
  0x40   : > { %v378_v42 = vld [vmem:[#allocation2 + $0x10] sm:$0xff] (!%p5803_p7)  ;;  %v379_v43 = vld [vmem:[#allocation2 + $0x18] sm:$0xff] (!%p5803_p7)  ;;  %v380_v44 = vld [vmem:[#allocation2 + $0x20] sm:$0xff] (!%p5803_p7) }
  0x41   : > { %377 = sbr.rel (%p5803_p7) target bundleno = 84 (0x54), region = 48  ;;  %415 = vst [vmem:[#allocation5] sm:$0xff] (!%p5803_p7), %v378_v42  ;;  %416 = vst [vmem:[#allocation5 + $0x8] sm:$0xff] (!%p5803_p7), %v379_v43  ;;  %v381_v45 = vld [vmem:[#allocation2 + $0x28] sm:$0xff] (!%p5803_p7)  ;;  %v382_v46 = vld [vmem:[#allocation2 + $0x30] sm:$0xff] (!%p5803_p7) }
  0x42   : > { %417 = vst [vmem:[#allocation5 + $0x10] sm:$0xff] (!%p5803_p7), %v380_v44  ;;  %v383_v47 = vld [vmem:[#allocation2 + $0x38] sm:$0xff] (!%p5803_p7)  ;;  %418 = vst [vmem:[#allocation5 + $0x18] sm:$0xff] (!%p5803_p7), %v381_v45  ;;  %v384_v48 = vld [vmem:[#allocation2 + $0x40] sm:$0xff] (!%p5803_p7) }
  0x43   : > { %419 = vst [vmem:[#allocation5 + $0x20] sm:$0xff] (!%p5803_p7), %v382_v46  ;;  %420 = vst [vmem:[#allocation5 + $0x28] sm:$0xff] (!%p5803_p7), %v383_v47  ;;  %v385_v49 = vld [vmem:[#allocation2 + $0x48] sm:$0xff] (!%p5803_p7)  ;;  %v386_v50 = vld [vmem:[#allocation2 + $0x50] sm:$0xff] (!%p5803_p7) }
  0x44   : > { %421 = vst [vmem:[#allocation5 + $0x30] sm:$0xff] (!%p5803_p7), %v384_v48  ;;  %422 = vst [vmem:[#allocation5 + $0x38] sm:$0xff] (!%p5803_p7), %v385_v49  ;;  %v387_v51 = vld [vmem:[#allocation2 + $0x58] sm:$0xff] (!%p5803_p7)  ;;  %v388_v52 = vld [vmem:[#allocation2 + $0x60] sm:$0xff] (!%p5803_p7) }
  0x45   : > { %423 = vst [vmem:[#allocation5 + $0x40] sm:$0xff] (!%p5803_p7), %v386_v50  ;;  %v389_v53 = vld [vmem:[#allocation2 + $0x68] sm:$0xff] (!%p5803_p7)  ;;  %424 = vst [vmem:[#allocation5 + $0x48] sm:$0xff] (!%p5803_p7), %v387_v51  ;;  %v390_v54 = vld [vmem:[#allocation2 + $0x70] sm:$0xff] (!%p5803_p7) }
  0x46   : > { %425 = vst [vmem:[#allocation5 + $0x50] sm:$0xff] (!%p5803_p7), %v388_v52  ;;  %426 = vst [vmem:[#allocation5 + $0x58] sm:$0xff] (!%p5803_p7), %v389_v53  ;;  %v391_v55 = vld [vmem:[#allocation2 + $0x78] sm:$0xff] (!%p5803_p7)  ;;  %v392_v56 = vld [vmem:[#allocation2 + $0x80] sm:$0xff] (!%p5803_p7) }
  0x47   : > { %427 = vst [vmem:[#allocation5 + $0x60] sm:$0xff] (!%p5803_p7), %v390_v54  ;;  %428 = vst [vmem:[#allocation5 + $0x68] sm:$0xff] (!%p5803_p7), %v391_v55  ;;  %v393_v57 = vld [vmem:[#allocation2 + $0x88] sm:$0xff] (!%p5803_p7)  ;;  %v394_v58 = vld [vmem:[#allocation2 + $0x90] sm:$0xff] (!%p5803_p7) }
  0x48   : > { %429 = vst [vmem:[#allocation5 + $0x70] sm:$0xff] %v392_v56  ;;  %v395_v59 = vld [vmem:[#allocation2 + $0x98] sm:$0xff]  ;;  %430 = vst [vmem:[#allocation5 + $0x78] sm:$0xff] %v393_v57  ;;  %v396_v60 = vld [vmem:[#allocation2 + $0xa0] sm:$0xff] }
  0x49   : > { %431 = vst [vmem:[#allocation5 + $0x80] sm:$0xff] %v394_v58  ;;  %432 = vst [vmem:[#allocation5 + $0x88] sm:$0xff] %v395_v59  ;;  %v397_v61 = vld [vmem:[#allocation2 + $0xa8] sm:$0xff]  ;;  %v398_v62 = vld [vmem:[#allocation2 + $0xb0] sm:$0xff] }
  0x4a   : > { %433 = vst [vmem:[#allocation5 + $0x90] sm:$0xff] %v396_v60  ;;  %434 = vst [vmem:[#allocation5 + $0x98] sm:$0xff] %v397_v61  ;;  %v399_v63 = vld [vmem:[#allocation2 + $0xb8] sm:$0xff]  ;;  %v400_v0 = vld [vmem:[#allocation2 + $0xc0] sm:$0xff] }
  0x4b   : > { %435 = vst [vmem:[#allocation5 + $0xa0] sm:$0xff] %v398_v62  ;;  %v401_v1 = vld [vmem:[#allocation2 + $0xc8] sm:$0xff]  ;;  %436 = vst [vmem:[#allocation5 + $0xa8] sm:$0xff] %v399_v63  ;;  %v402_v2 = vld [vmem:[#allocation2 + $0xd0] sm:$0xff] }
  0x4c   : > { %437 = vst [vmem:[#allocation5 + $0xb0] sm:$0xff] %v400_v0  ;;  %438 = vst [vmem:[#allocation5 + $0xb8] sm:$0xff] %v401_v1  ;;  %v403_v3 = vld [vmem:[#allocation2 + $0xd8] sm:$0xff]  ;;  %v404_v4 = vld [vmem:[#allocation2 + $0xe0] sm:$0xff] }
  0x4d   : > { %439 = vst [vmem:[#allocation5 + $0xc0] sm:$0xff] %v402_v2  ;;  %440 = vst [vmem:[#allocation5 + $0xc8] sm:$0xff] %v403_v3  ;;  %v405_v5 = vld [vmem:[#allocation2 + $0xe8] sm:$0xff]  ;;  %v406_v6 = vld [vmem:[#allocation2 + $0xf0] sm:$0xff] }
  0x4e   : > { %441 = vst [vmem:[#allocation5 + $0xd0] sm:$0xff] %v404_v4  ;;  %v407_v7 = vld [vmem:[#allocation2 + $0xf8] sm:$0xff]  ;;  %442 = vst [vmem:[#allocation5 + $0xd8] sm:$0xff] %v405_v5  ;;  %v408_v8 = vld [vmem:[#allocation2 + $0x100] sm:$0xff] }
  0x4f   : > { %443 = vst [vmem:[#allocation5 + $0xe0] sm:$0xff] %v406_v6  ;;  %444 = vst [vmem:[#allocation5 + $0xe8] sm:$0xff] %v407_v7  ;;  %v409_v9 = vld [vmem:[#allocation2 + $0x108] sm:$0xff]  ;;  %v410_v10 = vld [vmem:[#allocation2 + $0x110] sm:$0xff] }
  0x50   : > { %445 = vst [vmem:[#allocation5 + $0xf0] sm:$0xff] %v408_v8  ;;  %446 = vst [vmem:[#allocation5 + $0xf8] sm:$0xff] %v409_v9  ;;  %v411_v11 = vld [vmem:[#allocation2 + $0x118] sm:$0xff]  ;;  %v412_v12 = vld [vmem:[#allocation2 + $0x120] sm:$0xff] }
  0x51   : > { %447 = vst [vmem:[#allocation5 + $0x100] sm:$0xff] %v410_v10  ;;  %v413_v13 = vld [vmem:[#allocation2 + $0x128] sm:$0xff]  ;;  %448 = vst [vmem:[#allocation5 + $0x108] sm:$0xff] %v411_v11  ;;  %v414_v14 = vld [vmem:[#allocation2 + $0x130] sm:$0xff] }
  0x52   : > { %449 = vst [vmem:[#allocation5 + $0x110] sm:$0xff] %v412_v12  ;;  %450 = vst [vmem:[#allocation5 + $0x118] sm:$0xff] %v413_v13 }
  0x53   : > { %451 = vst [vmem:[#allocation5 + $0x120] sm:$0xff] %v414_v14 }
  0x54 PF: > { %v7146_v15 = vld [vmem:[%s7575_s30] sm:$0xff]   ;;  %v7516_v16 = vmov 0   ;;  %v7148_v18 = vld [vmem:[%s7575_s30 + $0x8] sm:$0xff]   ;;  %v7150_v20 = vld [vmem:[%s7575_s30 + $0x10] sm:$0xff]   ;;  %vm7518_vm0 = vmmov 0   ;;  %p5352_p8 = scmp.gt.s32.totalorder %s7555_s19, 0 }
  0x55   : > { %4080 = vmatprep.subr.bf16.mxu1 %v7516_v16  ;;  %4448 = vmatprep.subr.bf16.mxu0 %v7516_v16  ;;  %v7147_v17 = vld [vmem:[%s7575_s30 + $0x100] sm:$0xff]   ;;  %v7149_v19 = vld [vmem:[%s7575_s30 + $0x108] sm:$0xff]   ;;  %v7151_v21 = vld [vmem:[%s7575_s30 + $0x110] sm:$0xff]   ;;  %p5353_p9 = scmp.eq.s32.totalorder %s9171_s16, 0  ;;  %p6381_p11 = scmp.ne.s32.totalorder %s7555_s19, 4 }
  0x56   : > { %4081 = vmatpush1.bf16.msra.mxu1 %v7146_v15  ;;  %4449 = vmatpush1.bf16.msra.mxu0 %v7147_v17  ;;  %v7152_v22 = vld [vmem:[%s7575_s30 + $0x18] sm:$0xff]   ;;  %v7154_v24 = vld [vmem:[%s7575_s30 + $0x20] sm:$0xff]   ;;  %v7156_v26 = vld [vmem:[%s7575_s30 + $0x28] sm:$0xff]  }
  0x57   : > { %4082 = vmatprep.subr.bf16.mxu1 %v7516_v16  ;;  %4450 = vmatprep.subr.bf16.mxu0 %v7516_v16  ;;  %v7153_v23 = vld [vmem:[%s7575_s30 + $0x118] sm:$0xff]   ;;  %v7155_v25 = vld [vmem:[%s7575_s30 + $0x120] sm:$0xff]   ;;  %v7157_v27 = vld [vmem:[%s7575_s30 + $0x128] sm:$0xff]   ;;  %p8399_p10 = pnand %p5353_p9, %p5352_p8 }
  0x58   : > { %v7158_v28 = vld [vmem:[%s7575_s30 + $0x30] sm:$0xff]   ;;  %v7160_v30 = vld [vmem:[%s7575_s30 + $0x38] sm:$0xff]   ;;  %v7162_v32 = vld [vmem:[%s7575_s30 + $0x40] sm:$0xff]  }
  0x59   : > { %v7159_v29 = vld [vmem:[%s7575_s30 + $0x130] sm:$0xff]   ;;  %v7161_v31 = vld [vmem:[%s7575_s30 + $0x138] sm:$0xff]   ;;  %v7163_v33 = vld [vmem:[%s7575_s30 + $0x140] sm:$0xff]   ;;  %s6380_s15 = scalar_select %p8399_p10, 0.0, 1.0 }
  0x5a   : > { %4083 = vmatpush1.bf16.msra.mxu1 %v7148_v18  ;;  %4451 = vmatpush1.bf16.msra.mxu0 %v7149_v19  ;;  %v7164_v34 = vld [vmem:[%s7575_s30 + $0x48] sm:$0xff]   ;;  %v1344_v42 = vld [vmem:[#allocation2 + $0x10] sm:$0xff]  ;;  %v1345_v43 = vld [vmem:[#allocation2 + $0x18] sm:$0xff] }
  0x5b   : > { %4084 = vmatprep.subr.bf16.mxu1 %v7516_v16  ;;  %4452 = vmatprep.subr.bf16.mxu0 %v7516_v16  ;;  %v452_v35 = vld [vmem:[#allocation2 + $0x3] sm:$0xff]  ;;  %v453_v36 = vld [vmem:[#allocation2 + $0xb] sm:$0xff]  ;;  %v6532_v45 = vpack.c.bf16 %v1344_v42, %v1344_v42  ;;  %v6533_v46 = vpack.c.bf16 %v1345_v43, %v1345_v43  ;;  %v1568_v48 = vld [vmem:[#allocation2 + $0x19] sm:$0xff] }
  0x5c   : > { %v675_v37 = vld [vmem:[#allocation2 + $0x4] sm:$0xff]  ;;  %v6384_v38 = vpack.c.bf16 %v452_v35, %v452_v35  ;;  %v6385_v39 = vpack.c.bf16 %v453_v36, %v453_v36  ;;  %v676_v40 = vld [vmem:[#allocation2 + $0xc] sm:$0xff]  ;;  %v6570_v51 = vpack.c.bf16 %v1568_v48, %v1568_v48  ;;  %v455_v55 = vld [vmem:[#allocation2 + $0x1b] sm:$0xff] }
  0x5d   : > { %v6421_v41 = vpack.c.bf16 %v675_v37, %v675_v37  ;;  %v6422_v44 = vpack.c.bf16 %v676_v40, %v676_v40  ;;  %v1567_v47 = vld [vmem:[#allocation2 + $0x11] sm:$0xff]  ;;  %v7165_v49 = vld [vmem:[%s7575_s30 + $0x148] sm:$0xff]   ;;  %1530 = vst [vmem:[#allocation3 + $0x10] sm:$0xf] %v6532_v45  ;;  %1531 = vst [vmem:[#allocation3 + $0x34] sm:$0xf] %v6533_v46  ;;  %v6387_v59 = vpack.c.bf16 %v455_v55, %v455_v55 }
  0x5e   : > { %4085 = vmatpush1.bf16.msra.mxu1 %v7150_v20  ;;  %4453 = vmatpush1.bf16.msra.mxu0 %v7151_v21  ;;  %638 = vst [vmem:[#allocation3] sm:$0xf] %v6384_v38  ;;  %639 = vst [vmem:[#allocation3 + $0x24] sm:$0xf] %v6385_v39  ;;  %v6569_v50 = vpack.c.bf16 %v1567_v47, %v1567_v47  ;;  %v7166_v52 = vld [vmem:[%s7575_s30 + $0x50] sm:$0xff]   ;;  %v678_v58 = vld [vmem:[#allocation2 + $0x1c] sm:$0xff] }
  0x5f   : > { %4086 = vmatprep.subr.bf16.mxu1 %v7516_v16  ;;  %4454 = vmatprep.subr.bf16.mxu0 %v7516_v16  ;;  %861 = vst [vmem:[#allocation3 + $0x4] sm:$0xf] %v6421_v41  ;;  %862 = vst [vmem:[#allocation3 + $0x28] sm:$0xf] %v6422_v44  ;;  %v454_v53 = vld [vmem:[#allocation2 + $0x13] sm:$0xff]  ;;  %v6424_v61 = vpack.c.bf16 %v678_v58, %v678_v58  ;;  %v1346_v62 = vld [vmem:[#allocation2 + $0x20] sm:$0xff] }
  0x60   : > { %v7167_v54 = vld [vmem:[%s7575_s30 + $0x150] sm:$0xff]   ;;  %1753 = vst [vmem:[#allocation3 + $0x14] sm:$0xf] %v6569_v50  ;;  %1754 = vst [vmem:[#allocation3 + $0x38] sm:$0xf] %v6570_v51  ;;  %v6386_v56 = vpack.c.bf16 %v454_v53, %v454_v53  ;;  %v1347_v63 = vld [vmem:[#allocation2 + $0x28] sm:$0xff]  ;;  %v6534_v1 = vpack.c.bf16 %v1346_v62, %v1346_v62 }
  0x61   : > { %v677_v57 = vld [vmem:[#allocation2 + $0x14] sm:$0xff]  ;;  %v1569_v0 = vld [vmem:[#allocation2 + $0x21] sm:$0xff]  ;;  %v6535_v2 = vpack.c.bf16 %v1347_v63, %v1347_v63  ;;  %v1570_v3 = vld [vmem:[#allocation2 + $0x29] sm:$0xff]  ;;  %641 = vst [vmem:[#allocation3 + $0x6c] sm:$0xf] %v6387_v59 }
  0x62   : > { %4087 = vmatpush1.bf16.msra.mxu1 %v7152_v22  ;;  %4455 = vmatpush1.bf16.msra.mxu0 %v7153_v23  ;;  %v6423_v60 = vpack.c.bf16 %v677_v57, %v677_v57  ;;  %640 = vst [vmem:[#allocation3 + $0x48] sm:$0xf] %v6386_v56  ;;  %v6571_v4 = vpack.c.bf16 %v1569_v0, %v1569_v0  ;;  %864 = vst [vmem:[#allocation3 + $0x70] sm:$0xf] %v6424_v61  ;;  %v7168_v6 = vld [vmem:[%s7575_s30 + $0x58] sm:$0xff]   ;;  %v456_v7 = vld [vmem:[#allocation2 + $0x23] sm:$0xff] }
  0x63   : > { %4088 = vmatprep.subr.bf16.mxu1 %v7516_v16  ;;  %4456 = vmatprep.subr.bf16.mxu0 %v7516_v16  ;;  %v6572_v5 = vpack.c.bf16 %v1570_v3, %v1570_v3  ;;  %1976 = vst [vmem:[#allocation3 + $0x18] sm:$0xf] %v6387_v59  ;;  %2199 = vst [vmem:[#allocation3 + $0x1c] sm:$0xf] %v6424_v61  ;;  %v457_v8 = vld [vmem:[#allocation2 + $0x2b] sm:$0xff]  ;;  %v6388_v9 = vpack.c.bf16 %v456_v7, %v456_v7  ;;  %v7169_v13 = vld [vmem:[%s7575_s30 + $0x158] sm:$0xff]  }
  0x64   : > { %863 = vst [vmem:[#allocation3 + $0x4c] sm:$0xf] %v6423_v60  ;;  %1532 = vst [vmem:[#allocation3 + $0x58] sm:$0xf] %v6534_v1  ;;  %v6389_v10 = vpack.c.bf16 %v457_v8, %v457_v8  ;;  %v679_v11 = vld [vmem:[#allocation2 + $0x24] sm:$0xff]  ;;  %v680_v12 = vld [vmem:[#allocation2 + $0x2c] sm:$0xff] }
  0x65   : > { %1533 = vst [vmem:[#allocation3 + $0x7c] sm:$0xf] %v6535_v2  ;;  %1755 = vst [vmem:[#allocation3 + $0x5c] sm:$0xf] %v6571_v4  ;;  %v6425_v15 = vpack.c.bf16 %v679_v11, %v679_v11  ;;  %v6426_v17 = vpack.c.bf16 %v680_v12, %v680_v12  ;;  %v7170_v18 = vld [vmem:[%s7575_s30 + $0x60] sm:$0xff]   ;;  %v1348_v20 = vld [vmem:[#allocation2 + $0x30] sm:$0xff] }
  0x66   : > { %4089 = vmatpush1.bf16.msra.mxu1 %v7154_v24  ;;  %4457 = vmatpush1.bf16.msra.mxu0 %v7155_v25  ;;  %1756 = vst [vmem:[#allocation3 + $0x80] sm:$0xf] %v6572_v5  ;;  %v7180_v14 = vld [vmem:[#allocation3 + $0x4] ss:$36 sps:$4 sm:$0xff]   ;;  %642 = vst [vmem:[#allocation3 + $0x90] sm:$0xf] %v6388_v9  ;;  %v6536_v22 = vpack.c.bf16 %v1348_v20, %v1348_v20 }
  0x67   : > { %4090 = vmatprep.subr.bf16.mxu1 %v7516_v16  ;;  %4458 = vmatprep.subr.bf16.mxu0 %v7516_v16  ;;  %643 = vst [vmem:[#allocation3 + $0xb4] sm:$0xf] %v6389_v10  ;;  %1977 = vst [vmem:[#allocation3 + $0x3c] sm:$0xf] %v6388_v9  ;;  %v7183_v19 = vld [vmem:[#allocation3 + $0x14] ss:$36 sps:$4 sm:$0xff]  }
  0x68   : > { %1978 = vst [vmem:[#allocation3 + $0x60] sm:$0xf] %v6389_v10  ;;  %4112 = vmatprep.mubr.bf16.mxu1 %v7180_v14  ;;  %865 = vst [vmem:[#allocation3 + $0x94] sm:$0xf] %v6425_v15  ;;  %v1349_v21 = vld [vmem:[#allocation2 + $0x38] sm:$0xff]  ;;  %4480 = vmatprep.mubr.bf16.mxu0 %v7183_v19  ;;  %v1350_v41 = vld [vmem:[#allocation2 + $0x40] sm:$0xff] }
  0x69   : > { %866 = vst [vmem:[#allocation3 + $0xb8] sm:$0xf] %v6426_v17  ;;  %2200 = vst [vmem:[#allocation3 + $0x40] sm:$0xf] %v6425_v15  ;;  %v6537_v23 = vpack.c.bf16 %v1349_v21, %v1349_v21  ;;  %v1571_v24 = vld [vmem:[#allocation2 + $0x31] sm:$0xff]  ;;  %v1572_v25 = vld [vmem:[#allocation2 + $0x39] sm:$0xff]  ;;  %v6538_v44 = vpack.c.bf16 %v1350_v41, %v1350_v41 }
  0x6a   : > { %4091 = vmatpush1.bf16.msra.mxu1 %v7156_v26  ;;  %4459 = vmatpush1.bf16.msra.mxu0 %v7157_v27  ;;  %2201 = vst [vmem:[#allocation3 + $0x64] sm:$0xf] %v6426_v17  ;;  %v7171_v26 = vld [vmem:[%s7575_s30 + $0x160] sm:$0xff]   ;;  %v6573_v27 = vpack.c.bf16 %v1571_v24, %v1571_v24  ;;  %1534 = vst [vmem:[#allocation3 + $0xa0] sm:$0xf] %v6536_v22  ;;  %v681_v36 = vld [vmem:[#allocation2 + $0x34] sm:$0xff] }
  0x6b   : > { %4092 = vmatprep.subr.bf16.mxu1 %v7516_v16  ;;  %4460 = vmatprep.subr.bf16.mxu0 %v7516_v16  ;;  %1535 = vst [vmem:[#allocation3 + $0xc4] sm:$0xf] %v6537_v23  ;;  %v682_v37 = vld [vmem:[#allocation2 + $0x3c] sm:$0xff]  ;;  %v6427_v39 = vpack.c.bf16 %v681_v36, %v681_v36  ;;  %v1351_v42 = vld [vmem:[#allocation2 + $0x48] sm:$0xff]  ;;  %1536 = vst [vmem:[#allocation3 + $0xe8] sm:$0xf] %v6538_v44 }
  0x6c   : > { %1757 = vst [vmem:[#allocation3 + $0xa4] sm:$0xf] %v6573_v27  ;;  %v6428_v40 = vpack.c.bf16 %v682_v37, %v682_v37  ;;  %v1573_v43 = vld [vmem:[#allocation2 + $0x41] sm:$0xff]  ;;  %v6539_v45 = vpack.c.bf16 %v1351_v42, %v1351_v42  ;;  %v7176_v47 = vld [vmem:[%s7575_s30 + $0x78] sm:$0xff]   ;;  %v1574_v48 = vld [vmem:[#allocation2 + $0x49] sm:$0xff] }
  0x6d   : > { %v6575_v46 = vpack.c.bf16 %v1573_v43, %v1573_v43  ;;  %867 = vst [vmem:[#allocation3 + $0xdc] sm:$0xf] %v6427_v39  ;;  %2202 = vst [vmem:[#allocation3 + $0x88] sm:$0xf] %v6427_v39  ;;  %v6576_v50 = vpack.c.bf16 %v1574_v48, %v1574_v48  ;;  %v7178_v51 = vld [vmem:[#allocation3] ss:$36 sps:$4 sm:$0xff]  }
  0x6e   : > { %4093 = vmatpush1.bf16.msra.mxu1 %v7158_v28  ;;  %4461 = vmatpush1.bf16.msra.mxu0 %v7159_v29  ;;  %v6574_v28 = vpack.c.bf16 %v1572_v25, %v1572_v25  ;;  %v7172_v29 = vld [vmem:[%s7575_s30 + $0x68] sm:$0xff]   ;;  %868 = vst [vmem:[#allocation3 + $0x100] sm:$0xf] %v6428_v40  ;;  %2203 = vst [vmem:[#allocation3 + $0xac] sm:$0xf] %v6428_v40  ;;  %v7184_v59 = vld [vmem:[%s7575_s30 + $0x180] sm:$0xff]  }
  0x6f   : > { %4094 = vmatprep.subr.bf16.mxu1 %v7516_v16  ;;  %4462 = vmatprep.subr.bf16.mxu0 %v7516_v16  ;;  %1537 = vst [vmem:[#allocation3 + $0x10c] sm:$0xf] %v6539_v45  ;;  %1759 = vst [vmem:[#allocation3 + $0xec] sm:$0xf] %v6575_v46  ;;  %v7181_v53 = vld [vmem:[#allocation3 + $0x10] ss:$36 sps:$4 sm:$0xff]  }
  0x70   : > { %1758 = vst [vmem:[#allocation3 + $0xc8] sm:$0xf] %v6574_v28  ;;  %1760 = vst [vmem:[#allocation3 + $0x110] sm:$0xf] %v6576_v50  ;;  %v461_v55 = vld [vmem:[#allocation2 + $0x4b] sm:$0xff]  ;;  %v1353_v0 = vld [vmem:[#allocation2 + $0x58] sm:$0xff] }
  0x71   : > { %v683_v57 = vld [vmem:[#allocation2 + $0x44] sm:$0xff]  ;;  %v684_v58 = vld [vmem:[#allocation2 + $0x4c] sm:$0xff]  ;;  %v6393_v60 = vpack.c.bf16 %v461_v55, %v461_v55  ;;  %v6541_v3 = vpack.c.bf16 %v1353_v0, %v1353_v0  ;;  %v1576_v4 = vld [vmem:[#allocation2 + $0x59] sm:$0xff] }
  0x72   : > { %4095 = vmatpush1.bf16.msra.mxu1 %v7160_v30  ;;  %4463 = vmatpush1.bf16.msra.mxu0 %v7161_v31  ;;  %v7173_v30 = vld [vmem:[%s7575_s30 + $0x168] sm:$0xff]   ;;  %v7174_v31 = vld [vmem:[%s7575_s30 + $0x70] sm:$0xff]   ;;  %v6429_v61 = vpack.c.bf16 %v683_v57, %v683_v57  ;;  %v6430_v62 = vpack.c.bf16 %v684_v58, %v684_v58  ;;  %v6578_v7 = vpack.c.bf16 %v1576_v4, %v1576_v4  ;;  %v7192_v8 = vld [vmem:[%s7575_s30 + $0x80] sm:$0xff]  }
  0x73   : > { %4096 = vmatprep.subr.bf16.mxu1 %v7516_v16  ;;  %4464 = vmatprep.subr.bf16.mxu0 %v7516_v16  ;;  %v1352_v63 = vld [vmem:[#allocation2 + $0x50] sm:$0xff]  ;;  %647 = vst [vmem:[#allocation3 + $0x144] sm:$0xf] %v6393_v60  ;;  %1982 = vst [vmem:[#allocation3 + $0xf0] sm:$0xf] %v6393_v60  ;;  %v7185_v9 = vld [vmem:[%s7575_s30 + $0x188] sm:$0xff]  }
  0x74   : > { %v1575_v1 = vld [vmem:[#allocation2 + $0x51] sm:$0xff]  ;;  %v6540_v2 = vpack.c.bf16 %v1352_v63, %v1352_v63  ;;  %869 = vst [vmem:[#allocation3 + $0x124] sm:$0xf] %v6429_v61  ;;  %870 = vst [vmem:[#allocation3 + $0x148] sm:$0xf] %v6430_v62  ;;  %v7201_v11 = vld [vmem:[%s7575_s30 + $0x88] sm:$0xff]  }
  0x75   : > { %v6577_v5 = vpack.c.bf16 %v1575_v1, %v1575_v1  ;;  %2204 = vst [vmem:[#allocation3 + $0xd0] sm:$0xf] %v6429_v61  ;;  %2205 = vst [vmem:[#allocation3 + $0xf4] sm:$0xf] %v6430_v62  ;;  %v7190_v10 = vld [vmem:[#allocation3 + $0x48] ss:$36 sps:$4 sm:$0xff]  }
  0x76   : > { %4097 = vmatpush1.bf16.msra.mxu1 %v7162_v32  ;;  %4465 = vmatpush1.bf16.msra.mxu0 %v7163_v33  ;;  %v7175_v32 = vld [vmem:[%s7575_s30 + $0x170] sm:$0xff]   ;;  %1538 = vst [vmem:[#allocation3 + $0x130] sm:$0xf] %v6540_v2  ;;  %1539 = vst [vmem:[#allocation3 + $0x154] sm:$0xf] %v6541_v3  ;;  %v463_v14 = vld [vmem:[#allocation2 + $0x5b] sm:$0xff] }
  0x77   : > { %4098 = vmatprep.subr.bf16.mxu1 %v7516_v16  ;;  %4466 = vmatprep.subr.bf16.mxu0 %v7516_v16  ;;  %v458_v33 = vld [vmem:[#allocation2 + $0x33] sm:$0xff]  ;;  %1761 = vst [vmem:[#allocation3 + $0x134] sm:$0xf] %v6577_v5  ;;  %1762 = vst [vmem:[#allocation3 + $0x158] sm:$0xf] %v6578_v7  ;;  %v6395_v19 = vpack.c.bf16 %v463_v14, %v463_v14  ;;  %v686_v20 = vld [vmem:[#allocation2 + $0x5c] sm:$0xff] }
  0x78   : > { %v6390_v35 = vpack.c.bf16 %v458_v33, %v458_v33  ;;  %v7191_v12 = vld [vmem:[#allocation3 + $0x58] ss:$36 sps:$4 sm:$0xff]   ;;  %v685_v15 = vld [vmem:[#allocation2 + $0x54] sm:$0xff]  ;;  %v1355_v23 = vld [vmem:[#allocation2 + $0x68] sm:$0xff]  ;;  %v6432_v25 = vpack.c.bf16 %v686_v20, %v686_v20 }
  0x79   : > { %v7193_v17 = vld [vmem:[%s7575_s30 + $0x190] sm:$0xff]   ;;  %v6431_v21 = vpack.c.bf16 %v685_v15, %v685_v15  ;;  %v1354_v22 = vld [vmem:[#allocation2 + $0x60] sm:$0xff]  ;;  %v6543_v27 = vpack.c.bf16 %v1355_v23, %v1355_v23  ;;  %649 = vst [vmem:[#allocation3 + $0x18c] sm:$0xf] %v6395_v19  ;;  %1984 = vst [vmem:[#allocation3 + $0x138] sm:$0xf] %v6395_v19 }
  0x7a   : > { %4099 = vmatpush1.bf16.msra.mxu1 %v7164_v34  ;;  %4467 = vmatpush1.bf16.msra.mxu0 %v7165_v49  ;;  %v459_v34 = vld [vmem:[#allocation2 + $0x3b] sm:$0xff]  ;;  %644 = vst [vmem:[#allocation3 + $0xd8] sm:$0xf] %v6390_v35  ;;  %1979 = vst [vmem:[#allocation3 + $0x84] sm:$0xf] %v6390_v35  ;;  %v464_v37 = vld [vmem:[#allocation2 + $0x63] sm:$0xff] }
  0x7b   : > { %4100 = vmatprep.subr.bf16.mxu1 %v7516_v16  ;;  %4468 = vmatprep.subr.bf16.mxu0 %v7516_v16  ;;  %v6391_v38 = vpack.c.bf16 %v459_v34, %v459_v34  ;;  %v7177_v49 = vld [vmem:[%s7575_s30 + $0x178] sm:$0xff]   ;;  %v7196_v28 = vld [vmem:[#allocation3 + $0xa4] ss:$36 sps:$4 sm:$0xff]   ;;  %871 = vst [vmem:[#allocation3 + $0x16c] sm:$0xf] %v6431_v21  ;;  %v6396_v40 = vpack.c.bf16 %v464_v37, %v464_v37  ;;  %v687_v42 = vld [vmem:[#allocation2 + $0x64] sm:$0xff] }
  0x7c   : > { %v7194_v24 = vld [vmem:[#allocation3 + $0x94] ss:$36 sps:$4 sm:$0xff]   ;;  %2206 = vst [vmem:[#allocation3 + $0x118] sm:$0xf] %v6431_v21  ;;  %872 = vst [vmem:[#allocation3 + $0x190] sm:$0xf] %v6432_v25  ;;  %v6433_v46 = vpack.c.bf16 %v687_v42, %v687_v42 }
  0x7d   : > { %645 = vst [vmem:[#allocation3 + $0xfc] sm:$0xf] %v6391_v38  ;;  %1980 = vst [vmem:[#allocation3 + $0xa8] sm:$0xf] %v6391_v38  ;;  %v7200_v33 = vld [vmem:[%s7575_s30 + $0x198] sm:$0xff]   ;;  %v465_v38 = vld [vmem:[#allocation2 + $0x6b] sm:$0xff] }
  0x7e   : > { %4101 = vmatpush1.bf16.msra.mxu1 %v7166_v52  ;;  %4469 = vmatpush1.bf16.msra.mxu0 %v7167_v54  ;;  %v460_v52 = vld [vmem:[#allocation2 + $0x43] sm:$0xff]  ;;  %v7186_v54 = vld [vmem:[#allocation3 + $0x4c] ss:$36 sps:$4 sm:$0xff]   ;;  %1541 = vst [vmem:[#allocation3 + $0x19c] sm:$0xf] %v6543_v27  ;;  %v6397_v41 = vpack.c.bf16 %v465_v38, %v465_v38  ;;  %v688_v43 = vld [vmem:[#allocation2 + $0x6c] sm:$0xff] }
  0x7f   : > { %4102 = vmatprep.subr.bf16.mxu1 %v7516_v16  ;;  %4470 = vmatprep.subr.bf16.mxu0 %v7516_v16  ;;  %v6392_v56 = vpack.c.bf16 %v460_v52, %v460_v52  ;;  %2207 = vst [vmem:[#allocation3 + $0x13c] sm:$0xf] %v6432_v25  ;;  %v7198_v35 = vld [vmem:[#allocation3 + $0x90] ss:$36 sps:$4 sm:$0xff]   ;;  %v7199_v39 = vld [vmem:[#allocation3 + $0xa0] ss:$36 sps:$4 sm:$0xff]  }
  0x80   : > { %v7219_v36 = vld [vmem:[%s7575_s30 + $0x98] sm:$0xff]   ;;  %v7202_v44 = vld [vmem:[%s7575_s30 + $0x1a0] sm:$0xff]   ;;  %v1356_v48 = vld [vmem:[#allocation2 + $0x70] sm:$0xff]  ;;  %650 = vst [vmem:[#allocation3 + $0x1b0] sm:$0xf] %v6396_v40 }
  0x81   : > { %646 = vst [vmem:[#allocation3 + $0x120] sm:$0xf] %v6392_v56  ;;  %1981 = vst [vmem:[#allocation3 + $0xcc] sm:$0xf] %v6392_v56  ;;  %v7203_v45 = vld [vmem:[#allocation3 + $0xdc] ss:$36 sps:$4 sm:$0xff]   ;;  %v6544_v50 = vpack.c.bf16 %v1356_v48, %v1356_v48 }
  0x82   : > { %4103 = vmatpush1.bf16.msra.mxu1 %v7168_v6  ;;  %4471 = vmatpush1.bf16.msra.mxu0 %v7169_v13  ;;  %v7188_v6 = vld [vmem:[#allocation3 + $0x5c] ss:$36 sps:$4 sm:$0xff]   ;;  %v462_v13 = vld [vmem:[#allocation2 + $0x53] sm:$0xff]  ;;  %651 = vst [vmem:[#allocation3 + $0x1d4] sm:$0xf] %v6397_v41  ;;  %v690_v62 = vld [vmem:[#allocation2 + $0x7c] sm:$0xff] }
  0x83   : > { %4104 = vmatprep.subr.bf16.mxu1 %v7516_v16  ;;  %4472 = vmatprep.subr.bf16.mxu0 %v7516_v16  ;;  %1985 = vst [vmem:[#allocation3 + $0x15c] sm:$0xf] %v6396_v40  ;;  %1986 = vst [vmem:[#allocation3 + $0x180] sm:$0xf] %v6397_v41  ;;  %v7205_v52 = vld [vmem:[#allocation3 + $0xec] ss:$36 sps:$4 sm:$0xff]   ;;  %v6436_v3 = vpack.c.bf16 %v690_v62, %v690_v62 }
  0x84   : > { %873 = vst [vmem:[#allocation3 + $0x1b4] sm:$0xf] %v6433_v46  ;;  %2208 = vst [vmem:[#allocation3 + $0x160] sm:$0xf] %v6433_v46  ;;  %v1580_v56 = vld [vmem:[#allocation2 + $0x79] sm:$0xff]  ;;  %v7209_v0 = vld [vmem:[%s7575_s30 + $0x1a8] sm:$0xff]  }
  0x85   : > { %1542 = vst [vmem:[#allocation3 + $0x1c0] sm:$0xf] %v6544_v50  ;;  %v6582_v57 = vpack.c.bf16 %v1580_v56, %v1580_v56  ;;  %v466_v58 = vld [vmem:[#allocation2 + $0x73] sm:$0xff]  ;;  %v7207_v63 = vld [vmem:[#allocation3 + $0xd8] ss:$36 sps:$4 sm:$0xff]   ;;  %v469_v21 = vld [vmem:[#allocation2 + $0x8b] sm:$0xff] }
  0x86   : > { %4105 = vmatpush1.bf16.msra.mxu1 %v7170_v18  ;;  %4473 = vmatpush1.bf16.msra.mxu0 %v7171_v26  ;;  %v6394_v18 = vpack.c.bf16 %v462_v13, %v462_v13  ;;  %v6542_v26 = vpack.c.bf16 %v1354_v22, %v1354_v22  ;;  %v6398_v60 = vpack.c.bf16 %v466_v58, %v466_v58  ;;  %v689_v61 = vld [vmem:[#allocation2 + $0x74] sm:$0xff]  ;;  %v1358_v5 = vld [vmem:[#allocation2 + $0x80] sm:$0xff]  ;;  %v7227_v41 = vld [vmem:[%s7575_s30 + $0x1c8] sm:$0xff]  }
  0x87   : > { %4106 = vmatprep.subr.bf16.mxu1 %v7516_v16  ;;  %4474 = vmatprep.subr.bf16.mxu0 %v7516_v16  ;;  %1766 = vst [vmem:[#allocation3 + $0x1e8] sm:$0xf] %v6582_v57  ;;  %v6435_v2 = vpack.c.bf16 %v689_v61, %v689_v61  ;;  %v7208_v4 = vld [vmem:[#allocation3 + $0xe8] ss:$36 sps:$4 sm:$0xff]   ;;  %v1581_v7 = vld [vmem:[#allocation2 + $0x81] sm:$0xff]  ;;  %v6401_v25 = vpack.c.bf16 %v469_v21, %v469_v21  ;;  %v1584_v38 = vld [vmem:[#allocation2 + $0x99] sm:$0xff] }
  0x88   : > { %648 = vst [vmem:[#allocation3 + $0x168] sm:$0xf] %v6394_v18  ;;  %1983 = vst [vmem:[#allocation3 + $0x114] sm:$0xf] %v6394_v18  ;;  %v7213_v14 = vld [vmem:[#allocation3 + $0x134] ss:$36 sps:$4 sm:$0xff]  }
  0x89   : > { %1540 = vst [vmem:[#allocation3 + $0x178] sm:$0xf] %v6542_v26  ;;  %652 = vst [vmem:[#allocation3 + $0x1f8] sm:$0xf] %v6398_v60  ;;  %v7215_v15 = vld [vmem:[%s7575_s30 + $0x1b0] sm:$0xff]   ;;  %v7218_v18 = vld [vmem:[%s7575_s30 + $0x1b8] sm:$0xff]  }
  0x8a   : > { %4107 = vmatpush1.bf16.msra.mxu1 %v7172_v29  ;;  %4475 = vmatpush1.bf16.msra.mxu0 %v7173_v30  ;;  %v1577_v29 = vld [vmem:[#allocation2 + $0x61] sm:$0xff]  ;;  %v7210_v30 = vld [vmem:[%s7575_s30 + $0x90] sm:$0xff]   ;;  %1987 = vst [vmem:[#allocation3 + $0x1a4] sm:$0xf] %v6398_v60  ;;  %875 = vst [vmem:[#allocation3 + $0x1fc] sm:$0xf] %v6435_v2 }
  0x8b   : > { %4108 = vmatprep.subr.bf16.mxu1 %v7516_v16  ;;  %4476 = vmatprep.subr.bf16.mxu0 %v7516_v16  ;;  %876 = vst [vmem:[#allocation3 + $0x220] sm:$0xf] %v6436_v3  ;;  %2210 = vst [vmem:[#allocation3 + $0x1a8] sm:$0xf] %v6435_v2  ;;  %v7216_v19 = vld [vmem:[#allocation3 + $0x120] ss:$36 sps:$4 sm:$0xff]  }
  0x8c   : > { %2211 = vst [vmem:[#allocation3 + $0x1cc] sm:$0xf] %v6436_v3  ;;  %v468_v20 = vld [vmem:[#allocation2 + $0x83] sm:$0xff]  ;;  %v7217_v23 = vld [vmem:[#allocation3 + $0x130] ss:$36 sps:$4 sm:$0xff]   ;;  %v7251_v40 = vld [vmem:[%s7575_s30 + $0xb0] sm:$0xff]  }
  0x8d   : > { %v691_v22 = vld [vmem:[#allocation2 + $0x84] sm:$0xff]  ;;  %v7220_v27 = vld [vmem:[#allocation3 + $0x16c] ss:$36 sps:$4 sm:$0xff]   ;;  %655 = vst [vmem:[#allocation3 + $0x264] sm:$0xf] %v6401_v25  ;;  %v694_v48 = vld [vmem:[#allocation2 + $0x9c] sm:$0xff] }
  0x8e   : > { %4109 = vmatpush1.bf16.msra.mxu1 %v7174_v31  ;;  %4477 = vmatpush1.bf16.msra.mxu0 %v7175_v32  ;;  %v6579_v31 = vpack.c.bf16 %v1577_v29, %v1577_v29  ;;  %v1578_v32 = vld [vmem:[#allocation2 + $0x69] sm:$0xff]  ;;  %v6437_v26 = vpack.c.bf16 %v691_v22, %v691_v22  ;;  %1990 = vst [vmem:[#allocation3 + $0x210] sm:$0xf] %v6401_v25  ;;  %v470_v42 = vld [vmem:[#allocation2 + $0x93] sm:$0xff]  ;;  %v698_v22 = vld [vmem:[#allocation2 + $0xbc] sm:$0xff] }
  0x8f   : > { %4110 = vmatprep.subr.bf16.mxu1 %v7516_v16  ;;  %4478 = vmatprep.subr.bf16.mxu0 %v7516_v16  ;;  %v6580_v34 = vpack.c.bf16 %v1578_v32, %v1578_v32  ;;  %v1360_v29 = vld [vmem:[#allocation2 + $0x90] sm:$0xff] }
  0x90   : > { %1763 = vst [vmem:[#allocation3 + $0x17c] sm:$0xf] %v6579_v31  ;;  %877 = vst [vmem:[#allocation3 + $0x244] sm:$0xf] %v6437_v26  ;;  %v1361_v31 = vld [vmem:[#allocation2 + $0x98] sm:$0xff]  ;;  %v6548_v32 = vpack.c.bf16 %v1360_v29, %v1360_v29  ;;  %v1586_v56 = vld [vmem:[#allocation2 + $0xa9] sm:$0xff] }
  0x91   : > { %1764 = vst [vmem:[#allocation3 + $0x1a0] sm:$0xf] %v6580_v34  ;;  %2212 = vst [vmem:[#allocation3 + $0x1f0] sm:$0xf] %v6437_v26  ;;  %v7225_v50 = vld [vmem:[#allocation3 + $0x178] ss:$36 sps:$4 sm:$0xff]   ;;  %v6444_v26 = vpack.c.bf16 %v698_v22, %v698_v22 }
  0x92   : > { %4111 = vmatpush1.bf16.msra.mxu1 %v7176_v47  ;;  %4479 = vmatpush1.bf16.msra.mxu0 %v7177_v49  ;;  %v6434_v47 = vpack.c.bf16 %v688_v43, %v688_v43  ;;  %v1357_v49 = vld [vmem:[#allocation2 + $0x78] sm:$0xff]  ;;  %1546 = vst [vmem:[#allocation3 + $0x250] sm:$0xf] %v6548_v32  ;;  %v7235_v62 = vld [vmem:[%s7575_s30 + $0x1d0] sm:$0xff]  }
  0x93   : > { %4264 = vmatprep.subr.bf16.mxu1 %v7516_v16  ;;  %4632 = vmatprep.subr.bf16.mxu0 %v7516_v16  ;;  %v471_v43 = vld [vmem:[#allocation2 + $0x9b] sm:$0xff]  ;;  %v473_v3 = vld [vmem:[#allocation2 + $0xab] sm:$0xff]  ;;  %884 = vst [vmem:[#allocation3 + $0x340] sm:$0xf] %v6444_v26  ;;  %2219 = vst [vmem:[#allocation3 + $0x2ec] sm:$0xf] %v6444_v26 }
  0x94   : > { %874 = vst [vmem:[#allocation3 + $0x1d8] sm:$0xf] %v6434_v47  ;;  %2209 = vst [vmem:[#allocation3 + $0x184] sm:$0xf] %v6434_v47  ;;  %v6403_v46 = vpack.c.bf16 %v471_v43, %v471_v43  ;;  %v693_v47 = vld [vmem:[#allocation2 + $0x94] sm:$0xff]  ;;  %v477_v32 = vld [vmem:[#allocation2 + $0xcb] sm:$0xff] }
  0x95   : > { %4113 = vmatmul.mubr.bf16.vlgmr.msra.gmra.mrb[0].mxu1 %v7178_v51  ;;  %4481 = vmatmul.mubr.bf16.vlgmr.msra.gmra.mrb[0].mxu0 %v7181_v53  ;;  %v1579_v51 = vld [vmem:[#allocation2 + $0x71] sm:$0xff]  ;;  %v7230_v53 = vld [vmem:[%s7575_s30 + $0xa0] sm:$0xff]   ;;  %v7312_v26 = vld [vmem:[%s7575_s30 + $0xe8] sm:$0xff]  }
  0x96   : > { %4120 = vmatprep.mubr.bf16.mxu1 %v7186_v54  ;;  %4633 = vmatpush1.bf16.msra.mxu0 %v7184_v59  ;;  %v6545_v54 = vpack.c.bf16 %v1357_v49, %v1357_v49  ;;  %v6581_v55 = vpack.c.bf16 %v1579_v51, %v1579_v51  ;;  %v467_v59 = vld [vmem:[#allocation2 + $0x7b] sm:$0xff]  ;;  %v6439_v51 = vpack.c.bf16 %v693_v47, %v693_v47  ;;  %v7257_v29 = vld [vmem:[%s7575_s30 + $0x1f0] sm:$0xff]  }
  0x97   : > { %4488 = vmatprep.mubr.bf16.mxu0 %v7188_v6  ;;  %4634 = vmatprep.subr.bf16.mxu0 %v7516_v16  ;;  %v6399_v1 = vpack.c.bf16 %v467_v59, %v467_v59  ;;  %v1359_v6 = vld [vmem:[#allocation2 + $0x88] sm:$0xff]  ;;  %v1362_v49 = vld [vmem:[#allocation2 + $0xa0] sm:$0xff]  ;;  %657 = vst [vmem:[#allocation3 + $0x2ac] sm:$0xf] %v6403_v46  ;;  %v6588_v59 = vpack.c.bf16 %v1586_v56, %v1586_v56  ;;  %1992 = vst [vmem:[#allocation3 + $0x258] sm:$0xf] %v6403_v46 }
  0x98   : > { %4265 = vmatpush1.bf16.msra.mxu1 %v7192_v8  ;;  %1543 = vst [vmem:[#allocation3 + $0x1e4] sm:$0xf] %v6545_v54  ;;  %1765 = vst [vmem:[#allocation3 + $0x1c4] sm:$0xf] %v6581_v55  ;;  %v6546_v8 = vpack.c.bf16 %v1358_v5, %v1358_v5  ;;  %v7222_v34 = vld [vmem:[#allocation3 + $0x17c] ss:$36 sps:$4 sm:$0xff]   ;;  %v6550_v54 = vpack.c.bf16 %v1362_v49, %v1362_v49 }
  0x99   : > { %4266 = vmatprep.subr.bf16.mxu1 %v7516_v16  ;;  %653 = vst [vmem:[#allocation3 + $0x21c] sm:$0xf] %v6399_v1  ;;  %1988 = vst [vmem:[#allocation3 + $0x1c8] sm:$0xf] %v6399_v1  ;;  %v1585_v55 = vld [vmem:[#allocation2 + $0xa1] sm:$0xff]  ;;  %v7242_v1 = vld [vmem:[%s7575_s30 + $0x1d8] sm:$0xff]  }
  0x9a   : > { %4635 = vmatpush1.bf16.msra.mxu0 %v7185_v9  ;;  %v6547_v9 = vpack.c.bf16 %v1359_v6, %v1359_v6  ;;  %1544 = vst [vmem:[#allocation3 + $0x208] sm:$0xf] %v6546_v8  ;;  %v6587_v58 = vpack.c.bf16 %v1585_v55, %v1585_v55  ;;  %879 = vst [vmem:[#allocation3 + $0x28c] sm:$0xf] %v6439_v51  ;;  %v696_v5 = vld [vmem:[#allocation2 + $0xac] sm:$0xff]  ;;  %v701_v43 = vld [vmem:[#allocation2 + $0xd4] sm:$0xff] }
  0x9b   : > { %4636 = vmatprep.subr.bf16.mxu0 %v7516_v16  ;;  %v7228_v60 = vld [vmem:[#allocation3 + $0x1b4] ss:$36 sps:$4 sm:$0xff]   ;;  %1548 = vst [vmem:[#allocation3 + $0x298] sm:$0xf] %v6550_v54  ;;  %2214 = vst [vmem:[#allocation3 + $0x238] sm:$0xf] %v6439_v51  ;;  %v6447_v46 = vpack.c.bf16 %v701_v43, %v701_v43 }
  0x9c   : > { %4267 = vmatpush1.bf16.msra.mxu1 %v7201_v11  ;;  %v6583_v11 = vpack.c.bf16 %v1581_v7, %v1581_v7  ;;  %1545 = vst [vmem:[#allocation3 + $0x22c] sm:$0xf] %v6547_v9  ;;  %1771 = vst [vmem:[#allocation3 + $0x29c] sm:$0xf] %v6587_v58  ;;  %v7233_v6 = vld [vmem:[#allocation3 + $0x1b0] ss:$36 sps:$4 sm:$0xff]   ;;  %v6405_v7 = vpack.c.bf16 %v473_v3, %v473_v3  ;;  %v6442_v9 = vpack.c.bf16 %v696_v5, %v696_v5 }
  0x9d   : > { %4121 = vmatmul.mubr.bf16.gmra.mrb[4].mxu1 %v7190_v10  ;;  %4268 = vmatprep.subr.bf16.mxu1 %v7516_v16  ;;  %v1582_v10 = vld [vmem:[#allocation2 + $0x89] sm:$0xff]  ;;  %1772 = vst [vmem:[#allocation3 + $0x2c0] sm:$0xf] %v6588_v59  ;;  %887 = vst [vmem:[#allocation3 + $0x3ac] sm:$0xf] %v6447_v46  ;;  %v7517_v54 = vmov 0.0  }
  0x9e   : > { %4489 = vmatmul.mubr.bf16.gmra.mrb[4].mxu0 %v7191_v12  ;;  %4128 = vmatprep.mubr.bf16.mxu1 %v7194_v24  ;;  %v7211_v12 = vld [vmem:[#allocation3 + $0x124] ss:$36 sps:$4 sm:$0xff]   ;;  %v6584_v13 = vpack.c.bf16 %v1582_v10, %v1582_v10  ;;  %1767 = vst [vmem:[#allocation3 + $0x20c] sm:$0xf] %v6583_v11  ;;  %v6400_v24 = vpack.c.bf16 %v468_v20, %v468_v20  ;;  %v7236_v11 = vld [vmem:[#allocation3 + $0x1fc] ss:$36 sps:$4 sm:$0xff]  }
  0x9f   : > { %4637 = vmatpush1.bf16.msra.mxu0 %v7193_v17  ;;  %4496 = vmatprep.mubr.bf16.mxu0 %v7196_v28  ;;  %v7243_v17 = vld [vmem:[%s7575_s30 + $0xa8] sm:$0xff]   ;;  %659 = vst [vmem:[#allocation3 + $0x2f4] sm:$0xf] %v6405_v7  ;;  %882 = vst [vmem:[#allocation3 + $0x2f8] sm:$0xf] %v6442_v9  ;;  %v483_v5 = vld [vmem:[#allocation2 + $0xfb] sm:$0xff] }
  0xa0   : > { %4638 = vmatprep.subr.bf16.mxu0 %v7516_v16  ;;  %4269 = vmatpush1.bf16.msra.mxu1 %v7210_v30  ;;  %1768 = vst [vmem:[#allocation3 + $0x230] sm:$0xf] %v6584_v13  ;;  %v692_v28 = vld [vmem:[#allocation2 + $0x8c] sm:$0xff]  ;;  %654 = vst [vmem:[#allocation3 + $0x240] sm:$0xf] %v6400_v24  ;;  %v7244_v13 = vld [vmem:[%s7575_s30 + $0x1e0] sm:$0xff]  }
  0xa1   : > { %4270 = vmatprep.subr.bf16.mxu1 %v7516_v16  ;;  %v6438_v30 = vpack.c.bf16 %v692_v28, %v692_v28  ;;  %1989 = vst [vmem:[#allocation3 + $0x1ec] sm:$0xf] %v6400_v24  ;;  %v7231_v61 = vld [vmem:[#allocation3 + $0x1c4] ss:$36 sps:$4 sm:$0xff]   ;;  %1994 = vst [vmem:[#allocation3 + $0x2a0] sm:$0xf] %v6405_v7  ;;  %v6415_v7 = vpack.c.bf16 %v483_v5, %v483_v5 }
  0xa2   : > { %v7234_v10 = vld [vmem:[#allocation3 + $0x1c0] ss:$36 sps:$4 sm:$0xff]   ;;  %2217 = vst [vmem:[#allocation3 + $0x2a4] sm:$0xf] %v6442_v9  ;;  %v7240_v24 = vld [vmem:[#allocation3 + $0x1f8] ss:$36 sps:$4 sm:$0xff]  }
  0xa3   : > { %4639 = vmatpush1.bf16.msra.mxu0 %v7200_v33  ;;  %v1583_v33 = vld [vmem:[#allocation2 + $0x91] sm:$0xff]  ;;  %878 = vst [vmem:[#allocation3 + $0x268] sm:$0xf] %v6438_v30  ;;  %2213 = vst [vmem:[#allocation3 + $0x214] sm:$0xf] %v6438_v30 }
  0xa4   : > { %4640 = vmatprep.subr.bf16.mxu0 %v7516_v16  ;;  %4271 = vmatpush1.bf16.msra.mxu1 %v7219_v36  ;;  %v6549_v36 = vpack.c.bf16 %v1361_v31, %v1361_v31  ;;  %v6585_v37 = vpack.c.bf16 %v1583_v33, %v1583_v33  ;;  %v7241_v25 = vld [vmem:[#allocation3 + $0x208] ss:$36 sps:$4 sm:$0xff]   ;;  %v699_v33 = vld [vmem:[#allocation2 + $0xc4] sm:$0xff]  ;;  %2222 = vst [vmem:[#allocation3 + $0x358] sm:$0xf] %v6447_v46  ;;  %v7319_v46 = vld [vmem:[%s7575_s30 + $0x218] sm:$0xff]  }
  0xa5   : > { %4129 = vmatmul.mubr.bf16.gmra.mrb[8].mxu1 %v7198_v35  ;;  %4272 = vmatprep.subr.bf16.mxu1 %v7516_v16  ;;  %v7226_v35 = vld [vmem:[%s7575_s30 + $0x1c0] sm:$0xff]   ;;  %v481_v55 = vld [vmem:[#allocation2 + $0xeb] sm:$0xff]  ;;  %669 = vst [vmem:[#allocation3 + $0x45c] sm:$0xf] %v6415_v7  ;;  %2004 = vst [vmem:[#allocation3 + $0x408] sm:$0xf] %v6415_v7 }
  0xa6   : > { %4497 = vmatmul.mubr.bf16.gmra.mrb[8].mxu0 %v7199_v39  ;;  %4136 = vmatprep.mubr.bf16.mxu1 %v7203_v45  ;;  %1547 = vst [vmem:[#allocation3 + $0x274] sm:$0xf] %v6549_v36  ;;  %v6586_v39 = vpack.c.bf16 %v1584_v38, %v1584_v38  ;;  %1769 = vst [vmem:[#allocation3 + $0x254] sm:$0xf] %v6585_v37  ;;  %v6402_v45 = vpack.c.bf16 %v470_v42, %v470_v42  ;;  %v7278_v38 = vld [vmem:[%s7575_s30 + $0xc8] sm:$0xff]   ;;  %v7302_v43 = vld [vmem:[%s7575_s30 + $0x210] sm:$0xff]  }
  0xa7   : > { %4641 = vmatpush1.bf16.msra.mxu0 %v7202_v44  ;;  %4504 = vmatprep.mubr.bf16.mxu0 %v7205_v52  ;;  %v7224_v44 = vld [vmem:[#allocation3 + $0x168] ss:$36 sps:$4 sm:$0xff]   ;;  %v6440_v52 = vpack.c.bf16 %v694_v48, %v694_v48  ;;  %v6445_v36 = vpack.c.bf16 %v699_v33, %v699_v33  ;;  %v7249_v48 = vld [vmem:[#allocation3 + $0x240] ss:$36 sps:$4 sm:$0xff]   ;;  %v6413_v58 = vpack.c.bf16 %v481_v55, %v481_v55  ;;  %v710_v33 = vld [vmem:[#allocation2 + $0x11c] sm:$0xff] }
  0xa8   : > { %4642 = vmatprep.subr.bf16.mxu0 %v7516_v16  ;;  %4273 = vmatpush1.bf16.msra.mxu1 %v7230_v53  ;;  %1770 = vst [vmem:[#allocation3 + $0x278] sm:$0xf] %v6586_v39  ;;  %v1363_v53 = vld [vmem:[#allocation2 + $0xa8] sm:$0xff]  ;;  %656 = vst [vmem:[#allocation3 + $0x288] sm:$0xf] %v6402_v45  ;;  %v7261_v39 = vld [vmem:[%s7575_s30 + $0x1f8] sm:$0xff]  }
  0xa9   : > { %4274 = vmatprep.subr.bf16.mxu1 %v7516_v16  ;;  %v6551_v57 = vpack.c.bf16 %v1363_v53, %v1363_v53  ;;  %1991 = vst [vmem:[#allocation3 + $0x234] sm:$0xf] %v6402_v45  ;;  %880 = vst [vmem:[#allocation3 + $0x2b0] sm:$0xf] %v6440_v52  ;;  %v7255_v51 = vld [vmem:[#allocation3 + $0x29c] ss:$36 sps:$4 sm:$0xff]  }
  0xaa   : > { %2215 = vst [vmem:[#allocation3 + $0x25c] sm:$0xf] %v6440_v52  ;;  %v7245_v28 = vld [vmem:[#allocation3 + $0x244] ss:$36 sps:$4 sm:$0xff]   ;;  %885 = vst [vmem:[#allocation3 + $0x364] sm:$0xf] %v6445_v36 }
  0xab   : > { %4643 = vmatpush1.bf16.msra.mxu0 %v7209_v0  ;;  %1549 = vst [vmem:[#allocation3 + $0x2bc] sm:$0xf] %v6551_v57  ;;  %v472_v0 = vld [vmem:[#allocation2 + $0xa3] sm:$0xff]  ;;  %2220 = vst [vmem:[#allocation3 + $0x310] sm:$0xf] %v6445_v36  ;;  %v7289_v52 = vld [vmem:[%s7575_s30 + $0xd0] sm:$0xff]   ;;  %v6456_v36 = vpack.c.bf16 %v710_v33, %v710_v33 }
  0xac   : > { %4644 = vmatprep.subr.bf16.mxu0 %v7516_v16  ;;  %4275 = vmatpush1.bf16.msra.mxu1 %v7243_v17  ;;  %v6404_v2 = vpack.c.bf16 %v472_v0, %v472_v0  ;;  %v474_v17 = vld [vmem:[#allocation2 + $0xb3] sm:$0xff]  ;;  %v480_v53 = vld [vmem:[#allocation2 + $0xe3] sm:$0xff]  ;;  %667 = vst [vmem:[#allocation3 + $0x414] sm:$0xf] %v6413_v58  ;;  %2002 = vst [vmem:[#allocation3 + $0x3c0] sm:$0xf] %v6413_v58 }
  0xad   : > { %4137 = vmatmul.mubr.bf16.gmra.mrb[12].mxu1 %v7207_v63  ;;  %4276 = vmatprep.subr.bf16.mxu1 %v7516_v16  ;;  %v7260_v63 = vld [vmem:[%s7575_s30 + $0xb8] sm:$0xff]   ;;  %v6406_v20 = vpack.c.bf16 %v474_v17, %v474_v17  ;;  %v6412_v56 = vpack.c.bf16 %v480_v53, %v480_v53  ;;  %v703_v57 = vld [vmem:[#allocation2 + $0xe4] sm:$0xff]  ;;  %v708_v22 = vld [vmem:[#allocation2 + $0x10c] sm:$0xff]  ;;  %896 = vst [vmem:[#allocation3 + $0x4f0] sm:$0xf] %v6456_v36 }
  0xae   : > { %4505 = vmatmul.mubr.bf16.gmra.mrb[12].mxu0 %v7208_v4  ;;  %4144 = vmatprep.mubr.bf16.mxu1 %v7211_v12  ;;  %v695_v4 = vld [vmem:[#allocation2 + $0xa4] sm:$0xff]  ;;  %658 = vst [vmem:[#allocation3 + $0x2d0] sm:$0xf] %v6404_v2  ;;  %1993 = vst [vmem:[#allocation3 + $0x27c] sm:$0xf] %v6404_v2  ;;  %v6449_v59 = vpack.c.bf16 %v703_v57, %v703_v57  ;;  %v7297_v0 = vld [vmem:[%s7575_s30 + $0xd8] sm:$0xff]  }
  0xaf   : > { %4512 = vmatprep.mubr.bf16.mxu0 %v7213_v14  ;;  %4645 = vmatpush1.bf16.msra.mxu0 %v7215_v15  ;;  %v6441_v8 = vpack.c.bf16 %v695_v4, %v695_v4  ;;  %v7238_v12 = vld [vmem:[#allocation3 + $0x20c] ss:$36 sps:$4 sm:$0xff]   ;;  %v7252_v14 = vld [vmem:[%s7575_s30 + $0x1e8] sm:$0xff]   ;;  %v7269_v15 = vld [vmem:[%s7575_s30 + $0xc0] sm:$0xff]   ;;  %660 = vst [vmem:[#allocation3 + $0x318] sm:$0xf] %v6406_v20 }
  0xb0   : > { %4646 = vmatprep.subr.bf16.mxu0 %v7516_v16  ;;  %4277 = vmatpush1.bf16.msra.mxu1 %v7251_v40  ;;  %1995 = vst [vmem:[#allocation3 + $0x2c4] sm:$0xf] %v6406_v20  ;;  %v7247_v31 = vld [vmem:[#allocation3 + $0x254] ss:$36 sps:$4 sm:$0xff]   ;;  %v478_v40 = vld [vmem:[#allocation2 + $0xd3] sm:$0xff] }
  0xb1   : > { %4278 = vmatprep.subr.bf16.mxu1 %v7516_v16  ;;  %881 = vst [vmem:[#allocation3 + $0x2d4] sm:$0xf] %v6441_v8  ;;  %2216 = vst [vmem:[#allocation3 + $0x280] sm:$0xf] %v6441_v8  ;;  %v6410_v42 = vpack.c.bf16 %v478_v40, %v478_v40  ;;  %v7250_v49 = vld [vmem:[#allocation3 + $0x250] ss:$36 sps:$4 sm:$0xff]  }
  0xb2   : > { %666 = vst [vmem:[#allocation3 + $0x3f0] sm:$0xf] %v6412_v56  ;;  %2001 = vst [vmem:[#allocation3 + $0x39c] sm:$0xf] %v6412_v56  ;;  %v7266_v2 = vld [vmem:[#allocation3 + $0x1c] ss:$36 sps:$4 sm:$0xff]  }
  0xb3   : > { %4647 = vmatpush1.bf16.msra.mxu0 %v7218_v18  ;;  %v475_v18 = vld [vmem:[#allocation2 + $0xbb] sm:$0xff]  ;;  %664 = vst [vmem:[#allocation3 + $0x3a8] sm:$0xf] %v6410_v42  ;;  %1999 = vst [vmem:[#allocation3 + $0x354] sm:$0xf] %v6410_v42  ;;  %v488_v40 = vld [vmem:[#allocation2 + $0x123] sm:$0xff] }
  0xb4   : > { %4648 = vmatprep.subr.bf16.mxu0 %v7516_v16  ;;  %4279 = vmatpush1.bf16.msra.mxu1 %v7260_v63  ;;  %v6407_v21 = vpack.c.bf16 %v475_v18, %v475_v18  ;;  %889 = vst [vmem:[#allocation3 + $0x3f4] sm:$0xf] %v6449_v59  ;;  %2224 = vst [vmem:[#allocation3 + $0x3a0] sm:$0xf] %v6449_v59  ;;  %v7259_v63 = vld [vmem:[#allocation3 + $0x298] ss:$36 sps:$4 sm:$0xff]  }
  0xb5   : > { %4145 = vmatmul.mubr.bf16.gmra.mrb[16].mxu1 %v7216_v19  ;;  %4280 = vmatprep.subr.bf16.mxu1 %v7516_v16  ;;  %v697_v19 = vld [vmem:[#allocation2 + $0xb4] sm:$0xff]  ;;  %v706_v8 = vld [vmem:[#allocation2 + $0xfc] sm:$0xff]  ;;  %2231 = vst [vmem:[#allocation3 + $0x49c] sm:$0xf] %v6456_v36 }
  0xb6   : > { %4513 = vmatmul.mubr.bf16.gmra.mrb[16].mxu0 %v7217_v23  ;;  %4152 = vmatprep.mubr.bf16.mxu1 %v7220_v27  ;;  %v6443_v23 = vpack.c.bf16 %v697_v19, %v697_v19  ;;  %v476_v27 = vld [vmem:[#allocation2 + $0xc3] sm:$0xff]  ;;  %661 = vst [vmem:[#allocation3 + $0x33c] sm:$0xf] %v6407_v21  ;;  %1996 = vst [vmem:[#allocation3 + $0x2e8] sm:$0xf] %v6407_v21  ;;  %v1122_v53 = vld [vmem:[#allocation2 + $0x17] sm:$0xff] }
  0xb7   : > { %4520 = vmatprep.mubr.bf16.mxu0 %v7222_v34  ;;  %4649 = vmatpush1.bf16.msra.mxu0 %v7226_v35  ;;  %v6408_v30 = vpack.c.bf16 %v476_v27, %v476_v27  ;;  %v6409_v34 = vpack.c.bf16 %v477_v32, %v477_v32  ;;  %v700_v35 = vld [vmem:[#allocation2 + $0xcc] sm:$0xff]  ;;  %v7267_v17 = vld [vmem:[#allocation3 + $0x2d0] ss:$36 sps:$4 sm:$0xff]   ;;  %v7268_v21 = vld [vmem:[%s7575_s30 + $0x200] sm:$0xff]   ;;  %v6496_v57 = vpack.c.bf16 %v1122_v53, %v1122_v53 }
  0xb8   : > { %4650 = vmatprep.subr.bf16.mxu0 %v7516_v16  ;;  %4281 = vmatpush1.bf16.msra.mxu1 %v7269_v15  ;;  %883 = vst [vmem:[#allocation3 + $0x31c] sm:$0xf] %v6443_v23  ;;  %2218 = vst [vmem:[#allocation3 + $0x2c8] sm:$0xf] %v6443_v23  ;;  %v6446_v37 = vpack.c.bf16 %v700_v35, %v700_v35  ;;  %v7262_v4 = vld [vmem:[#allocation3 + $0x2d4] ss:$36 sps:$4 sm:$0xff]  }
  0xb9   : > { %4282 = vmatprep.subr.bf16.mxu1 %v7516_v16  ;;  %662 = vst [vmem:[#allocation3 + $0x360] sm:$0xf] %v6408_v30  ;;  %1997 = vst [vmem:[#allocation3 + $0x30c] sm:$0xf] %v6408_v30  ;;  %v7264_v15 = vld [vmem:[#allocation3 + $0x18] ss:$36 sps:$4 sm:$0xff]  }
  0xba   : > { %663 = vst [vmem:[#allocation3 + $0x384] sm:$0xf] %v6409_v34  ;;  %1998 = vst [vmem:[#allocation3 + $0x330] sm:$0xf] %v6409_v34  ;;  %v486_v27 = vld [vmem:[#allocation2 + $0x113] sm:$0xff]  ;;  %v7283_v35 = vld [vmem:[%s7575_s30 + $0x208] sm:$0xff]  }
  0xbb   : > { %4651 = vmatpush1.bf16.msra.mxu0 %v7227_v41  ;;  %886 = vst [vmem:[#allocation3 + $0x388] sm:$0xf] %v6446_v37  ;;  %2221 = vst [vmem:[#allocation3 + $0x334] sm:$0xf] %v6446_v37  ;;  %v479_v41 = vld [vmem:[#allocation2 + $0xdb] sm:$0xff]  ;;  %v903_v7 = vld [vmem:[#allocation2 + $0x2d] sm:$0xff] }
  0xbc   : > { %4652 = vmatprep.subr.bf16.mxu0 %v7516_v16  ;;  %4283 = vmatpush1.bf16.msra.mxu1 %v7278_v38  ;;  %v6411_v45 = vpack.c.bf16 %v479_v41, %v479_v41  ;;  %v709_v30 = vld [vmem:[#allocation2 + $0x114] sm:$0xff]  ;;  %v7275_v37 = vld [vmem:[#allocation3 + $0x60] ss:$36 sps:$4 sm:$0xff]   ;;  %1308 = vst [vmem:[#allocation3 + $0x30] sm:$0xf] %v6496_v57 }
  0xbd   : > { %4153 = vmatmul.mubr.bf16.gmra.mrb[20].mxu1 %v7224_v44  ;;  %v702_v44 = vld [vmem:[#allocation2 + $0xdc] sm:$0xff]  ;;  %4284 = vmatprep.subr.bf16.mxu1 %v7516_v16  ;;  %v6455_v32 = vpack.c.bf16 %v709_v30, %v709_v30  ;;  %v711_v41 = vld [vmem:[#allocation2 + $0x124] sm:$0xff]  ;;  %v7279_v42 = vld [vmem:[#allocation3 + $0xac] ss:$36 sps:$4 sm:$0xff]  }
  0xbe   : > { %4521 = vmatmul.mubr.bf16.gmra.mrb[20].mxu0 %v7225_v50  ;;  %4160 = vmatprep.mubr.bf16.mxu1 %v7228_v60  ;;  %v6448_v47 = vpack.c.bf16 %v702_v44, %v702_v44  ;;  %v7253_v50 = vld [vmem:[#allocation3 + $0x28c] ss:$36 sps:$4 sm:$0xff]   ;;  %665 = vst [vmem:[#allocation3 + $0x3cc] sm:$0xf] %v6411_v45  ;;  %2000 = vst [vmem:[#allocation3 + $0x378] sm:$0xf] %v6411_v45  ;;  %v6420_v44 = vpack.c.bf16 %v488_v40, %v488_v40 }
  0xbf   : > { %4528 = vmatprep.mubr.bf16.mxu0 %v7231_v61  ;;  %4653 = vmatpush1.bf16.msra.mxu0 %v7235_v62  ;;  %v704_v60 = vld [vmem:[#allocation2 + $0xec] sm:$0xff]  ;;  %v7270_v23 = vld [vmem:[#allocation3 + $0x31c] ss:$36 sps:$4 sm:$0xff]   ;;  %895 = vst [vmem:[#allocation3 + $0x4cc] sm:$0xf] %v6455_v32  ;;  %v6457_v45 = vpack.c.bf16 %v711_v41, %v711_v41  ;;  %v1130_v33 = vld [vmem:[#allocation2 + $0x57] sm:$0xff] }
  0xc0   : > { %4654 = vmatprep.subr.bf16.mxu0 %v7516_v16  ;;  %888 = vst [vmem:[#allocation3 + $0x3d0] sm:$0xf] %v6448_v47  ;;  %2223 = vst [vmem:[#allocation3 + $0x37c] sm:$0xf] %v6448_v47  ;;  %v7258_v61 = vld [vmem:[#allocation3 + $0x288] ss:$36 sps:$4 sm:$0xff]   ;;  %4285 = vmatpush1.bf16.msra.mxu1 %v7289_v52  ;;  %v6450_v62 = vpack.c.bf16 %v704_v60, %v704_v60 }
  0xc1   : > { %4286 = vmatprep.subr.bf16.mxu1 %v7516_v16  ;;  %v7274_v34 = vld [vmem:[#allocation3 + $0x318] ss:$36 sps:$4 sm:$0xff]   ;;  %2230 = vst [vmem:[#allocation3 + $0x478] sm:$0xf] %v6455_v32  ;;  %674 = vst [vmem:[#allocation3 + $0x510] sm:$0xf] %v6420_v44 }
  0xc2   : > { %890 = vst [vmem:[#allocation3 + $0x418] sm:$0xf] %v6450_v62  ;;  %2225 = vst [vmem:[#allocation3 + $0x3c4] sm:$0xf] %v6450_v62  ;;  %v7276_v38 = vld [vmem:[#allocation3 + $0x364] ss:$36 sps:$4 sm:$0xff]  }
  0xc3   : > { %4655 = vmatpush1.bf16.msra.mxu0 %v7242_v1  ;;  %v482_v1 = vld [vmem:[#allocation2 + $0xf3] sm:$0xff]  ;;  %897 = vst [vmem:[#allocation3 + $0x514] sm:$0xf] %v6457_v45  ;;  %2009 = vst [vmem:[#allocation3 + $0x4bc] sm:$0xf] %v6420_v44  ;;  %v909_v41 = vld [vmem:[#allocation2 + $0x5d] sm:$0xff] }
  0xc4   : > { %4656 = vmatprep.subr.bf16.mxu0 %v7516_v16  ;;  %v6414_v3 = vpack.c.bf16 %v482_v1, %v482_v1  ;;  %4287 = vmatpush1.bf16.msra.mxu1 %v7297_v0  ;;  %v7326_v47 = vld [vmem:[%s7575_s30 + $0xf8] sm:$0xff]   ;;  %2232 = vst [vmem:[#allocation3 + $0x4c0] sm:$0xf] %v6457_v45  ;;  %v1121_v52 = vld [vmem:[#allocation2 + $0xf] sm:$0xff]  ;;  %v7296_v36 = vld [vmem:[#allocation3 + $0x138] ss:$36 sps:$4 sm:$0xff]   ;;  %v6469_v44 = vpack.c.bf16 %v909_v41, %v909_v41 }
  0xc5   : > { %4161 = vmatmul.mubr.bf16.gmra.mrb[24].mxu1 %v7233_v6  ;;  %v705_v6 = vld [vmem:[#allocation2 + $0xf4] sm:$0xff]  ;;  %4288 = vmatprep.subr.bf16.mxu1 %v7516_v16  ;;  %v6495_v56 = vpack.c.bf16 %v1121_v52, %v1121_v52  ;;  %v7281_v58 = vld [vmem:[#allocation3 + $0x360] ss:$36 sps:$4 sm:$0xff]   ;;  %v7286_v60 = vld [vmem:[#allocation3 + $0xf4] ss:$36 sps:$4 sm:$0xff]  }
  0xc6   : > { %4529 = vmatmul.mubr.bf16.gmra.mrb[24].mxu0 %v7234_v10  ;;  %4168 = vmatprep.mubr.bf16.mxu1 %v7236_v11  ;;  %668 = vst [vmem:[#allocation3 + $0x438] sm:$0xf] %v6414_v3  ;;  %v6451_v9 = vpack.c.bf16 %v705_v6, %v705_v6  ;;  %2003 = vst [vmem:[#allocation3 + $0x3e4] sm:$0xf] %v6414_v3  ;;  %v6452_v10 = vpack.c.bf16 %v706_v8, %v706_v8  ;;  %v7305_v11 = vld [vmem:[%s7575_s30 + $0xe0] sm:$0xff]   ;;  %v900_v62 = vld [vmem:[#allocation2 + $0x15] sm:$0xff] }
  0xc7   : > { %4536 = vmatprep.mubr.bf16.mxu0 %v7238_v12  ;;  %4657 = vmatpush1.bf16.msra.mxu0 %v7244_v13  ;;  %v484_v12 = vld [vmem:[#allocation2 + $0x103] sm:$0xff]  ;;  %v485_v13 = vld [vmem:[#allocation2 + $0x10b] sm:$0xff]  ;;  %v7284_v59 = vld [vmem:[#allocation3 + $0x3ac] ss:$36 sps:$4 sm:$0xff]   ;;  %1307 = vst [vmem:[#allocation3 + $0xc] sm:$0xf] %v6495_v56  ;;  %v6460_v1 = vpack.c.bf16 %v900_v62, %v900_v62 }
  0xc8   : > { %4658 = vmatprep.subr.bf16.mxu0 %v7516_v16  ;;  %891 = vst [vmem:[#allocation3 + $0x43c] sm:$0xf] %v6451_v9  ;;  %2226 = vst [vmem:[#allocation3 + $0x3e8] sm:$0xf] %v6451_v9  ;;  %4289 = vmatpush1.bf16.msra.mxu1 %v7305_v11  ;;  %v6416_v18 = vpack.c.bf16 %v484_v12, %v484_v12  ;;  %v6417_v19 = vpack.c.bf16 %v485_v13, %v485_v13  ;;  %v7282_v55 = vld [vmem:[#allocation3 + $0xa8] ss:$36 sps:$4 sm:$0xff]  }
  0xc9   : > { %892 = vst [vmem:[#allocation3 + $0x460] sm:$0xf] %v6452_v10  ;;  %2227 = vst [vmem:[#allocation3 + $0x40c] sm:$0xf] %v6452_v10  ;;  %4290 = vmatprep.subr.bf16.mxu1 %v7516_v16  ;;  %v1123_v0 = vld [vmem:[#allocation2 + $0x1f] sm:$0xff]  ;;  %v1124_v3 = vld [vmem:[#allocation2 + $0x27] sm:$0xff]  ;;  %v6463_v10 = vpack.c.bf16 %v903_v7, %v903_v7 }
  0xca   : > { %670 = vst [vmem:[#allocation3 + $0x480] sm:$0xf] %v6416_v18  ;;  %671 = vst [vmem:[#allocation3 + $0x4a4] sm:$0xf] %v6417_v19  ;;  %v6498_v5 = vpack.c.bf16 %v1124_v3, %v1124_v3  ;;  %v902_v6 = vld [vmem:[#allocation2 + $0x25] sm:$0xff]  ;;  %v1125_v8 = vld [vmem:[#allocation2 + $0x2f] sm:$0xff] }
  0xcb   : > { %4659 = vmatpush1.bf16.msra.mxu0 %v7252_v14  ;;  %v707_v14 = vld [vmem:[#allocation2 + $0x104] sm:$0xff]  ;;  %2005 = vst [vmem:[#allocation3 + $0x42c] sm:$0xf] %v6416_v18  ;;  %2006 = vst [vmem:[#allocation3 + $0x450] sm:$0xf] %v6417_v19  ;;  %v6462_v9 = vpack.c.bf16 %v902_v6, %v902_v6  ;;  %v1126_v11 = vld [vmem:[#allocation2 + $0x37] sm:$0xff]  ;;  %v6499_v12 = vpack.c.bf16 %v1125_v8, %v1125_v8 }
  0xcc   : > { %4660 = vmatprep.subr.bf16.mxu0 %v7516_v16  ;;  %v6453_v20 = vpack.c.bf16 %v707_v14, %v707_v14  ;;  %4291 = vmatpush1.bf16.msra.mxu1 %v7312_v26  ;;  %1086 = vst [vmem:[#allocation3 + $0x50] sm:$0xf] %v6460_v1  ;;  %1310 = vst [vmem:[#allocation3 + $0x78] sm:$0xf] %v6498_v5  ;;  %v7290_v13 = vld [vmem:[#allocation3 + $0xf0] ss:$36 sps:$4 sm:$0xff]   ;;  %v6500_v14 = vpack.c.bf16 %v1126_v11, %v1126_v11 }
  0xcd   : > { %4169 = vmatmul.mubr.bf16.gmra.mrb[28].mxu1 %v7240_v24  ;;  %v7272_v24 = vld [vmem:[#allocation3 + $0x64] ss:$36 sps:$4 sm:$0xff]   ;;  %4292 = vmatprep.subr.bf16.mxu1 %v7516_v16  ;;  %v7293_v18 = vld [vmem:[#allocation3 + $0x13c] ss:$36 sps:$4 sm:$0xff]   ;;  %1088 = vst [vmem:[#allocation3 + $0x98] sm:$0xf] %v6462_v9 }
  0xce   : > { %4537 = vmatmul.mubr.bf16.gmra.mrb[28].mxu0 %v7241_v25  ;;  %4176 = vmatprep.mubr.bf16.mxu1 %v7245_v28  ;;  %v6454_v25 = vpack.c.bf16 %v708_v22, %v708_v22  ;;  %893 = vst [vmem:[#allocation3 + $0x484] sm:$0xf] %v6453_v20  ;;  %2228 = vst [vmem:[#allocation3 + $0x430] sm:$0xf] %v6453_v20  ;;  %v487_v28 = vld [vmem:[#allocation2 + $0x11b] sm:$0xff]  ;;  %v1129_v30 = vld [vmem:[#allocation2 + $0x4f] sm:$0xff] }
  0xcf   : > { %4544 = vmatprep.mubr.bf16.mxu0 %v7247_v31  ;;  %4661 = vmatpush1.bf16.msra.mxu0 %v7257_v29  ;;  %v6418_v29 = vpack.c.bf16 %v486_v27, %v486_v27  ;;  %v6419_v31 = vpack.c.bf16 %v487_v28, %v487_v28  ;;  %1089 = vst [vmem:[#allocation3 + $0xbc] sm:$0xf] %v6463_v10  ;;  %1311 = vst [vmem:[#allocation3 + $0x9c] sm:$0xf] %v6499_v12  ;;  %v7291_v20 = vld [vmem:[#allocation3 + $0x3f4] ss:$36 sps:$4 sm:$0xff]  }
  0xd0   : > { %4662 = vmatprep.subr.bf16.mxu0 %v7516_v16  ;;  %894 = vst [vmem:[#allocation3 + $0x4a8] sm:$0xf] %v6454_v25  ;;  %2229 = vst [vmem:[#allocation3 + $0x454] sm:$0xf] %v6454_v25  ;;  %v1127_v22 = vld [vmem:[#allocation2 + $0x3f] sm:$0xff]  ;;  %v7352_v27 = vld [vmem:[%s7575_s30 + $0x228] sm:$0xff]  }
  0xd1   : > { %672 = vst [vmem:[#allocation3 + $0x4c8] sm:$0xf] %v6418_v29  ;;  %2007 = vst [vmem:[#allocation3 + $0x474] sm:$0xf] %v6418_v29  ;;  %v6501_v25 = vpack.c.bf16 %v1127_v22, %v1127_v22  ;;  %v906_v28 = vld [vmem:[#allocation2 + $0x45] sm:$0xff]  ;;  %v907_v29 = vld [vmem:[#allocation2 + $0x4d] sm:$0xff] }
  0xd2   : > { %673 = vst [vmem:[#allocation3 + $0x4ec] sm:$0xf] %v6419_v31  ;;  %2008 = vst [vmem:[#allocation3 + $0x498] sm:$0xf] %v6419_v31  ;;  %v6466_v31 = vpack.c.bf16 %v906_v28, %v906_v28  ;;  %v6467_v32 = vpack.c.bf16 %v907_v29, %v907_v29  ;;  %v908_v40 = vld [vmem:[#allocation2 + $0x55] sm:$0xff]  ;;  %v1132_v45 = vld [vmem:[#allocation2 + $0x67] sm:$0xff] }
  0xd3   : > { %4663 = vmatpush1.bf16.msra.mxu0 %v7261_v39  ;;  %v7320_v39 = vld [vmem:[%s7575_s30 + $0xf0] sm:$0xff]   ;;  %2423 = vst [vmem:[#allocation3 + $0x44] sm:$0xf] %v6462_v9  ;;  %2424 = vst [vmem:[#allocation3 + $0x68] sm:$0xf] %v6463_v10  ;;  %v1136_v3 = vld [vmem:[#allocation2 + $0x87] sm:$0xff] }
  0xd4   : > { %6744 = vmatprep.subr.bf16.mxu0 %v7517_v54  ;;  %4293 = vmatpush1.bf16.msra.mxu1 %v7320_v39  ;;  %1312 = vst [vmem:[#allocation3 + $0xc0] sm:$0xf] %v6500_v14  ;;  %1313 = vst [vmem:[#allocation3 + $0xe4] sm:$0xf] %v6501_v25  ;;  %v7300_v39 = vld [vmem:[#allocation3 + $0x184] ss:$36 sps:$4 sm:$0xff]   ;;  %v6510_v5 = vpack.c.bf16 %v1136_v3, %v1136_v3 }
  0xd5   : > { %4177 = vmatmul.mubr.bf16.gmra.mrb[32].mxu1 %v7249_v48  ;;  %4294 = vmatprep.subr.bf16.mxu1 %v7516_v16  ;;  %v898_v48 = vld [vmem:[#allocation2 + $0x5] sm:$0xff]  ;;  %1092 = vst [vmem:[#allocation3 + $0x128] sm:$0xf] %v6466_v31  ;;  %1093 = vst [vmem:[#allocation3 + $0x14c] sm:$0xf] %v6467_v32  ;;  %v1133_v52 = vld [vmem:[#allocation2 + $0x6f] sm:$0xff] }
  0xd6   : > { %4545 = vmatmul.mubr.bf16.gmra.mrb[32].mxu0 %v7250_v49  ;;  %4184 = vmatprep.mubr.bf16.mxu1 %v7253_v50  ;;  %v899_v49 = vld [vmem:[#allocation2 + $0xd] sm:$0xff]  ;;  %v6458_v50 = vpack.c.bf16 %v898_v48, %v898_v48  ;;  %2427 = vst [vmem:[#allocation3 + $0xd4] sm:$0xf] %v6466_v31  ;;  %2428 = vst [vmem:[#allocation3 + $0xf8] sm:$0xf] %v6467_v32  ;;  %v1134_v56 = vld [vmem:[#allocation2 + $0x77] sm:$0xff]  ;;  %v6507_v57 = vpack.c.bf16 %v1133_v52, %v1133_v52 }
  0xd7   : > { %4552 = vmatprep.mubr.bf16.mxu0 %v7255_v51  ;;  %v6459_v51 = vpack.c.bf16 %v899_v49, %v899_v49  ;;  %1095 = vst [vmem:[#allocation3 + $0x194] sm:$0xf] %v6469_v44  ;;  %2430 = vst [vmem:[#allocation3 + $0x140] sm:$0xf] %v6469_v44  ;;  %v7303_v48 = vld [vmem:[#allocation3 + $0x438] ss:$36 sps:$4 sm:$0xff]  }
  0xd8   : > { %4295 = vmatpush1.bf16.msra.mxu1 %v7326_v47  ;;  %1084 = vst [vmem:[#allocation3 + $0x8] sm:$0xf] %v6458_v50  ;;  %v6506_v47 = vpack.c.bf16 %v1132_v45, %v1132_v45  ;;  %v7365_v49 = vld [vmem:[%s7575_s30 + $0x230] sm:$0xff]   ;;  %v910_v50 = vld [vmem:[#allocation2 + $0x65] sm:$0xff]  ;;  %1319 = vst [vmem:[#allocation3 + $0x1bc] sm:$0xf] %v6507_v57 }
  0xd9   : > { %1085 = vst [vmem:[#allocation3 + $0x2c] sm:$0xf] %v6459_v51  ;;  %6836 = vmatprep.subr.bf16.mxu1 %v7516_v16  ;;  %v911_v51 = vld [vmem:[#allocation2 + $0x6d] sm:$0xff]  ;;  %v6470_v53 = vpack.c.bf16 %v910_v50, %v910_v50  ;;  %v912_v62 = vld [vmem:[#allocation2 + $0x75] sm:$0xff]  ;;  %1322 = vst [vmem:[#allocation3 + $0x228] sm:$0xf] %v6510_v5 }
  0xda   : > { %1318 = vst [vmem:[#allocation3 + $0x198] sm:$0xf] %v6506_v47  ;;  %v6472_v1 = vpack.c.bf16 %v912_v62, %v912_v62  ;;  %v7310_v6 = vld [vmem:[#allocation3 + $0x480] ss:$36 sps:$4 sm:$0xff]   ;;  %v7311_v7 = vld [vmem:[#allocation3 + $0x1c8] ss:$36 sps:$4 sm:$0xff]  }
  0xdb   : > { %1096 = vst [vmem:[#allocation3 + $0x1b8] sm:$0xf] %v6470_v53  ;;  %2431 = vst [vmem:[#allocation3 + $0x164] sm:$0xf] %v6470_v53  ;;  %v7313_v8 = vld [vmem:[#allocation3 + $0x4cc] ss:$36 sps:$4 sm:$0xff]  }
  0xdc   : > { %1098 = vst [vmem:[#allocation3 + $0x200] sm:$0xf] %v6472_v1  ;;  %2433 = vst [vmem:[#allocation3 + $0x1ac] sm:$0xf] %v6472_v1  ;;  %v7378_v9 = vld [vmem:[%s7575_s30 + $0x238] sm:$0xff]   ;;  %v914_v10 = vld [vmem:[#allocation2 + $0x85] sm:$0xff] }
  0xdd   : > { %4185 = vmatmul.mubr.bf16.gmra.mrb[36].mxu1 %v7258_v61  ;;  %v7333_v61 = vld [vmem:[%s7575_s30 + $0x220] sm:$0xff]   ;;  %v915_v11 = vld [vmem:[#allocation2 + $0x8d] sm:$0xff]  ;;  %v916_v28 = vld [vmem:[#allocation2 + $0x95] sm:$0xff] }
  0xde   : > { %4553 = vmatmul.mubr.bf16.gmra.mrb[36].mxu0 %v7259_v63  ;;  %4192 = vmatprep.mubr.bf16.mxu1 %v7262_v4  ;;  %v901_v63 = vld [vmem:[#allocation2 + $0x1d] sm:$0xff]  ;;  %v6497_v4 = vpack.c.bf16 %v1123_v0, %v1123_v0  ;;  %v1137_v12 = vld [vmem:[#allocation2 + $0x8f] sm:$0xff]  ;;  %v6475_v14 = vpack.c.bf16 %v915_v11, %v915_v11  ;;  %v6476_v31 = vpack.c.bf16 %v916_v28, %v916_v28 }
  0xdf   : > { %4664 = vmatprep.mubr.bf16.mxu0 %v7266_v2  ;;  %v6461_v2 = vpack.c.bf16 %v901_v63, %v901_v63  ;;  %v913_v63 = vld [vmem:[#allocation2 + $0x7d] sm:$0xff]  ;;  %v1825_v22 = vld [vmem:[#allocation2 + $0x133] sm:$0xff] }
  0xe0   : > { %1309 = vst [vmem:[#allocation3 + $0x54] sm:$0xf] %v6497_v4  ;;  %v1135_v0 = vld [vmem:[#allocation2 + $0x7f] sm:$0xff]  ;;  %1101 = vst [vmem:[#allocation3 + $0x26c] sm:$0xf] %v6475_v14  ;;  %v6641_v25 = vpack.c.bf16 %v1825_v22, %v1825_v22  ;;  %v1141_v47 = vld [vmem:[#allocation2 + $0xaf] sm:$0xff] }
  0xe1   : > { %1087 = vst [vmem:[#allocation3 + $0x74] sm:$0xf] %v6461_v2  ;;  %2422 = vst [vmem:[#allocation3 + $0x20] sm:$0xf] %v6461_v2  ;;  %v6473_v2 = vpack.c.bf16 %v913_v63, %v913_v63  ;;  %v6509_v4 = vpack.c.bf16 %v1135_v0, %v1135_v0  ;;  %v917_v29 = vld [vmem:[#allocation2 + $0x9d] sm:$0xff]  ;;  %v920_v53 = vld [vmem:[#allocation2 + $0xb5] sm:$0xff] }
  0xe2   : > { %2436 = vst [vmem:[#allocation3 + $0x218] sm:$0xf] %v6475_v14  ;;  %v6477_v32 = vpack.c.bf16 %v917_v29, %v917_v29  ;;  %2011 = vst [vmem:[#allocation3 + $0x504] sm:$0xf] %v6641_v25  ;;  %v2049_v41 = vld [vmem:[#allocation2 + $0x13c] sm:$0xff]  ;;  %v922_v0 = vld [vmem:[#allocation2 + $0xc5] sm:$0xff] }
  0xe3   : > { %1099 = vst [vmem:[#allocation3 + $0x224] sm:$0xf] %v6473_v2  ;;  %1321 = vst [vmem:[#allocation3 + $0x204] sm:$0xf] %v6509_v4  ;;  %v6679_v44 = vpack.c.bf16 %v2049_v41, %v2049_v41  ;;  %v7322_v50 = vld [vmem:[#allocation3 + $0x25c] ss:$36 sps:$4 sm:$0xff]   ;;  %v6482_v4 = vpack.c.bf16 %v922_v0, %v922_v0 }
  0xe4   : > { %2434 = vst [vmem:[#allocation3 + $0x1d0] sm:$0xf] %v6473_v2  ;;  %1102 = vst [vmem:[#allocation3 + $0x290] sm:$0xf] %v6476_v31  ;;  %v1143_v57 = vld [vmem:[#allocation2 + $0xbf] sm:$0xff]  ;;  %v923_v1 = vld [vmem:[#allocation2 + $0xcd] sm:$0xff] }
  0xe5   : > { %4193 = vmatmul.mubr.bf16.gmra.mrb[40].mxu1 %v7267_v17  ;;  %v7288_v17 = vld [vmem:[#allocation3 + $0x3a8] ss:$36 sps:$4 sm:$0xff]   ;;  %1103 = vst [vmem:[#allocation3 + $0x2b4] sm:$0xf] %v6477_v32  ;;  %2437 = vst [vmem:[#allocation3 + $0x23c] sm:$0xf] %v6476_v31  ;;  %v6483_v5 = vpack.c.bf16 %v923_v1, %v923_v1 }
  0xe6   : > { %4665 = vmatmul.mubr.bf16.vlgmr.msra.gmra.mrb[0].mxu0 %v7264_v15  ;;  %4200 = vmatprep.mubr.bf16.mxu1 %v7270_v23  ;;  %v904_v15 = vld [vmem:[#allocation2 + $0x35] sm:$0xff]  ;;  %2438 = vst [vmem:[#allocation3 + $0x260] sm:$0xf] %v6477_v32  ;;  %2235 = vst [vmem:[#allocation3 + $0x52c] sm:$0xf] %v6679_v44  ;;  %v925_v11 = vld [vmem:[#allocation2 + $0xdd] sm:$0xff] }
  0xe7   : > { %6745 = vmatpush3.bf16.msra.mxu0 %v7268_v21  ;;  %4672 = vmatprep.mubr.bf16.mxu0 %v7272_v24  ;;  %v6464_v19 = vpack.c.bf16 %v904_v15, %v904_v15  ;;  %v905_v21 = vld [vmem:[#allocation2 + $0x3d] sm:$0xff]  ;;  %v1128_v24 = vld [vmem:[#allocation2 + $0x47] sm:$0xff]  ;;  %v1145_v2 = vld [vmem:[#allocation2 + $0xcf] sm:$0xff]  ;;  %1108 = vst [vmem:[#allocation3 + $0x368] sm:$0xf] %v6482_v4 }
  0xe8   : > { %6746 = vmatprep.subr.bf16.mxu0 %v7517_v54  ;;  %v6465_v23 = vpack.c.bf16 %v905_v21, %v905_v21  ;;  %v6502_v26 = vpack.c.bf16 %v1128_v24, %v1128_v24  ;;  %v1138_v15 = vld [vmem:[#allocation2 + $0x97] sm:$0xff]  ;;  %v7325_v62 = vld [vmem:[#allocation3 + $0x258] ss:$36 sps:$4 sm:$0xff]   ;;  %1109 = vst [vmem:[#allocation3 + $0x38c] sm:$0xf] %v6483_v5  ;;  %v1149_v25 = vld [vmem:[#allocation2 + $0xef] sm:$0xff] }
  0xe9   : > { %1090 = vst [vmem:[#allocation3 + $0xe0] sm:$0xf] %v6464_v19  ;;  %2425 = vst [vmem:[#allocation3 + $0x8c] sm:$0xf] %v6464_v19  ;;  %v7315_v19 = vld [vmem:[#allocation3 + $0x214] ss:$36 sps:$4 sm:$0xff]   ;;  %v6523_v29 = vpack.c.bf16 %v1149_v25, %v1149_v25 }
  0xea   : > { %1091 = vst [vmem:[#allocation3 + $0x104] sm:$0xf] %v6465_v23  ;;  %2426 = vst [vmem:[#allocation3 + $0xb0] sm:$0xf] %v6465_v23  ;;  %v2047_v23 = vld [vmem:[#allocation2 + $0x12c] sm:$0xff]  ;;  %v2048_v24 = vld [vmem:[#allocation2 + $0x134] sm:$0xff] }
  0xeb   : > { %6747 = vmatpush3.bf16.msra.mxu0 %v7283_v35  ;;  %1314 = vst [vmem:[#allocation3 + $0x108] sm:$0xf] %v6502_v26  ;;  %v7295_v35 = vld [vmem:[#allocation3 + $0x3f0] ss:$36 sps:$4 sm:$0xff]   ;;  %v6677_v26 = vpack.c.bf16 %v2047_v23, %v2047_v23  ;;  %2443 = vst [vmem:[#allocation3 + $0x314] sm:$0xf] %v6482_v4 }
  0xec   : > { %6748 = vmatprep.subr.bf16.mxu0 %v7517_v54  ;;  %v7329_v3 = vld [vmem:[#allocation3 + $0xc] ss:$36 sps:$4 sm:$0xff]   ;;  %2444 = vst [vmem:[#allocation3 + $0x338] sm:$0xf] %v6483_v5  ;;  %v1147_v14 = vld [vmem:[#allocation2 + $0xdf] sm:$0xff] }
  0xed   : > { %4201 = vmatmul.mubr.bf16.gmra.mrb[44].mxu1 %v7274_v34  ;;  %v6503_v34 = vpack.c.bf16 %v1129_v30, %v1129_v30  ;;  %v1139_v30 = vld [vmem:[#allocation2 + $0x9f] sm:$0xff]  ;;  %2233 = vst [vmem:[#allocation3 + $0x4e4] sm:$0xf] %v6677_v26  ;;  %v7336_v22 = vld [vmem:[#allocation3 + $0x2ec] ss:$36 sps:$4 sm:$0xff]  }
  0xee   : > { %4673 = vmatmul.mubr.bf16.gmra.mrb[4].mxu0 %v7275_v37  ;;  %4208 = vmatprep.mubr.bf16.mxu1 %v7276_v38  ;;  %v6504_v37 = vpack.c.bf16 %v1130_v33, %v1130_v33  ;;  %v7298_v38 = vld [vmem:[#allocation3 + $0x43c] ss:$36 sps:$4 sm:$0xff]   ;;  %v927_v23 = vld [vmem:[#allocation2 + $0xed] sm:$0xff]  ;;  %v1150_v26 = vld [vmem:[#allocation2 + $0xf7] sm:$0xff]  ;;  %1335 = vst [vmem:[#allocation3 + $0x3fc] sm:$0xf] %v6523_v29 }
  0xef   : > { %4680 = vmatprep.mubr.bf16.mxu0 %v7279_v42  ;;  %6749 = vmatpush3.bf16.msra.mxu0 %v7302_v43  ;;  %1315 = vst [vmem:[#allocation3 + $0x12c] sm:$0xf] %v6503_v34  ;;  %v1131_v42 = vld [vmem:[#allocation2 + $0x5f] sm:$0xff]  ;;  %v6468_v43 = vpack.c.bf16 %v908_v40, %v908_v40  ;;  %v1140_v33 = vld [vmem:[#allocation2 + $0xa7] sm:$0xff]  ;;  %v6513_v34 = vpack.c.bf16 %v1139_v30, %v1139_v30  ;;  %v928_v31 = vld [vmem:[#allocation2 + $0xf5] sm:$0xff] }
  0xf0   : > { %6750 = vmatprep.subr.bf16.mxu0 %v7517_v54  ;;  %1316 = vst [vmem:[#allocation3 + $0x150] sm:$0xf] %v6504_v37  ;;  %v7852_v37 = vld [vmem:[#allocation3 + $0x510] sm:$0xff]  ;;  %v6487_v28 = vpack.c.bf16 %v927_v23, %v927_v23  ;;  %v6524_v30 = vpack.c.bf16 %v1150_v26, %v1150_v26  ;;  %v931_v41 = vld [vmem:[#allocation2 + $0x10d] sm:$0xff]  ;;  %v7344_v4 = vld [vmem:[#allocation3 + $0x98] ss:$36 sps:$4 sm:$0xff]  }
  0xf1   : > { %1094 = vst [vmem:[#allocation3 + $0x170] sm:$0xf] %v6468_v43  ;;  %2429 = vst [vmem:[#allocation3 + $0x11c] sm:$0xf] %v6468_v43  ;;  %v7318_v40 = vld [vmem:[#allocation3 + $0x210] ss:$36 sps:$4 sm:$0xff]   ;;  %v6299_v63 = vcombine.low %v7852_v37, %v7852_v37 }
  0xf2   : > { %1325 = vst [vmem:[#allocation3 + $0x294] sm:$0xf] %v6513_v34  ;;  %v919_v43 = vld [vmem:[#allocation2 + $0xad] sm:$0xff]  ;;  %v929_v32 = vld [vmem:[#allocation2 + $0xfd] sm:$0xff]  ;;  %1113 = vst [vmem:[#allocation3 + $0x41c] sm:$0xf] %v6487_v28 }
  0xf3   : > { %6751 = vmatpush3.bf16.msra.mxu0 %v7319_v46  ;;  %v6505_v46 = vpack.c.bf16 %v1131_v42, %v1131_v42  ;;  %v918_v42 = vld [vmem:[#allocation2 + $0xa5] sm:$0xff]  ;;  %1336 = vst [vmem:[#allocation3 + $0x420] sm:$0xf] %v6524_v30  ;;  %v6489_v34 = vpack.c.bf16 %v929_v32, %v929_v32  ;;  %2448 = vst [vmem:[#allocation3 + $0x3c8] sm:$0xf] %v6487_v28  ;;  %v1154_v44 = vld [vmem:[#allocation2 + $0x117] sm:$0xff] }
  0xf4   : > { %6752 = vmatprep.subr.bf16.mxu0 %v7517_v54  ;;  %v6478_v45 = vpack.c.bf16 %v918_v42, %v918_v42  ;;  %v7465_v0 = vld [vmem:[%s7575_s30 + $0x110] sm:$0xff]   ;;  %v7348_v5 = vld [vmem:[#allocation3 + $0x37c] ss:$36 sps:$4 sm:$0xff]  }
  0xf5   : > { %4209 = vmatmul.mubr.bf16.gmra.mrb[48].mxu1 %v7281_v58  ;;  %1317 = vst [vmem:[#allocation3 + $0x174] sm:$0xf] %v6505_v46  ;;  %v7304_v58 = vld [vmem:[#allocation3 + $0x180] ss:$36 sps:$4 sm:$0xff]   ;;  %v6479_v46 = vpack.c.bf16 %v919_v43, %v919_v43  ;;  %1115 = vst [vmem:[#allocation3 + $0x464] sm:$0xf] %v6489_v34 }
  0xf6   : > { %4681 = vmatmul.mubr.bf16.gmra.mrb[8].mxu0 %v7282_v55  ;;  %4216 = vmatprep.mubr.bf16.mxu1 %v7284_v59  ;;  %v6471_v55 = vpack.c.bf16 %v911_v51, %v911_v51  ;;  %v7306_v59 = vld [vmem:[#allocation3 + $0x484] ss:$36 sps:$4 sm:$0xff]   ;;  %v6515_v51 = vpack.c.bf16 %v1141_v47, %v1141_v47  ;;  %1104 = vst [vmem:[#allocation3 + $0x2d8] sm:$0xf] %v6478_v45  ;;  %2439 = vst [vmem:[#allocation3 + $0x284] sm:$0xf] %v6478_v45 }
  0xf7   : > { %4688 = vmatprep.mubr.bf16.mxu0 %v7286_v60  ;;  %6753 = vmatpush3.bf16.msra.mxu0 %v7333_v61  ;;  %v6508_v60 = vpack.c.bf16 %v1134_v56, %v1134_v56  ;;  %v7308_v61 = vld [vmem:[#allocation3 + $0x1cc] ss:$36 sps:$4 sm:$0xff]   ;;  %1105 = vst [vmem:[#allocation3 + $0x2fc] sm:$0xf] %v6479_v46  ;;  %v6480_v56 = vpack.c.bf16 %v920_v53, %v920_v53  ;;  %2440 = vst [vmem:[#allocation3 + $0x2a8] sm:$0xf] %v6479_v46 }
  0xf8   : > { %6754 = vmatprep.subr.bf16.mxu0 %v7517_v54  ;;  %1097 = vst [vmem:[#allocation3 + $0x1dc] sm:$0xf] %v6471_v55  ;;  %2432 = vst [vmem:[#allocation3 + $0x188] sm:$0xf] %v6471_v55  ;;  %v921_v55 = vld [vmem:[#allocation2 + $0xbd] sm:$0xff]  ;;  %v1153_v43 = vld [vmem:[#allocation2 + $0x10f] sm:$0xff]  ;;  %v6491_v46 = vpack.c.bf16 %v931_v41, %v931_v41 }
  0xf9   : > { %1320 = vst [vmem:[#allocation3 + $0x1e0] sm:$0xf] %v6508_v60  ;;  %1327 = vst [vmem:[#allocation3 + $0x2dc] sm:$0xf] %v6515_v51  ;;  %v1144_v60 = vld [vmem:[#allocation2 + $0xc7] sm:$0xff]  ;;  %v6527_v47 = vpack.c.bf16 %v1153_v43, %v1153_v43  ;;  %v932_v51 = vld [vmem:[#allocation2 + $0x115] sm:$0xff] }
  0xfa   : > { %1106 = vst [vmem:[#allocation3 + $0x320] sm:$0xf] %v6480_v56  ;;  %2441 = vst [vmem:[#allocation3 + $0x2cc] sm:$0xf] %v6480_v56  ;;  %v7339_v45 = vld [vmem:[#allocation3 + $0x2e8] ss:$36 sps:$4 sm:$0xff]   ;;  %v6492_v56 = vpack.c.bf16 %v932_v51, %v932_v51 }
  0xfb   : > { %6755 = vmatpush3.bf16.msra.mxu0 %v7352_v27  ;;  %v6678_v27 = vpack.c.bf16 %v2048_v24, %v2048_v24  ;;  %2450 = vst [vmem:[#allocation3 + $0x410] sm:$0xf] %v6489_v34  ;;  %1117 = vst [vmem:[#allocation3 + $0x4ac] sm:$0xf] %v6491_v46  ;;  %v7342_v53 = vld [vmem:[#allocation3 + $0x334] ss:$36 sps:$4 sm:$0xff]  }
  0xfc   : > { %6756 = vmatprep.subr.bf16.mxu0 %v7517_v54  ;;  %1339 = vst [vmem:[#allocation3 + $0x48c] sm:$0xf] %v6527_v47  ;;  %2452 = vst [vmem:[#allocation3 + $0x458] sm:$0xf] %v6491_v46  ;;  %v1367_v23 = vld [vmem:[#allocation2 + $0xc8] sm:$0xff]  ;;  %v1369_v34 = vld [vmem:[#allocation2 + $0xd8] sm:$0xff] }
  0xfd   : > { %4217 = vmatmul.mubr.bf16.gmra.mrb[52].mxu1 %v7288_v17  ;;  %v6511_v17 = vpack.c.bf16 %v1137_v12, %v1137_v12  ;;  %2234 = vst [vmem:[#allocation3 + $0x508] sm:$0xf] %v6678_v27  ;;  %v7334_v27 = vld [vmem:[#allocation3 + $0x54] ss:$36 sps:$4 sm:$0xff]   ;;  %1118 = vst [vmem:[#allocation3 + $0x4d0] sm:$0xf] %v6492_v56  ;;  %v6555_v26 = vpack.c.bf16 %v1367_v23, %v1367_v23 }
  0xfe   : > { %4689 = vmatmul.mubr.bf16.gmra.mrb[12].mxu0 %v7290_v13  ;;  %4224 = vmatprep.mubr.bf16.mxu1 %v7291_v20  ;;  %v6474_v13 = vpack.c.bf16 %v914_v10, %v914_v10  ;;  %v6512_v20 = vpack.c.bf16 %v1138_v15, %v1138_v15  ;;  %v924_v10 = vld [vmem:[#allocation2 + $0xd5] sm:$0xff]  ;;  %v1148_v15 = vld [vmem:[#allocation2 + $0xe7] sm:$0xff]  ;;  %2453 = vst [vmem:[#allocation3 + $0x47c] sm:$0xf] %v6492_v56 }
  0xff   : > { %4696 = vmatprep.mubr.bf16.mxu0 %v7293_v18  ;;  %6757 = vmatpush3.bf16.msra.mxu0 %v7365_v49  ;;  %v1824_v18 = vld [vmem:[#allocation2 + $0x12b] sm:$0xff]  ;;  %1323 = vst [vmem:[#allocation3 + $0x24c] sm:$0xf] %v6511_v17  ;;  %v6300_v49 = vcombine.high %v7852_v37, %v7852_v37  ;;  %v6484_v12 = vpack.c.bf16 %v924_v10, %v924_v10  ;;  %1553 = vst [vmem:[#allocation3 + $0x34c] sm:$0xf] %v6555_v26  ;;  %v7470_v43 = vld [vmem:[%s7575_s30 + $0x138] sm:$0xff]  }
 0x100   : > { %6758 = vmatprep.subr.bf16.mxu0 %v7517_v54  ;;  %v6640_v21 = vpack.c.bf16 %v1824_v18, %v1824_v18  ;;  %1100 = vst [vmem:[#allocation3 + $0x248] sm:$0xf] %v6474_v13  ;;  %2435 = vst [vmem:[#allocation3 + $0x1f4] sm:$0xf] %v6474_v13  ;;  %v6485_v13 = vpack.c.bf16 %v925_v11, %v925_v11  ;;  %v6521_v17 = vpack.c.bf16 %v1147_v14, %v1147_v14  ;;  %v7468_v29 = vld [vmem:[%s7575_s30 + $0x128] sm:$0xff]   ;;  %v1370_v47 = vld [vmem:[#allocation2 + $0xe0] sm:$0xff] }
 0x101   : > { %1324 = vst [vmem:[#allocation3 + $0x270] sm:$0xf] %v6512_v20  ;;  %v6522_v18 = vpack.c.bf16 %v1148_v15, %v1148_v15  ;;  %v7332_v20 = vld [vmem:[#allocation3 + $0x2a0] ss:$36 sps:$4 sm:$0xff]   ;;  %1110 = vst [vmem:[#allocation3 + $0x3b0] sm:$0xf] %v6484_v12 }
 0x102   : > { %2010 = vst [vmem:[#allocation3 + $0x4e0] sm:$0xf] %v6640_v21  ;;  %1111 = vst [vmem:[#allocation3 + $0x3d4] sm:$0xf] %v6485_v13  ;;  %v926_v21 = vld [vmem:[#allocation2 + $0xe5] sm:$0xff] }
 0x103   : > { %6759 = vmatpush3.bf16.msra.mxu0 %v7378_v9  ;;  %2445 = vst [vmem:[#allocation3 + $0x35c] sm:$0xf] %v6484_v12  ;;  %2446 = vst [vmem:[#allocation3 + $0x380] sm:$0xf] %v6485_v13  ;;  %v6486_v24 = vpack.c.bf16 %v926_v21, %v926_v21  ;;  %v1587_v12 = vld [vmem:[#allocation2 + $0xb1] sm:$0xff]  ;;  %v1588_v13 = vld [vmem:[#allocation2 + $0xb9] sm:$0xff] }
 0x104   : > { %1333 = vst [vmem:[#allocation3 + $0x3b4] sm:$0xf] %v6521_v17  ;;  %1334 = vst [vmem:[#allocation3 + $0x3d8] sm:$0xf] %v6522_v18  ;;  %v6589_v14 = vpack.c.bf16 %v1587_v12, %v1587_v12  ;;  %v6590_v15 = vpack.c.bf16 %v1588_v13, %v1588_v13  ;;  %v7350_v17 = vld [vmem:[#allocation3 + $0xe0] ss:$36 sps:$4 sm:$0xff]  }
 0x105   : > { %4225 = vmatmul.mubr.bf16.gmra.mrb[56].mxu1 %v7295_v35  ;;  %v1826_v35 = vld [vmem:[#allocation2 + $0x13b] sm:$0xff]  ;;  %1112 = vst [vmem:[#allocation3 + $0x3f8] sm:$0xf] %v6486_v24  ;;  %2447 = vst [vmem:[#allocation3 + $0x3a4] sm:$0xf] %v6486_v24  ;;  %v1375_v13 = vld [vmem:[#allocation2 + $0x108] sm:$0xff] }
 0x106   : > { %4697 = vmatmul.mubr.bf16.gmra.mrb[16].mxu0 %v7296_v36  ;;  %4232 = vmatprep.mubr.bf16.mxu1 %v7298_v38  ;;  %v7317_v36 = vld [vmem:[#allocation3 + $0x4c8] ss:$36 sps:$4 sm:$0xff]   ;;  %v6514_v38 = vpack.c.bf16 %v1140_v33, %v1140_v33  ;;  %v6488_v33 = vpack.c.bf16 %v928_v31, %v928_v31  ;;  %1773 = vst [vmem:[#allocation3 + $0x2e4] sm:$0xf] %v6589_v14  ;;  %1774 = vst [vmem:[#allocation3 + $0x308] sm:$0xf] %v6590_v15 }
 0x107   : > { %4704 = vmatprep.mubr.bf16.mxu0 %v7300_v39  ;;  %v6642_v39 = vpack.c.bf16 %v1826_v35, %v1826_v35  ;;  %v1151_v35 = vld [vmem:[#allocation2 + $0xff] sm:$0xff]  ;;  %v7355_v21 = vld [vmem:[#allocation3 + $0x3c4] ss:$36 sps:$4 sm:$0xff]  }
 0x108   : > { %1326 = vst [vmem:[#allocation3 + $0x2b8] sm:$0xf] %v6514_v38  ;;  %1114 = vst [vmem:[#allocation3 + $0x440] sm:$0xf] %v6488_v33  ;;  %v6525_v37 = vpack.c.bf16 %v1151_v35, %v1151_v35  ;;  %v7467_v18 = vld [vmem:[%s7575_s30 + $0x120] sm:$0xff]   ;;  %v7469_v31 = vld [vmem:[%s7575_s30 + $0x130] sm:$0xff]  }
 0x109   : > { %2012 = vst [vmem:[#allocation3 + $0x528] sm:$0xf] %v6642_v39  ;;  %v930_v39 = vld [vmem:[#allocation2 + $0x105] sm:$0xff]  ;;  %2449 = vst [vmem:[#allocation3 + $0x3ec] sm:$0xf] %v6488_v33  ;;  %v1368_v33 = vld [vmem:[#allocation2 + $0xd0] sm:$0xff] }
 0x10a   : > { %v6490_v42 = vpack.c.bf16 %v930_v39, %v930_v39  ;;  %1337 = vst [vmem:[#allocation3 + $0x444] sm:$0xf] %v6525_v37  ;;  %v1589_v24 = vld [vmem:[#allocation2 + $0xc1] sm:$0xff]  ;;  %v7357_v32 = vld [vmem:[#allocation3 + $0x128] ss:$36 sps:$4 sm:$0xff]   ;;  %v6557_v39 = vpack.c.bf16 %v1369_v34, %v1369_v34 }
 0x10b   : > { %v6591_v28 = vpack.c.bf16 %v1589_v24, %v1589_v24  ;;  %v1591_v35 = vld [vmem:[#allocation2 + $0xd1] sm:$0xff]  ;;  %v7359_v37 = vld [vmem:[#allocation3 + $0x174] ss:$36 sps:$4 sm:$0xff]   ;;  %v7366_v51 = vld [vmem:[#allocation3 + $0x1bc] ss:$36 sps:$4 sm:$0xff]  }
 0x10c   : > { %1116 = vst [vmem:[#allocation3 + $0x488] sm:$0xf] %v6490_v42  ;;  %2451 = vst [vmem:[#allocation3 + $0x434] sm:$0xf] %v6490_v42  ;;  %v6593_v41 = vpack.c.bf16 %v1591_v35, %v1591_v35  ;;  %v7361_v42 = vld [vmem:[#allocation3 + $0x40c] ss:$36 sps:$4 sm:$0xff]  }
 0x10d   : > { %4233 = vmatmul.mubr.bf16.gmra.mrb[60].mxu1 %v7303_v48  ;;  %v1142_v48 = vld [vmem:[#allocation2 + $0xb7] sm:$0xff]  ;;  %1775 = vst [vmem:[#allocation3 + $0x32c] sm:$0xf] %v6591_v28  ;;  %1555 = vst [vmem:[#allocation3 + $0x394] sm:$0xf] %v6557_v39  ;;  %v1374_v12 = vld [vmem:[#allocation2 + $0x100] sm:$0xff] }
 0x10e   : > { %4705 = vmatmul.mubr.bf16.gmra.mrb[20].mxu0 %v7304_v58  ;;  %4240 = vmatprep.mubr.bf16.mxu1 %v7306_v59  ;;  %v6516_v52 = vpack.c.bf16 %v1142_v48, %v1142_v48  ;;  %v6481_v58 = vpack.c.bf16 %v921_v55, %v921_v55  ;;  %v6517_v59 = vpack.c.bf16 %v1143_v57, %v1143_v57  ;;  %v7464_v55 = vld [vmem:[%s7575_s30 + $0x108] sm:$0xff]   ;;  %v7363_v46 = vld [vmem:[#allocation3 + $0x170] ss:$36 sps:$4 sm:$0xff]   ;;  %v7377_v15 = vld [vmem:[#allocation3 + $0x498] ss:$36 sps:$4 sm:$0xff]  }
 0x10f   : > { %4712 = vmatprep.mubr.bf16.mxu0 %v7308_v61  ;;  %v6518_v61 = vpack.c.bf16 %v1144_v60, %v1144_v60  ;;  %v6528_v48 = vpack.c.bf16 %v1154_v44, %v1154_v44  ;;  %1777 = vst [vmem:[#allocation3 + $0x374] sm:$0xf] %v6593_v41  ;;  %v1597_v14 = vld [vmem:[#allocation2 + $0x101] sm:$0xff]  ;;  %v7383_v26 = vld [vmem:[#allocation3 + $0x248] ss:$36 sps:$4 sm:$0xff]   ;;  %v1600_v35 = vld [vmem:[#allocation2 + $0x119] sm:$0xff] }
 0x110   : > { %1328 = vst [vmem:[#allocation3 + $0x300] sm:$0xf] %v6516_v52  ;;  %1107 = vst [vmem:[#allocation3 + $0x344] sm:$0xf] %v6481_v58  ;;  %v933_v52 = vld [vmem:[#allocation2 + $0x11d] sm:$0xff]  ;;  %v7476_v23 = vld [vmem:[%s7575_s30 + $0x168] sm:$0xff]   ;;  %v6602_v39 = vpack.c.bf16 %v1600_v35, %v1600_v35 }
 0x111   : > { %1329 = vst [vmem:[#allocation3 + $0x324] sm:$0xf] %v6517_v59  ;;  %2442 = vst [vmem:[#allocation3 + $0x2f0] sm:$0xf] %v6481_v58  ;;  %v6493_v57 = vpack.c.bf16 %v933_v52, %v933_v52  ;;  %v1155_v58 = vld [vmem:[#allocation2 + $0x11f] sm:$0xff]  ;;  %v1156_v59 = vld [vmem:[#allocation2 + $0x127] sm:$0xff]  ;;  %v6558_v52 = vpack.c.bf16 %v1370_v47, %v1370_v47 }
 0x112   : > { %1330 = vst [vmem:[#allocation3 + $0x348] sm:$0xf] %v6518_v61  ;;  %1340 = vst [vmem:[#allocation3 + $0x4b0] sm:$0xf] %v6528_v48  ;;  %v6529_v60 = vpack.c.bf16 %v1155_v58, %v1155_v58  ;;  %v6530_v61 = vpack.c.bf16 %v1156_v59, %v1156_v59  ;;  %v1371_v48 = vld [vmem:[#allocation2 + $0xe8] sm:$0xff]  ;;  %v1376_v28 = vld [vmem:[#allocation2 + $0x110] sm:$0xff] }
 0x113   : > { %1119 = vst [vmem:[#allocation3 + $0x4f4] sm:$0xf] %v6493_v57  ;;  %2454 = vst [vmem:[#allocation3 + $0x4a0] sm:$0xf] %v6493_v57  ;;  %v7368_v57 = vld [vmem:[#allocation3 + $0x454] ss:$36 sps:$4 sm:$0xff]  }
 0x114   : > { %1341 = vst [vmem:[#allocation3 + $0x4d4] sm:$0xf] %v6529_v60  ;;  %1342 = vst [vmem:[#allocation3 + $0x4f8] sm:$0xf] %v6530_v61  ;;  %v7472_v58 = vld [vmem:[%s7575_s30 + $0x148] sm:$0xff]   ;;  %v7473_v60 = vld [vmem:[%s7575_s30 + $0x150] sm:$0xff]  }
 0x115   : > { %4241 = vmatmul.mubr.bf16.gmra.mrb[64].mxu1 %v7310_v6  ;;  %v1146_v6 = vld [vmem:[#allocation2 + $0xd7] sm:$0xff]  ;;  %1556 = vst [vmem:[#allocation3 + $0x3b8] sm:$0xf] %v6558_v52  ;;  %v7370_v61 = vld [vmem:[#allocation3 + $0x1b8] ss:$36 sps:$4 sm:$0xff]   ;;  %v1379_v41 = vld [vmem:[#allocation2 + $0x128] sm:$0xff] }
 0x116   : > { %4713 = vmatmul.mubr.bf16.gmra.mrb[24].mxu0 %v7311_v7  ;;  %4248 = vmatprep.mubr.bf16.mxu1 %v7313_v8  ;;  %v6519_v7 = vpack.c.bf16 %v1145_v2, %v1145_v2  ;;  %v7330_v8 = vld [vmem:[#allocation3 + $0x2a4] ss:$36 sps:$4 sm:$0xff]   ;;  %v6520_v9 = vpack.c.bf16 %v1146_v6, %v1146_v6  ;;  %1786 = vst [vmem:[#allocation3 + $0x4b8] sm:$0xf] %v6602_v39  ;;  %v7392_v52 = vld [vmem:[#allocation3 + $0x2d8] ss:$36 sps:$4 sm:$0xff]  }
 0x117   : > { %4720 = vmatprep.mubr.bf16.mxu0 %v7315_v19  ;;  %v7327_v19 = vld [vmem:[#allocation3 + $0x8] ss:$36 sps:$4 sm:$0xff]  }
 0x118   : > { %1331 = vst [vmem:[#allocation3 + $0x36c] sm:$0xf] %v6519_v7  ;;  %1332 = vst [vmem:[#allocation3 + $0x390] sm:$0xf] %v6520_v9  ;;  %v7346_v6 = vld [vmem:[#allocation3 + $0xe4] ss:$36 sps:$4 sm:$0xff]  }
 0x119   : > { %v1364_v7 = vld [vmem:[#allocation2 + $0xb0] sm:$0xff]  ;;  %v7466_v9 = vld [vmem:[%s7575_s30 + $0x118] sm:$0xff]  }
 0x11a   : > { %v6552_v10 = vpack.c.bf16 %v1364_v7, %v1364_v7  ;;  %v7374_v7 = vld [vmem:[#allocation3 + $0x49c] ss:$36 sps:$4 sm:$0xff]   ;;  %v7444_v39 = vld [vmem:[#allocation3 + $0x3c8] ss:$36 sps:$4 sm:$0xff]  }
 0x11b   : > { %v1602_v47 = vld [vmem:[#allocation2 + $0x129] sm:$0xff] }
 0x11c   : > { %1550 = vst [vmem:[#allocation3 + $0x2e0] sm:$0xf] %v6552_v10  ;;  %v7475_v10 = vld [vmem:[%s7575_s30 + $0x160] sm:$0xff]  }
 0x11d   : > { %4249 = vmatmul.mubr.bf16.gmra.mrb[68].mxu1 %v7317_v36  ;;  %v1152_v36 = vld [vmem:[#allocation2 + $0x107] sm:$0xff] }
 0x11e   : > { %4721 = vmatmul.mubr.bf16.gmra.mrb[28].mxu0 %v7318_v40  ;;  %4256 = vmatprep.mubr.bf16.mxu1 %v6300_v49  ;;  %v6526_v38 = vpack.c.bf16 %v1152_v36, %v1152_v36  ;;  %v7463_v40 = vld [vmem:[%s7575_s30 + $0x100] sm:$0xff]   ;;  %v7338_v49 = vld [vmem:[#allocation3 + $0x50] ss:$36 sps:$4 sm:$0xff]   ;;  %v7358_v36 = vld [vmem:[#allocation3 + $0x3c0] ss:$36 sps:$4 sm:$0xff]  }
 0x11f   : > { %4728 = vmatprep.mubr.bf16.mxu0 %v7322_v50  ;;  %v7340_v50 = vld [vmem:[#allocation3 + $0x9c] ss:$36 sps:$4 sm:$0xff]  }
 0x120   : > { %1338 = vst [vmem:[#allocation3 + $0x468] sm:$0xf] %v6526_v38  ;;  %v6556_v38 = vpack.c.bf16 %v1368_v33, %v1368_v33  ;;  %v6564_v33 = vpack.c.bf16 %v1376_v28, %v1376_v28 }
 0x122   : > { %1554 = vst [vmem:[#allocation3 + $0x370] sm:$0xf] %v6556_v38  ;;  %v7478_v38 = vld [vmem:[%s7575_s30 + $0x178] sm:$0xff]   ;;  %1562 = vst [vmem:[#allocation3 + $0x490] sm:$0xf] %v6564_v33 }
 0x123   : > { %v7436_v33 = vld [vmem:[#allocation3 + $0x338] ss:$36 sps:$4 sm:$0xff]  }
 0x125   : > { %4257 = vmatmul.mubr.bf16.gmra.mrb[72].mxu1 %v6299_v63  ;;  %v1157_v63 = vld [vmem:[#allocation2 + $0x12f] sm:$0xff] }
 0x126   : > { %4729 = vmatmul.mubr.bf16.gmra.mrb[32].mxu0 %v7325_v62  ;;  %4296 = vmatprep.mubr.bf16.mxu1 %v7329_v3  ;;  %v934_v62 = vld [vmem:[#allocation2 + $0x125] sm:$0xff]  ;;  %v6531_v2 = vpack.c.bf16 %v1157_v63, %v1157_v63  ;;  %v7345_v3 = vld [vmem:[#allocation3 + $0x330] ss:$36 sps:$4 sm:$0xff]  }
 0x127   : > { %4736 = vmatprep.mubr.bf16.mxu0 %v7330_v8  ;;  %v6494_v1 = vpack.c.bf16 %v934_v62, %v934_v62  ;;  %v1365_v8 = vld [vmem:[#allocation2 + $0xb8] sm:$0xff]  ;;  %v1372_v62 = vld [vmem:[#allocation2 + $0xf0] sm:$0xff] }
 0x128   : > { %1343 = vst [vmem:[#allocation3 + $0x51c] sm:$0xf] %v6531_v2  ;;  %v6553_v11 = vpack.c.bf16 %v1365_v8, %v1365_v8  ;;  %v1373_v63 = vld [vmem:[#allocation2 + $0xf8] sm:$0xff]  ;;  %v7372_v2 = vld [vmem:[#allocation3 + $0x204] ss:$36 sps:$4 sm:$0xff]  }
 0x129   : > { %1120 = vst [vmem:[#allocation3 + $0x518] sm:$0xf] %v6494_v1  ;;  %2455 = vst [vmem:[#allocation3 + $0x4c4] sm:$0xf] %v6494_v1  ;;  %v7371_v1 = vld [vmem:[#allocation3 + $0x450] ss:$36 sps:$4 sm:$0xff]  }
 0x12a   : > { %1551 = vst [vmem:[#allocation3 + $0x304] sm:$0xf] %v6553_v11  ;;  %v7474_v8 = vld [vmem:[%s7575_s30 + $0x158] sm:$0xff]   ;;  %v7376_v11 = vld [vmem:[#allocation3 + $0x200] ss:$36 sps:$4 sm:$0xff]  }
 0x12d   : > { %4297 = vmatmul.mubr.bf16.vlgmr.msra.gmra.mrb[0].mxu1 %v7327_v19  ;;  %v7351_v19 = vld [vmem:[#allocation3 + $0x378] ss:$36 sps:$4 sm:$0xff]  }
 0x12e   : > { %4737 = vmatmul.mubr.bf16.gmra.mrb[36].mxu0 %v7332_v20  ;;  %4304 = vmatprep.mubr.bf16.mxu1 %v7334_v27  ;;  %v7353_v20 = vld [vmem:[#allocation3 + $0x12c] ss:$36 sps:$4 sm:$0xff]   ;;  %v1590_v27 = vld [vmem:[#allocation2 + $0xc9] sm:$0xff] }
 0x12f   : > { %4744 = vmatprep.mubr.bf16.mxu0 %v7336_v22  ;;  %6852 = vmatpush1.bf16.msra.mxu1 %v7463_v40  ;;  %v1366_v22 = vld [vmem:[#allocation2 + $0xc0] sm:$0xff]  ;;  %v6592_v30 = vpack.c.bf16 %v1590_v27, %v1590_v27  ;;  %v2642_v27 = vld [vmem:[#allocation3 + $0x528] sm:$0xff] }
 0x130   : > { %6837 = vmatprep.subr.bf16.mxu1 %v7516_v16  ;;  %v6554_v25 = vpack.c.bf16 %v1366_v22, %v1366_v22  ;;  %v1592_v40 = vld [vmem:[#allocation2 + $0xd9] sm:$0xff]  ;;  %v7381_v22 = vld [vmem:[#allocation3 + $0x4e4] ss:$36 sps:$4 sm:$0xff]  }
 0x131   : > { %1776 = vst [vmem:[#allocation3 + $0x350] sm:$0xf] %v6592_v30  ;;  %v6594_v44 = vpack.c.bf16 %v1592_v40, %v1592_v40  ;;  %v1599_v30 = vld [vmem:[#allocation2 + $0x111] sm:$0xff]  ;;  %v1378_v40 = vld [vmem:[#allocation2 + $0x120] sm:$0xff] }
 0x132   : > { %1552 = vst [vmem:[#allocation3 + $0x328] sm:$0xf] %v6554_v25  ;;  %v7477_v25 = vld [vmem:[%s7575_s30 + $0x170] sm:$0xff]  }
 0x133   : > { %6853 = vmatpush1.bf16.msra.mxu1 %v7464_v55  ;;  %1778 = vst [vmem:[#allocation3 + $0x398] sm:$0xf] %v6594_v44  ;;  %v1594_v55 = vld [vmem:[#allocation2 + $0xe9] sm:$0xff] }
 0x134   : > { %6838 = vmatprep.subr.bf16.mxu1 %v7516_v16  ;;  %v6596_v59 = vpack.c.bf16 %v1594_v55, %v1594_v55  ;;  %v7390_v44 = vld [vmem:[#allocation3 + $0x2dc] ss:$36 sps:$4 sm:$0xff]  }
 0x135   : > { %4305 = vmatmul.mubr.bf16.gmra.mrb[4].mxu1 %v7338_v49  ;;  %v1593_v49 = vld [vmem:[#allocation2 + $0xe1] sm:$0xff] }
 0x136   : > { %4745 = vmatmul.mubr.bf16.gmra.mrb[40].mxu0 %v7339_v45  ;;  %4312 = vmatprep.mubr.bf16.mxu1 %v7340_v50  ;;  %v7471_v45 = vld [vmem:[%s7575_s30 + $0x140] sm:$0xff]   ;;  %v7364_v50 = vld [vmem:[#allocation3 + $0x408] ss:$36 sps:$4 sm:$0xff]   ;;  %v6595_v56 = vpack.c.bf16 %v1593_v49, %v1593_v49  ;;  %1780 = vst [vmem:[#allocation3 + $0x3e0] sm:$0xf] %v6596_v59  ;;  %v6604_v49 = vpack.c.bf16 %v1602_v47, %v1602_v47 }
 0x137   : > { %4752 = vmatprep.mubr.bf16.mxu0 %v7342_v53  ;;  %6854 = vmatpush1.bf16.msra.mxu1 %v7465_v0  ;;  %v6559_v53 = vpack.c.bf16 %v1371_v48, %v1371_v48  ;;  %v1595_v0 = vld [vmem:[#allocation2 + $0xf1] sm:$0xff] }
 0x138   : > { %6839 = vmatprep.subr.bf16.mxu1 %v7516_v16  ;;  %1779 = vst [vmem:[#allocation3 + $0x3bc] sm:$0xf] %v6595_v56  ;;  %1788 = vst [vmem:[#allocation3 + $0x500] sm:$0xf] %v6604_v49  ;;  %v2271_v59 = vld [vmem:[#allocation2 + $0x135] sm:$0xff] }
 0x139   : > { %1557 = vst [vmem:[#allocation3 + $0x3dc] sm:$0xf] %v6559_v53  ;;  %v7393_v53 = vld [vmem:[#allocation3 + $0x20] ss:$36 sps:$4 sm:$0xff]   ;;  %v7429_v28 = vld [vmem:[#allocation3 + $0x32c] ss:$36 sps:$4 sm:$0xff]  }
 0x13b   : > { %6855 = vmatpush1.bf16.msra.mxu1 %v7466_v9 }
 0x13c   : > { %6840 = vmatprep.subr.bf16.mxu1 %v7516_v16 }
 0x13d   : > { %4313 = vmatmul.mubr.bf16.gmra.mrb[8].mxu1 %v7344_v4  ;;  %v6561_v4 = vpack.c.bf16 %v1373_v63, %v1373_v63  ;;  %v7397_v63 = vld [vmem:[#allocation3 + $0x68] ss:$36 sps:$4 sm:$0xff]  }
 0x13e   : > { %4753 = vmatmul.mubr.bf16.gmra.mrb[44].mxu0 %v7345_v3  ;;  %4320 = vmatprep.mubr.bf16.mxu1 %v7346_v6  ;;  %v6560_v3 = vpack.c.bf16 %v1372_v62, %v1372_v62  ;;  %v6597_v6 = vpack.c.bf16 %v1595_v0, %v1595_v0  ;;  %v7396_v62 = vld [vmem:[#allocation3 + $0x320] ss:$36 sps:$4 sm:$0xff]   ;;  %v7398_v0 = vld [vmem:[#allocation3 + $0x36c] ss:$36 sps:$4 sm:$0xff]  }
 0x13f   : > { %4760 = vmatprep.mubr.bf16.mxu0 %v7348_v5  ;;  %6856 = vmatpush1.bf16.msra.mxu1 %v7467_v18  ;;  %v1596_v5 = vld [vmem:[#allocation2 + $0xf9] sm:$0xff]  ;;  %1559 = vst [vmem:[#allocation3 + $0x424] sm:$0xf] %v6561_v4  ;;  %v6562_v18 = vpack.c.bf16 %v1374_v12, %v1374_v12  ;;  %v7412_v12 = vld [vmem:[#allocation3 + $0x440] ss:$36 sps:$4 sm:$0xff]  }
 0x140   : > { %6841 = vmatprep.subr.bf16.mxu1 %v7516_v16  ;;  %v6598_v9 = vpack.c.bf16 %v1596_v5, %v1596_v5  ;;  %1558 = vst [vmem:[#allocation3 + $0x400] sm:$0xf] %v6560_v3  ;;  %1781 = vst [vmem:[#allocation3 + $0x404] sm:$0xf] %v6597_v6  ;;  %v7400_v3 = vld [vmem:[#allocation3 + $0x368] ss:$36 sps:$4 sm:$0xff]  }
 0x141   : > { %1560 = vst [vmem:[#allocation3 + $0x448] sm:$0xf] %v6562_v18  ;;  %v7401_v4 = vld [vmem:[#allocation3 + $0xb0] ss:$36 sps:$4 sm:$0xff]   ;;  %v7439_v35 = vld [vmem:[#allocation3 + $0x3b8] ss:$36 sps:$4 sm:$0xff]  }
 0x142   : > { %1782 = vst [vmem:[#allocation3 + $0x428] sm:$0xf] %v6598_v9  ;;  %v7402_v5 = vld [vmem:[#allocation3 + $0x3b4] ss:$36 sps:$4 sm:$0xff]  }
 0x143   : > { %6857 = vmatpush1.bf16.msra.mxu1 %v7468_v29  ;;  %v1377_v29 = vld [vmem:[#allocation2 + $0x118] sm:$0xff]  ;;  %v7408_v9 = vld [vmem:[#allocation3 + $0x3f8] ss:$36 sps:$4 sm:$0xff]  }
 0x144   : > { %6842 = vmatprep.subr.bf16.mxu1 %v7516_v16  ;;  %v6565_v34 = vpack.c.bf16 %v1377_v29, %v1377_v29  ;;  %v7404_v6 = vld [vmem:[#allocation3 + $0x3b0] ss:$36 sps:$4 sm:$0xff]   ;;  %v7431_v29 = vld [vmem:[#allocation3 + $0x328] ss:$36 sps:$4 sm:$0xff]  }
 0x145   : > { %4321 = vmatmul.mubr.bf16.gmra.mrb[12].mxu1 %v7350_v17  ;;  %v7379_v17 = vld [vmem:[#allocation3 + $0x24c] ss:$36 sps:$4 sm:$0xff]   ;;  %v7418_v18 = vld [vmem:[#allocation3 + $0x4d4] ss:$36 sps:$4 sm:$0xff]  }
 0x146   : > { %4761 = vmatmul.mubr.bf16.gmra.mrb[48].mxu0 %v7351_v19  ;;  %4328 = vmatprep.mubr.bf16.mxu1 %v7353_v20  ;;  %v6563_v19 = vpack.c.bf16 %v1375_v13, %v1375_v13  ;;  %v1598_v20 = vld [vmem:[#allocation2 + $0x109] sm:$0xff]  ;;  %1563 = vst [vmem:[#allocation3 + $0x4b4] sm:$0xf] %v6565_v34 }
 0x147   : > { %4768 = vmatprep.mubr.bf16.mxu0 %v7355_v21  ;;  %6858 = vmatpush1.bf16.msra.mxu1 %v7469_v31  ;;  %v6599_v21 = vpack.c.bf16 %v1597_v14, %v1597_v14  ;;  %v6600_v24 = vpack.c.bf16 %v1598_v20, %v1598_v20  ;;  %v7384_v31 = vld [vmem:[#allocation3 + $0x4e0] ss:$36 sps:$4 sm:$0xff]   ;;  %v7413_v13 = vld [vmem:[#allocation3 + $0x188] ss:$36 sps:$4 sm:$0xff]   ;;  %v7420_v20 = vld [vmem:[#allocation3 + $0x4d0] ss:$36 sps:$4 sm:$0xff]  }
 0x148   : > { %6843 = vmatprep.subr.bf16.mxu1 %v7516_v16  ;;  %1561 = vst [vmem:[#allocation3 + $0x46c] sm:$0xf] %v6563_v19  ;;  %v7414_v14 = vld [vmem:[#allocation3 + $0x48c] ss:$36 sps:$4 sm:$0xff]   ;;  %v2640_v19 = vld [vmem:[#allocation3 + $0x518] sm:$0xff] }
 0x149   : > { %1783 = vst [vmem:[#allocation3 + $0x44c] sm:$0xf] %v6599_v21  ;;  %1784 = vst [vmem:[#allocation3 + $0x470] sm:$0xf] %v6600_v24  ;;  %v7421_v21 = vld [vmem:[#allocation3 + $0x218] ss:$36 sps:$4 sm:$0xff]  }
 0x14a   : > { %v7424_v24 = vld [vmem:[#allocation3 + $0x260] ss:$36 sps:$4 sm:$0xff]  }
 0x14b   : > { %6859 = vmatpush1.bf16.msra.mxu1 %v7470_v43  ;;  %v6305_v43 = vcombine.low %v2642_v27, %v2642_v27  ;;  %v7437_v34 = vld [vmem:[#allocation3 + $0x3bc] ss:$36 sps:$4 sm:$0xff]  }
 0x14c   : > { %6844 = vmatprep.subr.bf16.mxu1 %v7516_v16 }
 0x14d   : > { %4329 = vmatmul.mubr.bf16.gmra.mrb[16].mxu1 %v7357_v32  ;;  %v7385_v32 = vld [vmem:[#allocation3 + $0x294] ss:$36 sps:$4 sm:$0xff]  }
 0x14e   : > { %4769 = vmatmul.mubr.bf16.gmra.mrb[52].mxu0 %v7358_v36  ;;  %4336 = vmatprep.mubr.bf16.mxu1 %v7359_v37  ;;  %v6601_v36 = vpack.c.bf16 %v1599_v30, %v1599_v30  ;;  %v6306_v37 = vcombine.high %v2642_v27, %v2642_v27  ;;  %v7428_v27 = vld [vmem:[#allocation3 + $0x2a8] ss:$36 sps:$4 sm:$0xff]   ;;  %v7432_v30 = vld [vmem:[#allocation3 + $0x2f0] ss:$36 sps:$4 sm:$0xff]  }
 0x14f   : > { %4776 = vmatprep.mubr.bf16.mxu0 %v7361_v42  ;;  %6860 = vmatpush1.bf16.msra.mxu1 %v7471_v45  ;;  %v1601_v42 = vld [vmem:[#allocation2 + $0x121] sm:$0xff]  ;;  %v6566_v45 = vpack.c.bf16 %v1378_v40, %v1378_v40  ;;  %v7447_v40 = vld [vmem:[#allocation3 + $0x448] ss:$36 sps:$4 sm:$0xff]  }
 0x150   : > { %6845 = vmatprep.subr.bf16.mxu1 %v7516_v16  ;;  %1785 = vst [vmem:[#allocation3 + $0x494] sm:$0xf] %v6601_v36  ;;  %v6603_v48 = vpack.c.bf16 %v1601_v42, %v1601_v42  ;;  %v7440_v36 = vld [vmem:[#allocation3 + $0x380] ss:$36 sps:$4 sm:$0xff]  }
 0x151   : > { %1564 = vst [vmem:[#allocation3 + $0x4d8] sm:$0xf] %v6566_v45 }
 0x152   : > { %1787 = vst [vmem:[#allocation3 + $0x4dc] sm:$0xf] %v6603_v48  ;;  %v7456_v48 = vld [vmem:[#allocation3 + $0x4a0] ss:$36 sps:$4 sm:$0xff]  }
 0x153   : > { %6861 = vmatpush1.bf16.msra.mxu1 %v7472_v58  ;;  %v2270_v58 = vld [vmem:[#allocation2 + $0x12d] sm:$0xff] }
 0x154   : > { %6846 = vmatprep.subr.bf16.mxu1 %v7516_v16 }
 0x155   : > { %4337 = vmatmul.mubr.bf16.gmra.mrb[20].mxu1 %v7363_v46  ;;  %v6567_v46 = vpack.c.bf16 %v1379_v41, %v1379_v41  ;;  %v7448_v41 = vld [vmem:[#allocation3 + $0x410] ss:$36 sps:$4 sm:$0xff]  }
 0x156   : > { %4777 = vmatmul.mubr.bf16.gmra.mrb[56].mxu0 %v7364_v50  ;;  %4344 = vmatprep.mubr.bf16.mxu1 %v7366_v51  ;;  %v1380_v50 = vld [vmem:[#allocation2 + $0x130] sm:$0xff] }
 0x157   : > { %4784 = vmatprep.mubr.bf16.mxu0 %v7368_v57  ;;  %6862 = vmatpush1.bf16.msra.mxu1 %v7473_v60  ;;  %1565 = vst [vmem:[#allocation3 + $0x4fc] sm:$0xf] %v6567_v46  ;;  %v1603_v51 = vld [vmem:[#allocation2 + $0x131] sm:$0xff]  ;;  %v6568_v55 = vpack.c.bf16 %v1380_v50, %v1380_v50  ;;  %v6714_v60 = vpack.c.bf16 %v2270_v58, %v2270_v58  ;;  %v7449_v42 = vld [vmem:[#allocation3 + $0x494] ss:$36 sps:$4 sm:$0xff]  }
 0x158   : > { %6847 = vmatprep.subr.bf16.mxu1 %v7516_v16  ;;  %v6605_v56 = vpack.c.bf16 %v1603_v51, %v1603_v51  ;;  %v7394_v57 = vld [vmem:[#allocation3 + $0x324] ss:$36 sps:$4 sm:$0xff]  }
 0x159   : > { %1566 = vst [vmem:[#allocation3 + $0x520] sm:$0xf] %v6568_v55  ;;  %2456 = vst [vmem:[#allocation3 + $0x4e8] sm:$0xf] %v6714_v60  ;;  %v7453_v45 = vld [vmem:[#allocation3 + $0x4dc] ss:$36 sps:$4 sm:$0xff]  }
 0x15a   : > { %1789 = vst [vmem:[#allocation3 + $0x524] sm:$0xf] %v6605_v56 }
 0x15b   : > { %6863 = vmatpush1.bf16.msra.mxu1 %v7474_v8  ;;  %v7406_v8 = vld [vmem:[#allocation3 + $0x3fc] ss:$36 sps:$4 sm:$0xff]  }
 0x15c   : > { %6848 = vmatprep.subr.bf16.mxu1 %v7516_v16 }
 0x15d   : > { %4345 = vmatmul.mubr.bf16.gmra.mrb[24].mxu1 %v7370_v61  ;;  %v6715_v61 = vpack.c.bf16 %v2271_v59, %v2271_v59 }
 0x15e   : > { %4785 = vmatmul.mubr.bf16.gmra.mrb[60].mxu0 %v7371_v1  ;;  %4352 = vmatprep.mubr.bf16.mxu1 %v7372_v2  ;;  %v2272_v1 = vld [vmem:[#allocation2 + $0x13d] sm:$0xff] }
 0x15f   : > { %4792 = vmatprep.mubr.bf16.mxu0 %v7374_v7  ;;  %6864 = vmatpush1.bf16.msra.mxu1 %v7475_v10  ;;  %2457 = vst [vmem:[#allocation3 + $0x50c] sm:$0xf] %v6715_v61  ;;  %v6716_v2 = vpack.c.bf16 %v2272_v1, %v2272_v1  ;;  %v7405_v7 = vld [vmem:[#allocation3 + $0xf8] ss:$36 sps:$4 sm:$0xff]   ;;  %v7409_v10 = vld [vmem:[#allocation3 + $0x140] ss:$36 sps:$4 sm:$0xff]  }
 0x160   : > { %6849 = vmatprep.subr.bf16.mxu1 %v7516_v16  ;;  %v7455_v47 = vld [vmem:[#allocation3 + $0x4d8] ss:$36 sps:$4 sm:$0xff]  }
 0x161   : > { %2458 = vst [vmem:[#allocation3 + $0x530] sm:$0xf] %v6716_v2  ;;  %v2641_v46 = vld [vmem:[#allocation3 + $0x520] sm:$0xff] }
 0x162   : > { %v6304_v49 = vcombine.high %v2641_v46, %v2641_v46 }
 0x163   : > { %6865 = vmatpush1.bf16.msra.mxu1 %v7476_v23  ;;  %v6301_v23 = vcombine.low %v2640_v19, %v2640_v19 }
 0x164   : > { %6850 = vmatprep.subr.bf16.mxu1 %v7516_v16 }
 0x165   : > { %4353 = vmatmul.mubr.bf16.gmra.mrb[28].mxu1 %v7376_v11  ;;  %v7410_v11 = vld [vmem:[#allocation3 + $0x444] ss:$36 sps:$4 sm:$0xff]  }
 0x166   : > { %4793 = vmatmul.mubr.bf16.gmra.mrb[64].mxu0 %v7377_v15  ;;  %4360 = vmatprep.mubr.bf16.mxu1 %v7379_v17  ;;  %v7416_v15 = vld [vmem:[#allocation3 + $0x488] ss:$36 sps:$4 sm:$0xff]   ;;  %v7417_v17 = vld [vmem:[#allocation3 + $0x1d0] ss:$36 sps:$4 sm:$0xff]  }
 0x167   : > { %4800 = vmatprep.mubr.bf16.mxu0 %v7381_v22  ;;  %6866 = vmatpush1.bf16.msra.mxu1 %v7477_v25  ;;  %v6302_v22 = vcombine.high %v2640_v19, %v2640_v19  ;;  %v7427_v25 = vld [vmem:[#allocation3 + $0x2e4] ss:$36 sps:$4 sm:$0xff]  }
 0x168   : > { %6851 = vmatprep.subr.bf16.mxu1 %v7516_v16  ;;  %v7388_v16 = vld [vmem:[#allocation3 + $0x290] ss:$36 sps:$4 sm:$0xff]   ;;  %v7459_v55 = vld [vmem:[#allocation3 + $0x4e8] ss:$36 sps:$4 sm:$0xff]  }
 0x169   : > { %v7460_v60 = vld [vmem:[#allocation3 + $0x530] ss:$0 sps:$4 sm:$0xff]  }
 0x16b   : > { %6867 = vmatpush1.bf16.msra.mxu1 %v7478_v38  ;;  %v7443_v38 = vld [vmem:[#allocation3 + $0x400] ss:$36 sps:$4 sm:$0xff]  }
 0x16d   : > { %4361 = vmatmul.mubr.bf16.gmra.mrb[32].mxu1 %v7383_v26  ;;  %v7425_v26 = vld [vmem:[#allocation3 + $0x2e0] ss:$36 sps:$4 sm:$0xff]  }
 0x16e   : > { %4801 = vmatmul.mubr.bf16.gmra.mrb[68].mxu0 %v7384_v31  ;;  %4368 = vmatprep.mubr.bf16.mxu1 %v7385_v32  ;;  %v7433_v31 = vld [vmem:[#allocation3 + $0x374] ss:$36 sps:$4 sm:$0xff]  }
 0x16f   : > { %4808 = vmatprep.mubr.bf16.mxu0 %v6306_v37  ;;  %v7435_v32 = vld [vmem:[#allocation3 + $0x370] ss:$36 sps:$4 sm:$0xff]   ;;  %v7441_v37 = vld [vmem:[#allocation3 + $0x404] ss:$36 sps:$4 sm:$0xff]  }
 0x175   : > { %4369 = vmatmul.mubr.bf16.gmra.mrb[36].mxu1 %v7388_v16  ;;  %v7445_v16 = vld [vmem:[#allocation3 + $0x44c] ss:$36 sps:$4 sm:$0xff]  }
 0x176   : > { %4809 = vmatmul.mubr.bf16.gmra.mrb[72].mxu0 %v6305_v43  ;;  %4376 = vmatprep.mubr.bf16.mxu1 %v7390_v44  ;;  %v7451_v43 = vld [vmem:[#allocation3 + $0x490] ss:$36 sps:$4 sm:$0xff]   ;;  %v7452_v44 = vld [vmem:[#allocation3 + $0x458] ss:$36 sps:$4 sm:$0xff]  }
 0x177   : > { %6760 = vmatprep.mubr.msk.bf16.mxu0 %vm7518_vm0, %v7517_v54 }
 0x17d   : > { %4377 = vmatmul.mubr.bf16.gmra.mrb[40].mxu1 %v7392_v52  ;;  %v6303_v52 = vcombine.low %v2641_v46, %v2641_v46 }
 0x17e   : > { %6761 = vmatmul.mubr.bf16.vlgmr.msra.gmra.mrb[0].mxu0 %v7393_v53  ;;  %4384 = vmatprep.mubr.bf16.mxu1 %v7394_v57 }
 0x17f   : > { %6764 = vmatprep.mubr.msk.bf16.mxu0 %vm7518_vm0, %v7517_v54 }
 0x185   : > { %4385 = vmatmul.mubr.bf16.gmra.mrb[44].mxu1 %v7396_v62 }
 0x186   : > { %6765 = vmatmul.mubr.bf16.gmra.mrb[4].mxu0 %v7397_v63  ;;  %4392 = vmatprep.mubr.bf16.mxu1 %v7398_v0 }
 0x187   : > { %6768 = vmatprep.mubr.msk.bf16.mxu0 %vm7518_vm0, %v7517_v54 }
 0x18d   : > { %4393 = vmatmul.mubr.bf16.gmra.mrb[48].mxu1 %v7400_v3 }
 0x18e   : > { %6769 = vmatmul.mubr.bf16.gmra.mrb[8].mxu0 %v7401_v4  ;;  %4400 = vmatprep.mubr.bf16.mxu1 %v7402_v5 }
 0x18f   : > { %6772 = vmatprep.mubr.msk.bf16.mxu0 %vm7518_vm0, %v7517_v54 }
 0x195   : > { %4401 = vmatmul.mubr.bf16.gmra.mrb[52].mxu1 %v7404_v6 }
 0x196   : > { %6773 = vmatmul.mubr.bf16.gmra.mrb[12].mxu0 %v7405_v7  ;;  %4408 = vmatprep.mubr.bf16.mxu1 %v7406_v8 }
 0x197   : > { %6776 = vmatprep.mubr.msk.bf16.mxu0 %vm7518_vm0, %v7517_v54 }
 0x19d   : > { %4409 = vmatmul.mubr.bf16.gmra.mrb[56].mxu1 %v7408_v9 }
 0x19e   : > { %6777 = vmatmul.mubr.bf16.gmra.mrb[16].mxu0 %v7409_v10  ;;  %4416 = vmatprep.mubr.bf16.mxu1 %v7410_v11 }
 0x19f   : > { %6780 = vmatprep.mubr.msk.bf16.mxu0 %vm7518_vm0, %v7517_v54 }
 0x1a5   : > { %4417 = vmatmul.mubr.bf16.gmra.mrb[60].mxu1 %v7412_v12 }
 0x1a6   : > { %6781 = vmatmul.mubr.bf16.gmra.mrb[20].mxu0 %v7413_v13  ;;  %4424 = vmatprep.mubr.bf16.mxu1 %v7414_v14 }
 0x1a7   : > { %6784 = vmatprep.mubr.msk.bf16.mxu0 %vm7518_vm0, %v7517_v54 }
 0x1ad   : > { %4425 = vmatmul.mubr.bf16.gmra.mrb[64].mxu1 %v7416_v15 }
 0x1ae   : > { %6785 = vmatmul.mubr.bf16.gmra.mrb[24].mxu0 %v7417_v17  ;;  %4432 = vmatprep.mubr.bf16.mxu1 %v7418_v18 }
 0x1af   : > { %6788 = vmatprep.mubr.msk.bf16.mxu0 %vm7518_vm0, %v7517_v54 }
 0x1b5   : > { %4433 = vmatmul.mubr.bf16.gmra.mrb[68].mxu1 %v7420_v20 }
 0x1b6   : > { %6789 = vmatmul.mubr.bf16.gmra.mrb[28].mxu0 %v7421_v21  ;;  %4440 = vmatprep.mubr.bf16.mxu1 %v6302_v22 }
 0x1b7   : > { %6792 = vmatprep.mubr.msk.bf16.mxu0 %vm7518_vm0, %v7517_v54 }
 0x1bd   : > { %4441 = vmatmul.mubr.bf16.gmra.mrb[72].mxu1 %v6301_v23 }
 0x1be   : > { %6793 = vmatmul.mubr.bf16.gmra.mrb[32].mxu0 %v7424_v24  ;;  %4560 = vmatprep.mubr.bf16.mxu1 %v7427_v25 }
 0x1bf   : > { %6796 = vmatprep.mubr.msk.bf16.mxu0 %vm7518_vm0, %v7517_v54 }
 0x1c5   : > { %4561 = vmatmul.mubr.bf16.vlgmr.msra.gmra.mrb[40].mxu1 %v7425_v26 }
 0x1c6   : > { %6797 = vmatmul.mubr.bf16.gmra.mrb[36].mxu0 %v7428_v27  ;;  %4568 = vmatprep.mubr.bf16.mxu1 %v7429_v28 }
 0x1c7   : > { %6800 = vmatprep.mubr.msk.bf16.mxu0 %vm7518_vm0, %v7517_v54 }
 0x1cd   : > { %4569 = vmatmul.mubr.bf16.gmra.mrb[44].mxu1 %v7431_v29 }
 0x1ce   : > { %6801 = vmatmul.mubr.bf16.gmra.mrb[40].mxu0 %v7432_v30  ;;  %4576 = vmatprep.mubr.bf16.mxu1 %v7433_v31 }
 0x1cf   : > { %6804 = vmatprep.mubr.msk.bf16.mxu0 %vm7518_vm0, %v7517_v54 }
 0x1d5   : > { %4577 = vmatmul.mubr.bf16.gmra.mrb[48].mxu1 %v7435_v32 }
 0x1d6   : > { %6805 = vmatmul.mubr.bf16.gmra.mrb[44].mxu0 %v7436_v33  ;;  %4584 = vmatprep.mubr.bf16.mxu1 %v7437_v34 }
 0x1d7   : > { %6808 = vmatprep.mubr.msk.bf16.mxu0 %vm7518_vm0, %v7517_v54 }
 0x1dd   : > { %4585 = vmatmul.mubr.bf16.gmra.mrb[52].mxu1 %v7439_v35 }
 0x1de   : > { %6809 = vmatmul.mubr.bf16.gmra.mrb[48].mxu0 %v7440_v36  ;;  %4592 = vmatprep.mubr.bf16.mxu1 %v7441_v37 }
 0x1df   : > { %6812 = vmatprep.mubr.msk.bf16.mxu0 %vm7518_vm0, %v7517_v54 }
 0x1e5   : > { %4593 = vmatmul.mubr.bf16.gmra.mrb[56].mxu1 %v7443_v38 }
 0x1e6   : > { %6813 = vmatmul.mubr.bf16.gmra.mrb[52].mxu0 %v7444_v39  ;;  %4600 = vmatprep.mubr.bf16.mxu1 %v7445_v16 }
 0x1e7   : > { %6816 = vmatprep.mubr.msk.bf16.mxu0 %vm7518_vm0, %v7517_v54 }
 0x1ed   : > { %4601 = vmatmul.mubr.bf16.gmra.mrb[60].mxu1 %v7447_v40 }
 0x1ee   : > { %6817 = vmatmul.mubr.bf16.gmra.mrb[56].mxu0 %v7448_v41  ;;  %4608 = vmatprep.mubr.bf16.mxu1 %v7449_v42 }
 0x1ef   : > { %6820 = vmatprep.mubr.msk.bf16.mxu0 %vm7518_vm0, %v7517_v54 }
 0x1f5   : > { %4609 = vmatmul.mubr.bf16.gmra.mrb[64].mxu1 %v7451_v43 }
 0x1f6   : > { %6821 = vmatmul.mubr.bf16.gmra.mrb[60].mxu0 %v7452_v44  ;;  %4616 = vmatprep.mubr.bf16.mxu1 %v7453_v45 }
 0x1f7   : > { %6824 = vmatprep.mubr.msk.bf16.mxu0 %vm7518_vm0, %v7517_v54 }
 0x1fd   : > { %4617 = vmatmul.mubr.bf16.gmra.mrb[68].mxu1 %v7455_v47 }
 0x1fe   : > { %6825 = vmatmul.mubr.bf16.gmra.mrb[64].mxu0 %v7456_v48  ;;  %4624 = vmatprep.mubr.bf16.mxu1 %v6304_v49 }
 0x1ff   : > { %6828 = vmatprep.mubr.msk.bf16.mxu0 %vm7518_vm0, %v7517_v54 }
 0x200   : > { %v4298_v50 = vpop.f32.mrb[0].mxu1 }
 0x201   : > { %v4300_v51 = vpop.f32.mrb[1].mxu1 }
 0x202   : > { %v4301_v53 = vpop.f32.mrb[2].mxu1 }
 0x203   : > { %v4303_v56 = vpop.f32.mrb[3].mxu1 }
 0x205   : > { %4625 = vmatmul.mubr.bf16.gmra.mrb[72].mxu1 %v6303_v52 }
 0x206   : > { %6829 = vmatmul.mubr.bf16.gmra.mrb[68].mxu0 %v7459_v55 }
 0x207   : > { %6832 = vmatprep.mubr.msk.bf16.mxu0 %vm7518_vm0, %v7517_v54 }
 0x208   : > { %v4306_v57 = vpop.f32.mrb[4].mxu1 }
 0x209   : > { %v4308_v58 = vpop.f32.mrb[5].mxu1 }
 0x20a   : > { %v4309_v59 = vpop.f32.mrb[6].mxu1 }
 0x20b   : > { %v4311_v61 = vpop.f32.mrb[7].mxu1 }
 0x20c   : > { %v7971_v61 = vld [vmem:[%s8976_s1] sm:$0xff] }
 0x20e   : > { %6833 = vmatmul.mubr.bf16.gmra.mrb[72].mxu0 %v7460_v60  ;;  %v7966_v60 = vld [vmem:[%s8976_s1 + $0x8] sm:$0xff] }
 0x210   : > { %v4314_v62 = vpop.f32.mrb[8].mxu1 }
 0x211   : > { %v4316_v63 = vpop.f32.mrb[9].mxu1 }
 0x212   : > { %v4317_v0 = vpop.f32.mrb[10].mxu1 }
 0x213   : > { %v4319_v1 = vpop.f32.mrb[11].mxu1 }
 0x218   : > { %v4322_v2 = vpop.f32.mrb[12].mxu1 }
 0x219   : > { %v4324_v3 = vpop.f32.mrb[13].mxu1 }
 0x21a   : > { %v4325_v4 = vpop.f32.mrb[14].mxu1 }
 0x21b   : > { %v4327_v5 = vpop.f32.mrb[15].mxu1 }
 0x220   : > { %v4330_v6 = vpop.f32.mrb[16].mxu1 }
 0x221   : > { %v4332_v7 = vpop.f32.mrb[17].mxu1 }
 0x222   : > { %v4333_v8 = vpop.f32.mrb[18].mxu1 }
 0x223   : > { %v4335_v9 = vpop.f32.mrb[19].mxu1 }
 0x228   : > { %v4338_v10 = vpop.f32.mrb[20].mxu1 }
 0x229   : > { %v4340_v54 = vpop.f32.mrb[21].mxu1 }
 0x22a   : > { %v4341_v11 = vpop.f32.mrb[22].mxu1 }
 0x22b   : > { %v4343_v12 = vpop.f32.mrb[23].mxu1 }
 0x230   : > { %v7927_v13 = vpop.f32.mrb[24].mxu1 }
 0x231   : > { %v4348_v14 = vpop.f32.mrb[25].mxu1 }
 0x232   : > { %v7929_v15 = vpop.f32.mrb[26].mxu1 }
 0x233   : > { %v4351_v17 = vpop.f32.mrb[27].mxu1 }
 0x238   : > { %v7931_v18 = vpop.f32.mrb[28].mxu1 }
 0x239   : > { %v4356_v19 = vpop.f32.mrb[29].mxu1 }
 0x23a   : > { %v7933_v20 = vpop.f32.mrb[30].mxu1 }
 0x23b   : > { %v4359_v21 = vpop.f32.mrb[31].mxu1 }
 0x23c   : > { %v8008_v21 = vld [vmem:[%s8976_s1 + $0x28] sm:$0xff] }
 0x240   : > { %v7935_v22 = vpop.f32.mrb[32].mxu1 }
 0x241   : > { %v4364_v23 = vpop.f32.mrb[33].mxu1 }
 0x242   : > { %v7937_v24 = vpop.f32.mrb[34].mxu1 }
 0x243   : > { %v4367_v25 = vpop.f32.mrb[35].mxu1 }
 0x248   : > { %v7939_v26 = vpop.f32.mrb[36].mxu1 }
 0x249   : > { %v4372_v27 = vpop.f32.mrb[37].mxu1 }
 0x24a   : > { %v7941_v28 = vpop.f32.mrb[38].mxu1 }
 0x24b   : > { %v4375_v29 = vpop.f32.mrb[39].mxu1 }
 0x251   : > { %v4850_v30 = vpop.f32.mrb[0].mxu0 }
 0x252   : > { %v7943_v31 = vadd.f32 %v4850_v30, %v4298_v50  ;;  %v6762_v32 = vpop.f32.mrb[1].mxu0  ;;  %v8016_v30 = vld [vmem:[%s8976_s1 + $0x30] sm:$0xff] }
 0x253   : > { %v4853_v33 = vpop.f32.mrb[2].mxu0 }
 0x254   : > { %v7945_v34 = vadd.f32 %v4853_v33, %v4301_v53  ;;  %v6763_v35 = vpop.f32.mrb[3].mxu0 }
 0x255   : > { %v8025_v35 = vld [vmem:[%s8976_s1 + $0x38] sm:$0xff] }
 0x259   : > { %v4858_v36 = vpop.f32.mrb[4].mxu0 }
 0x25a   : > { %v7947_v37 = vadd.f32 %v4858_v36, %v4306_v57  ;;  %v6766_v38 = vpop.f32.mrb[5].mxu0 }
 0x25b   : > { %v4861_v39 = vpop.f32.mrb[6].mxu0 }
 0x25c   : > { %v7949_v16 = vadd.f32 %v4861_v39, %v4309_v59  ;;  %v6767_v40 = vpop.f32.mrb[7].mxu0 }
 0x25d   : > { %v8033_v40 = vld [vmem:[%s8976_s1 + $0x40] sm:$0xff] }
 0x261   : > { %v4866_v41 = vpop.f32.mrb[8].mxu0 }
 0x262   : > { %v7951_v42 = vadd.f32 %v4866_v41, %v4314_v62  ;;  %v6770_v43 = vpop.f32.mrb[9].mxu0  ;;  %v7976_v62 = vld [vmem:[%s8976_s1 + $0x10] sm:$0xff] }
 0x263   : > { %v4869_v44 = vpop.f32.mrb[10].mxu0  ;;  %v5113_v5 = vmul.f32 %v7947_v37, %v7976_v62 }
 0x264   : > { %v7953_v45 = vadd.f32 %v4869_v44, %v4317_v0  ;;  %v6771_v46 = vpop.f32.mrb[11].mxu0  ;;  %v5112_v0 = vmul.f32 %v7945_v34, %v7966_v60 }
 0x269   : > { %v4874_v47 = vpop.f32.mrb[12].mxu0 }
 0x26a   : > { %v7955_v48 = vadd.f32 %v4874_v47, %v4322_v2  ;;  %v6774_v49 = vpop.f32.mrb[13].mxu0 }
 0x26b   : > { %v4877_v50 = vpop.f32.mrb[14].mxu0 }
 0x26c   : > { %v7957_v51 = vadd.f32 %v4877_v50, %v4325_v4  ;;  %v6775_v52 = vpop.f32.mrb[15].mxu0  ;;  %v5111_v4 = vmul.f32 %v7943_v31, %v7971_v61  ;;  %v5117_v33 = vmul.f32 %v7955_v48, %v8016_v30 }
 0x26d   : > { %v8050_v52 = vld [vmem:[%s8976_s1 + $0x50] sm:$0xff] }
 0x26e   : > { %v5148_v9 = vadd.f32 %v5112_v0, %v5111_v4  ;;  %v5118_v44 = vmul.f32 %v7957_v51, %v8025_v35  ;;  %v8065_v4 = vld [vmem:[%s8976_s1 + $0x58] sm:$0xff] }
 0x270   : > { %v5149_v54 = vadd.f32 %v5148_v9, %v5113_v5 }
 0x271   : > { %v4882_v53 = vpop.f32.mrb[16].mxu0 }
 0x272   : > { %v7959_v55 = vadd.f32 %v4882_v53, %v4330_v6  ;;  %v6778_v56 = vpop.f32.mrb[17].mxu0 }
 0x273   : > { %v4885_v57 = vpop.f32.mrb[18].mxu0 }
 0x274   : > { %v7961_v58 = vadd.f32 %v4885_v57, %v4333_v8  ;;  %v6779_v59 = vpop.f32.mrb[19].mxu0  ;;  %v7991_v8 = vld [vmem:[%s8976_s1 + $0x18] sm:$0xff]  ;;  %v5119_v49 = vmul.f32 %v7959_v55, %v8033_v40 }
 0x275   : > { %v5114_v12 = vmul.f32 %v7949_v16, %v7991_v8 }
 0x277   : > { %v5150_v25 = vadd.f32 %v5149_v54, %v5114_v12 }
 0x279   : > { %v4890_v63 = vpop.f32.mrb[20].mxu0 }
 0x27a   : > { %v7980_v1 = vadd.f32 %v4890_v63, %v4338_v10  ;;  %v6782_v2 = vpop.f32.mrb[21].mxu0  ;;  %v7996_v10 = vld [vmem:[%s8976_s1 + $0x20] sm:$0xff] }
 0x27b   : > { %v4893_v3 = vpop.f32.mrb[22].mxu0 }
 0x27c   : > { %v7986_v6 = vadd.f32 %v4893_v3, %v4341_v11  ;;  %v6783_v7 = vpop.f32.mrb[23].mxu0  ;;  %v5115_v11 = vmul.f32 %v7951_v42, %v7996_v10  ;;  %v5121_v0 = vmul.f32 %v7980_v1, %v8050_v52 }
 0x27e   : > { %v5151_v32 = vadd.f32 %v5150_v25, %v5115_v11  ;;  %v5122_v9 = vmul.f32 %v7986_v6, %v8065_v4  ;;  %v8082_v25 = vld [vmem:[%s8976_s1 + $0x68] sm:$0xff] }
 0x281   : > { %v4898_v14 = vpop.f32.mrb[24].mxu0 }
 0x282   : > { %v8003_v17 = vadd.f32 %v4898_v14, %v7927_v13  ;;  %v6786_v19 = vpop.f32.mrb[25].mxu0  ;;  %v5116_v13 = vmul.f32 %v7953_v45, %v8008_v21 }
 0x283   : > { %v4901_v23 = vpop.f32.mrb[26].mxu0 }
 0x284   : > { %v8011_v27 = vadd.f32 %v4901_v23, %v7929_v15  ;;  %v6787_v29 = vpop.f32.mrb[27].mxu0  ;;  %v5152_v36 = vadd.f32 %v5151_v32, %v5116_v13 }
 0x286   : > { %v5153_v43 = vadd.f32 %v5152_v36, %v5117_v33  ;;  %v8090_v36 = vld [vmem:[%s8976_s1 + $0x70] sm:$0xff] }
 0x288   : > { %v5154_v50 = vadd.f32 %v5153_v43, %v5118_v44  ;;  %v8099_v44 = vld [vmem:[%s8976_s1 + $0x78] sm:$0xff] }
 0x289   : > { %v4906_v15 = vpop.f32.mrb[28].mxu0 }
 0x28a   : > { %v8028_v38 = vadd.f32 %v4906_v15, %v7931_v18  ;;  %v6790_v39 = vpop.f32.mrb[29].mxu0  ;;  %v8045_v18 = vld [vmem:[%s8976_s1 + $0x48] sm:$0xff]  ;;  %v5155_v56 = vadd.f32 %v5154_v50, %v5119_v49 }
 0x28b   : > { %v4909_v41 = vpop.f32.mrb[30].mxu0  ;;  %v5124_v39 = vmul.f32 %v8011_v27, %v8082_v25 }
 0x28c   : > { %v8038_v46 = vadd.f32 %v4909_v41, %v7933_v20  ;;  %v6791_v47 = vpop.f32.mrb[31].mxu0  ;;  %v5120_v20 = vmul.f32 %v7961_v58, %v8045_v18  ;;  %v5125_v41 = vmul.f32 %v8028_v38, %v8090_v36 }
 0x28e   : > { %v5156_v5 = vadd.f32 %v5155_v56, %v5120_v20  ;;  %v8106_v20 = vld [vmem:[%s8976_s1 + $0x80] sm:$0xff] }
 0x290   : > { %v5157_v7 = vadd.f32 %v5156_v5, %v5121_v0 }
 0x291   : > { %v4914_v53 = vpop.f32.mrb[32].mxu0 }
 0x292   : > { %v8055_v57 = vadd.f32 %v4914_v53, %v7935_v22  ;;  %v6794_v59 = vpop.f32.mrb[33].mxu0  ;;  %v8070_v22 = vld [vmem:[%s8976_s1 + $0x60] sm:$0xff]  ;;  %v5158_v13 = vadd.f32 %v5157_v7, %v5122_v9 }
 0x293   : > { %v4917_v63 = vpop.f32.mrb[34].mxu0  ;;  %v5123_v14 = vmul.f32 %v8003_v17, %v8070_v22 }
 0x294   : > { %v8060_v2 = vadd.f32 %v4917_v63, %v7937_v24  ;;  %v6795_v3 = vpop.f32.mrb[35].mxu0  ;;  %v5127_v9 = vmul.f32 %v8055_v57, %v8106_v20 }
 0x295   : > { %v5126_v3 = vmul.f32 %v8038_v46, %v8099_v44 }
 0x298   : > { %v4562_v54 = vpop.f32.mrb[40].mxu1 }
 0x299   : > { %v4922_v12 = vpop.f32.mrb[36].mxu0  ;;  %v4564_v24 = vpop.f32.mrb[41].mxu1 }
 0x29a   : > { %v8077_v11 = vadd.f32 %v4922_v12, %v7939_v26  ;;  %v6798_v19 = vpop.f32.mrb[37].mxu0  ;;  %v4565_v23 = vpop.f32.mrb[42].mxu1  ;;  %v5159_v26 = vadd.f32 %v5158_v13, %v5123_v14  ;;  %v8122_v14 = vld [vmem:[%s8976_s1 + $0x90] sm:$0xff] }
 0x29b   : > { %v4925_v29 = vpop.f32.mrb[38].mxu0  ;;  %v4567_v32 = vpop.f32.mrb[43].mxu1 }
 0x29c   : > { %v8085_v33 = vadd.f32 %v4925_v29, %v7941_v28  ;;  %v6799_v15 = vpop.f32.mrb[39].mxu0  ;;  %v5160_v49 = vadd.f32 %v5159_v26, %v5124_v39 }
 0x29e   : > { %v5161_v0 = vadd.f32 %v5160_v49, %v5125_v41 }
 0x2a0   : > { %v4570_v43 = vpop.f32.mrb[44].mxu1  ;;  %v5162_v12 = vadd.f32 %v5161_v0, %v5126_v3 }
 0x2a1   : > { %v4930_v28 = vpop.f32.mrb[40].mxu0  ;;  %v4572_v47 = vpop.f32.mrb[45].mxu1 }
 0x2a2   : > { %v8101_v50 = vadd.f32 %v4930_v28, %v4562_v54  ;;  %v6802_v53 = vpop.f32.mrb[41].mxu0  ;;  %v4573_v56 = vpop.f32.mrb[46].mxu1  ;;  %v8117_v54 = vld [vmem:[%s8976_s1 + $0x88] sm:$0xff]  ;;  %v5129_v28 = vmul.f32 %v8077_v11, %v8122_v14 }
 0x2a3   : > { %v4933_v59 = vpop.f32.mrb[42].mxu0  ;;  %v4575_v63 = vpop.f32.mrb[47].mxu1  ;;  %v5128_v32 = vmul.f32 %v8060_v2, %v8117_v54  ;;  %v8135_v53 = vld [vmem:[%s8976_s1 + $0x98] sm:$0xff] }
 0x2a4   : > { %v8110_v5 = vadd.f32 %v4933_v59, %v4565_v23  ;;  %v6803_v7 = vpop.f32.mrb[43].mxu0  ;;  %v5163_v23 = vadd.f32 %v5162_v12, %v5127_v9  ;;  %9030 = vst [vmem:[#allocation7_spill] sm:$0xff] %v8135_v53  ;;  %v5130_v0 = vmul.f32 %v8085_v33, %v8135_v53 }
 0x2a6   : > { %v5164_v59 = vadd.f32 %v5163_v23, %v5128_v32  ;;  %v8151_v23 = vld [vmem:[%s8976_s1 + $0xa8] sm:$0xff] }
 0x2a7   : > { %9033 = vst [vmem:[#allocation10_spill] sm:$0xff] %v8151_v23 }
 0x2a8   : > { %v4578_v24 = vpop.f32.mrb[48].mxu1  ;;  %v5165_v63 = vadd.f32 %v5164_v59, %v5129_v28  ;;  %v5132_v59 = vmul.f32 %v8110_v5, %v8151_v23 }
 0x2a9   : > { %v4938_v19 = vpop.f32.mrb[44].mxu0  ;;  %v4580_v29 = vpop.f32.mrb[49].mxu1 }
 0x2aa   : > { %v8126_v13 = vadd.f32 %v4938_v19, %v4570_v43  ;;  %v6806_v15 = vpop.f32.mrb[45].mxu0  ;;  %v4581_v26 = vpop.f32.mrb[50].mxu1  ;;  %v8140_v43 = vld [vmem:[%s8976_s1 + $0xa0] sm:$0xff] }
 0x2ab   : > { %v4941_v39 = vpop.f32.mrb[46].mxu0  ;;  %v4583_v41 = vpop.f32.mrb[51].mxu1  ;;  %9031 = vst [vmem:[#allocation8_spill] sm:$0xff] %v8140_v43  ;;  %v5131_v9 = vmul.f32 %v8101_v50, %v8140_v43 }
 0x2ac   : > { %9029 = vst [vmem:[#allocation6_spill] sm:$0xff] %v8126_v13  ;;  %v8130_v47 = vadd.f32 %v4941_v39, %v4573_v56  ;;  %v6807_v49 = vpop.f32.mrb[47].mxu0  ;;  %v5166_v39 = vadd.f32 %v5165_v63, %v5130_v0  ;;  %v8167_v63 = vld [vmem:[%s8976_s1 + $0xb8] sm:$0xff] }
 0x2ad   : > { %v8158_v49 = vld [vmem:[%s8976_s1 + $0xb0] sm:$0xff]  ;;  %9035 = vst [vmem:[#allocation12_spill] sm:$0xff] %v8167_v63 }
 0x2ae   : > { %9034 = vst [vmem:[#allocation11_spill] sm:$0xff] %v8158_v49  ;;  %v5134_v43 = vmul.f32 %v8130_v47, %v8167_v63 }
 0x2b0   : > { %v4586_v3 = vpop.f32.mrb[52].mxu1 }
 0x2b1   : > { %v4946_v7 = vpop.f32.mrb[48].mxu0  ;;  %v4588_v56 = vpop.f32.mrb[53].mxu1 }
 0x2b2   : > { %v8146_v12 = vadd.f32 %v4946_v7, %v4578_v24  ;;  %v6810_v19 = vpop.f32.mrb[49].mxu0  ;;  %v4589_v29 = vpop.f32.mrb[54].mxu1  ;;  %v5167_v24 = vadd.f32 %v5166_v39, %v5131_v9  ;;  %v5133_v7 = vmul.f32 %v8126_v13, %v8158_v49  ;;  %v8174_v9 = vld [vmem:[%s8976_s1 + $0xc0] sm:$0xff] }
 0x2b3   : > { %v4949_v32 = vpop.f32.mrb[50].mxu0  ;;  %v4591_v15 = vpop.f32.mrb[55].mxu1  ;;  %9037 = vst [vmem:[#allocation14_spill] sm:$0xff] %v8174_v9 }
 0x2b4   : > { %9032 = vst [vmem:[#allocation9_spill] sm:$0xff] %v8146_v12  ;;  %v8153_v41 = vadd.f32 %v4949_v32, %v4581_v26  ;;  %v6811_v28 = vpop.f32.mrb[51].mxu0  ;;  %v5168_v19 = vadd.f32 %v5167_v24, %v5132_v59  ;;  %v8185_v24 = vld [vmem:[%s8976_s1 + $0xc8] sm:$0xff] }
 0x2b5   : > { %9039 = vst [vmem:[#allocation16_spill] sm:$0xff] %v8185_v24 }
 0x2b6   : > { %v5169_v23 = vadd.f32 %v5168_v19, %v5133_v7 }
 0x2b8   : > { %v4594_v56 = vpop.f32.mrb[56].mxu1  ;;  %v5170_v59 = vadd.f32 %v5169_v23, %v5134_v43 }
 0x2b9   : > { %v4954_v26 = vpop.f32.mrb[52].mxu0  ;;  %v4596_v0 = vpop.f32.mrb[57].mxu1 }
 0x2ba   : > { %v8169_v32 = vadd.f32 %v4954_v26, %v4586_v3  ;;  %v6814_v15 = vpop.f32.mrb[53].mxu0  ;;  %v4597_v28 = vpop.f32.mrb[58].mxu1  ;;  %v5135_v3 = vmul.f32 %v8146_v12, %v8174_v9 }
 0x2bb   : > { %v4957_v39 = vpop.f32.mrb[54].mxu0  ;;  %v4599_v49 = vpop.f32.mrb[59].mxu1 }
 0x2bc   : > { %9036 = vst [vmem:[#allocation13_spill] sm:$0xff] %v8169_v32  ;;  %v8178_v13 = vadd.f32 %v4957_v39, %v4589_v29  ;;  %v6815_v53 = vpop.f32.mrb[55].mxu0  ;;  %v8190_v49 = vld [vmem:[%s8976_s1 + $0xd0] sm:$0xff]  ;;  %v5171_v29 = vadd.f32 %v5170_v59, %v5135_v3 }
 0x2bd   : > { %9040 = vst [vmem:[#allocation17_spill] sm:$0xff] %v8190_v49  ;;  %v5136_v53 = vmul.f32 %v8153_v41, %v8185_v24  ;;  %v5137_v43 = vmul.f32 %v8169_v32, %v8190_v49 }
 0x2be   : > { %9038 = vst [vmem:[#allocation15_spill] sm:$0xff] %v8178_v13 }
 0x2bf   : > { %v5172_v3 = vadd.f32 %v5171_v29, %v5136_v53  ;;  %v8219_v29 = vld [vmem:[%s8976_s1 + $0xe8] sm:$0xff] }
 0x2c0   : > { %v4602_v26 = vpop.f32.mrb[60].mxu1  ;;  %9046 = vst [vmem:[#allocation23_spill] sm:$0xff] %v8219_v29 }
 0x2c1   : > { %v4962_v7 = vpop.f32.mrb[56].mxu0  ;;  %v4604_v0 = vpop.f32.mrb[61].mxu1  ;;  %v5173_v59 = vadd.f32 %v5172_v3, %v5137_v43 }
 0x2c2   : > { %v8194_v19 = vadd.f32 %v4962_v7, %v4594_v56  ;;  %v6818_v15 = vpop.f32.mrb[57].mxu0  ;;  %v4605_v39 = vpop.f32.mrb[62].mxu1  ;;  %v8203_v0 = vld [vmem:[%s8976_s1 + $0xd8] sm:$0xff]  ;;  %v8208_v56 = vld [vmem:[%s8976_s1 + $0xe0] sm:$0xff] }
 0x2c3   : > { %v4965_v9 = vpop.f32.mrb[58].mxu0  ;;  %v4607_v63 = vpop.f32.mrb[63].mxu1  ;;  %9043 = vst [vmem:[#allocation20_spill] sm:$0xff] %v8203_v0  ;;  %9044 = vst [vmem:[#allocation21_spill] sm:$0xff] %v8208_v56 }
 0x2c4   : > { %9041 = vst [vmem:[#allocation18_spill] sm:$0xff] %v8194_v19  ;;  %v8198_v23 = vadd.f32 %v4965_v9, %v4597_v28  ;;  %v6819_v12 = vpop.f32.mrb[59].mxu0  ;;  %v5138_v63 = vmul.f32 %v8178_v13, %v8203_v0 }
 0x2c5   : > { %v5139_v12 = vmul.f32 %v8194_v19, %v8208_v56 }
 0x2c6   : > { %9042 = vst [vmem:[#allocation19_spill] sm:$0xff] %v8198_v23  ;;  %v5174_v3 = vadd.f32 %v5173_v59, %v5138_v63  ;;  %v8235_v59 = vld [vmem:[%s8976_s1 + $0xf8] sm:$0xff] }
 0x2c7   : > { %9048 = vst [vmem:[#allocation25_spill] sm:$0xff] %v8235_v59 }
 0x2c8   : > { %v4610_v7 = vpop.f32.mrb[64].mxu1 }
 0x2c9   : > { %v4970_v15 = vpop.f32.mrb[60].mxu0  ;;  %v4612_v28 = vpop.f32.mrb[65].mxu1 }
 0x2ca   : > { %v8214_v9 = vadd.f32 %v4970_v15, %v4602_v26  ;;  %v6822_v49 = vpop.f32.mrb[61].mxu0  ;;  %v4613_v24 = vpop.f32.mrb[66].mxu1  ;;  %v8226_v28 = vld [vmem:[%s8976_s1 + $0xf0] sm:$0xff]  ;;  %v5175_v26 = vadd.f32 %v5174_v3, %v5139_v12  ;;  %v8242_v12 = vld [vmem:[%s8976_s1 + $0x100] sm:$0xff] }
 0x2cb   : > { %v4973_v53 = vpop.f32.mrb[62].mxu0  ;;  %v4615_v43 = vpop.f32.mrb[67].mxu1  ;;  %9047 = vst [vmem:[#allocation24_spill] sm:$0xff] %v8226_v28  ;;  %v5140_v49 = vmul.f32 %v8198_v23, %v8219_v29  ;;  %9050 = vst [vmem:[#allocation27_spill] sm:$0xff] %v8242_v12 }
 0x2cc   : > { %9045 = vst [vmem:[#allocation22_spill] sm:$0xff] %v8214_v9  ;;  %v8221_v32 = vadd.f32 %v4973_v53, %v4605_v39  ;;  %v6823_v0 = vpop.f32.mrb[63].mxu0  ;;  %v5141_v15 = vmul.f32 %v8214_v9, %v8226_v28 }
 0x2cd   : > { %v5176_v63 = vadd.f32 %v5175_v26, %v5140_v49  ;;  %v8253_v26 = vld [vmem:[%s8976_s1 + $0x108] sm:$0xff] }
 0x2ce   : > { %v5142_v9 = vmul.f32 %v8221_v32, %v8235_v59  ;;  %9052 = vst [vmem:[#allocation29_spill] sm:$0xff] %v8253_v26 }
 0x2cf   : > { %v5177_v29 = vadd.f32 %v5176_v63, %v5141_v15 }
 0x2d0   : > { %v4618_v56 = vpop.f32.mrb[68].mxu1 }
 0x2d1   : > { %v4978_v39 = vpop.f32.mrb[64].mxu0  ;;  %v4620_v0 = vpop.f32.mrb[69].mxu1  ;;  %v5178_v49 = vadd.f32 %v5177_v29, %v5142_v9 }
 0x2d2   : > { %v8237_v53 = vadd.f32 %v4978_v39, %v4610_v7  ;;  %v6826_v43 = vpop.f32.mrb[65].mxu0  ;;  %v4621_v19 = vpop.f32.mrb[70].mxu1 }
 0x2d3   : > { %v4981_v3 = vpop.f32.mrb[66].mxu0  ;;  %v4623_v28 = vpop.f32.mrb[71].mxu1 }
 0x2d4   : > { %9049 = vst [vmem:[#allocation26_spill] sm:$0xff] %v8237_v53  ;;  %v8246_v23 = vadd.f32 %v4981_v3, %v4613_v24  ;;  %v6827_v13 = vpop.f32.mrb[67].mxu0  ;;  %v5143_v7 = vmul.f32 %v8237_v53, %v8242_v12  ;;  %v8258_v28 = vld [vmem:[%s8976_s1 + $0x110] sm:$0xff] }
 0x2d5   : > { %9053 = vst [vmem:[#allocation30_spill] sm:$0xff] %v8258_v28 }
 0x2d6   : > { %9051 = vst [vmem:[#allocation28_spill] sm:$0xff] %v8246_v23  ;;  %v5179_v24 = vadd.f32 %v5178_v49, %v5143_v7  ;;  %v5144_v13 = vmul.f32 %v8246_v23, %v8253_v26 }
 0x2d8   : > { %v4626_v39 = vpop.f32.mrb[72].mxu1  ;;  %v5180_v7 = vadd.f32 %v5179_v24, %v5144_v13 }
 0x2d9   : > { %v4986_v0 = vpop.f32.mrb[68].mxu0  ;;  %v4628_v15 = vpop.f32.mrb[73].mxu1 }
 0x2da   : > { %v8262_v63 = vadd.f32 %v4986_v0, %v4618_v56  ;;  %v6830_v43 = vpop.f32.mrb[69].mxu0  ;;  %v4629_v3 = vpop.f32.mrb[74].mxu1  ;;  %v8271_v15 = vld [vmem:[%s8976_s1 + $0x118] sm:$0xff] }
 0x2db   : > { %v4989_v12 = vpop.f32.mrb[70].mxu0  ;;  %v4630_v59 = vpop.f32.mrb[75].mxu1  ;;  %9056 = vst [vmem:[#allocation33_spill] sm:$0xff] %v8271_v15 }
 0x2dc   : > { %9054 = vst [vmem:[#allocation31_spill] sm:$0xff] %v8262_v63  ;;  %v5145_v9 = vmul.f32 %v8262_v63, %v8258_v28  ;;  %v8266_v29 = vadd.f32 %v4989_v12, %v4621_v19  ;;  %v6831_v53 = vpop.f32.mrb[71].mxu0  ;;  %v8278_v59 = vld [vmem:[%s8976_s1 + $0x120] sm:$0xff] }
 0x2dd   : > { %9057 = vst [vmem:[#allocation34_spill] sm:$0xff] %v8278_v59 }
 0x2de   : > { %9055 = vst [vmem:[#allocation32_spill] sm:$0xff] %v8266_v29  ;;  %v5181_v49 = vadd.f32 %v5180_v7, %v5145_v9  ;;  %v5146_v56 = vmul.f32 %v8266_v29, %v8271_v15 }
 0x2e0   : > { %v5182_v12 = vadd.f32 %v5181_v49, %v5146_v56 }
 0x2e1   : > { %v4994_v0 = vpop.f32.mrb[72].mxu0 }
 0x2e2   : > { %v8280_v43 = vadd.f32 %v4994_v0, %v4626_v39  ;;  %v6834_v19 = vpop.f32.mrb[73].mxu0 }
 0x2e3   : > { %v4997_v53 = vpop.f32.mrb[74].mxu0 }
 0x2e4   : > { %9058 = vst [vmem:[#allocation35_spill] sm:$0xff] %v8280_v43  ;;  %v5147_v3 = vmul.f32 %v8280_v43, %v8278_v59  ;;  %v6835_v28 = vpop.f32.mrb[75].mxu0 }
 0x2e6   : > { %v5183_v24 = vadd.f32 %v5182_v12, %v5147_v3 }
 0x2e8   : > { %v5184_v13 = vrot.slane %v5183_v24, 4 }
 0x2ea   : > { %v5185_v9 = vadd.f32 %v5184_v13, %v5183_v24 }
 0x2ec   : > { %v5186_v7 = vrot.slane %v5185_v9, 2 }
 0x2ee   : > { %v5187_v15 = vadd.f32 %v5186_v7, %v5185_v9 }
 0x2f0   : > { %v5188_v26 = vrot.slane %v5187_v15, 1 }
 0x2f2   : > { %v5189_v29 = vadd.f32 %v5188_v26, %v5187_v15 }
 0x2f4   : > { %v8284_v63 = vmul.f32 0.0045454544, %v5189_v29 }
 0x2f6   : > { %v5191_v39 = vsub.f32 %v7943_v31, %v8284_v63  ;;  %v5192_v0 = vsub.f32 %v7945_v34, %v8284_v63  ;;  %v5193_v49 = vsub.f32 %v7947_v37, %v8284_v63  ;;  %v5194_v19 = vsub.f32 %v7949_v16, %v8284_v63 }
 0x2f7   : > { %v5195_v26 = vsub.f32 %v7951_v42, %v8284_v63  ;;  %v5196_v12 = vsub.f32 %v7953_v45, %v8284_v63  ;;  %v5198_v9 = vsub.f32 %v7957_v51, %v8284_v63 }
 0x2f8   : > { %v5228_v28 = vmul.f32 %v5191_v39, %v7971_v61  ;;  %v5229_v56 = vmul.f32 %v5192_v0, %v7966_v60  ;;  %v5230_v29 = vmul.f32 %v5193_v49, %v7976_v62  ;;  %v5231_v3 = vmul.f32 %v5194_v19, %v7991_v8 }
 0x2f9   : > { %v5197_v61 = vsub.f32 %v7955_v48, %v8284_v63  ;;  %v5232_v60 = vmul.f32 %v5195_v26, %v7996_v10  ;;  %v5233_v7 = vmul.f32 %v5196_v12, %v8008_v21  ;;  %v5199_v0 = vsub.f32 %v7959_v55, %v8284_v63 }
 0x2fa   : > { %v5265_v15 = vmul.f32 %v5228_v28, %v5228_v28  ;;  %v5266_v53 = vmul.f32 %v5229_v56, %v5229_v56  ;;  %v5267_v24 = vmul.f32 %v5230_v29, %v5230_v29  ;;  %v5268_v62 = vmul.f32 %v5231_v3, %v5231_v3 }
 0x2fb   : > { %v5234_v49 = vmul.f32 %v5197_v61, %v8016_v30  ;;  %v5269_v8 = vmul.f32 %v5232_v60, %v5232_v60  ;;  %v5200_v56 = vsub.f32 %v7961_v58, %v8284_v63  ;;  %v5235_v10 = vmul.f32 %v5198_v9, %v8025_v35 }
 0x2fc   : > { %v5302_v13 = vadd.f32 %v5266_v53, %v5265_v15  ;;  %v5270_v19 = vmul.f32 %v5233_v7, %v5233_v7  ;;  %v5201_v29 = vsub.f32 %v7980_v1, %v8284_v63  ;;  %v5236_v21 = vmul.f32 %v5199_v0, %v8033_v40 }
 0x2fd   : > { %v5271_v15 = vmul.f32 %v5234_v49, %v5234_v49  ;;  %v5202_v12 = vsub.f32 %v7986_v6, %v8284_v63  ;;  %v5237_v30 = vmul.f32 %v5200_v56, %v8045_v18  ;;  %v5272_v3 = vmul.f32 %v5235_v10, %v5235_v10 }
 0x2fe   : > { %v5303_v39 = vadd.f32 %v5302_v13, %v5267_v24  ;;  %v5203_v60 = vsub.f32 %v8003_v17, %v8284_v63  ;;  %v5238_v35 = vmul.f32 %v5201_v29, %v8050_v52  ;;  %v5273_v24 = vmul.f32 %v5236_v21, %v5236_v21 }
 0x2ff   : > { %v5204_v9 = vsub.f32 %v8011_v27, %v8284_v63  ;;  %v5239_v40 = vmul.f32 %v5202_v12, %v8065_v4  ;;  %v5274_v7 = vmul.f32 %v5237_v30, %v5237_v30  ;;  %v5207_v10 = vsub.f32 %v8055_v57, %v8284_v63 }
 0x300   : > { %v5304_v28 = vadd.f32 %v5303_v39, %v5268_v62  ;;  %v5205_v39 = vsub.f32 %v8028_v38, %v8284_v63  ;;  %v5240_v18 = vmul.f32 %v5203_v60, %v8070_v22  ;;  %v5275_v0 = vmul.f32 %v5238_v35, %v5238_v35 }
 0x301   : > { %v5241_v52 = vmul.f32 %v5204_v9, %v8082_v25  ;;  %v5208_v29 = vsub.f32 %v8060_v2, %v8284_v63  ;;  %v5244_v25 = vmul.f32 %v5207_v10, %v8106_v20  ;;  %v5211_v35 = vsub.f32 %v8101_v50, %v8284_v63  ;;  %v9059_v20 = vld [vmem:[#allocation7_spill] sm:$0xff] }
 0x302   : > { %v5305_v26 = vadd.f32 %v5304_v28, %v5269_v8  ;;  %v5206_v8 = vsub.f32 %v8038_v46, %v8284_v63  ;;  %v5276_v28 = vmul.f32 %v5239_v40, %v5239_v40  ;;  %v5242_v4 = vmul.f32 %v5205_v39, %v8090_v36  ;;  %v9060_v39 = vld [vmem:[#allocation6_spill] sm:$0xff] }
 0x303   : > { %v5278_v21 = vmul.f32 %v5241_v52, %v5241_v52  ;;  %v5245_v36 = vmul.f32 %v5208_v29, %v8117_v54  ;;  %v5212_v9 = vsub.f32 %v8110_v5, %v8284_v63  ;;  %v9061_v54 = vld [vmem:[#allocation8_spill] sm:$0xff]  ;;  %v5214_v52 = vsub.f32 %v8130_v47, %v8284_v63 }
 0x304   : > { %v5306_v53 = vadd.f32 %v5305_v26, %v5270_v19  ;;  %v5277_v19 = vmul.f32 %v5240_v18, %v5240_v18  ;;  %v5243_v22 = vmul.f32 %v5206_v8, %v8099_v44  ;;  %v5279_v12 = vmul.f32 %v5242_v4, %v5242_v4  ;;  %v9063_v4 = vld [vmem:[#allocation9_spill] sm:$0xff] }
 0x305   : > { %v5213_v18 = vsub.f32 %v9060_v39, %v8284_v63 }
 0x306   : > { %v5307_v61 = vadd.f32 %v5306_v53, %v5271_v15  ;;  %v5209_v53 = vsub.f32 %v8077_v11, %v8284_v63 }
 0x308   : > { %v5308_v13 = vadd.f32 %v5307_v61, %v5272_v3  ;;  %v5210_v3 = vsub.f32 %v8085_v33, %v8284_v63  ;;  %v5280_v61 = vmul.f32 %v5243_v22, %v5243_v22  ;;  %v5246_v44 = vmul.f32 %v5209_v53, %v8122_v14  ;;  %v9062_v14 = vld [vmem:[#allocation10_spill] sm:$0xff]  ;;  %v9065_v53 = vld [vmem:[#allocation12_spill] sm:$0xff] }
 0x30a   : > { %v5309_v62 = vadd.f32 %v5308_v13, %v5273_v24  ;;  %v5281_v24 = vmul.f32 %v5244_v25, %v5244_v25  ;;  %v5247_v40 = vmul.f32 %v5210_v3, %v9059_v20  ;;  %v5251_v25 = vmul.f32 %v5214_v52, %v9065_v53  ;;  %v9066_v3 = vld [vmem:[#allocation13_spill] sm:$0xff]  ;;  %v9072_v52 = vld [vmem:[#allocation19_spill] sm:$0xff] }
 0x30c   : > { %v5310_v49 = vadd.f32 %v5309_v62, %v5274_v7  ;;  %v5282_v7 = vmul.f32 %v5245_v36, %v5245_v36  ;;  %v5217_v36 = vsub.f32 %v9066_v3, %v8284_v63 }
 0x30e   : > { %v5311_v56 = vadd.f32 %v5310_v49, %v5275_v0  ;;  %v5248_v0 = vmul.f32 %v5211_v35, %v9061_v54  ;;  %v5283_v49 = vmul.f32 %v5246_v44, %v5246_v44  ;;  %v9071_v54 = vld [vmem:[#allocation17_spill] sm:$0xff] }
 0x310   : > { %v5312_v26 = vadd.f32 %v5311_v56, %v5276_v28  ;;  %v5249_v28 = vmul.f32 %v5212_v9, %v9062_v14  ;;  %v5284_v56 = vmul.f32 %v5247_v40, %v5247_v40  ;;  %v5285_v22 = vmul.f32 %v5248_v0, %v5248_v0  ;;  %v9069_v9 = vld [vmem:[#allocation16_spill] sm:$0xff] }
 0x311   : > { %v5288_v40 = vmul.f32 %v5251_v25, %v5251_v25  ;;  %v5254_v0 = vmul.f32 %v5217_v36, %v9071_v54  ;;  %v5220_v14 = vsub.f32 %v9072_v52, %v8284_v63  ;;  %v5222_v25 = vsub.f32 %v8221_v32, %v8284_v63 }
 0x312   : > { %v5313_v15 = vadd.f32 %v5312_v26, %v5277_v19  ;;  %v5215_v19 = vsub.f32 %v9063_v4, %v8284_v63  ;;  %v9064_v26 = vld [vmem:[#allocation11_spill] sm:$0xff] }
 0x313   : > { %v5250_v29 = vmul.f32 %v5213_v18, %v9064_v26  ;;  %v9074_v26 = vld [vmem:[#allocation22_spill] sm:$0xff] }
 0x314   : > { %v5314_v30 = vadd.f32 %v5313_v15, %v5278_v21  ;;  %v5216_v15 = vsub.f32 %v8153_v41, %v8284_v63 }
 0x315   : > { %v5287_v35 = vmul.f32 %v5250_v29, %v5250_v29  ;;  %v5221_v29 = vsub.f32 %v9074_v26, %v8284_v63 }
 0x316   : > { %v5315_v60 = vadd.f32 %v5314_v30, %v5279_v12  ;;  %v5286_v12 = vmul.f32 %v5249_v28, %v5249_v28  ;;  %v5253_v20 = vmul.f32 %v5216_v15, %v9069_v9  ;;  %v9073_v28 = vld [vmem:[#allocation20_spill] sm:$0xff]  ;;  %v5291_v15 = vmul.f32 %v5254_v0, %v5254_v0 }
 0x318   : > { %v5316_v13 = vadd.f32 %v5315_v60, %v5280_v61  ;;  %v9067_v61 = vld [vmem:[#allocation14_spill] sm:$0xff] }
 0x319   : > { %v5252_v60 = vmul.f32 %v5215_v19, %v9067_v61 }
 0x31a   : > { %v5317_v62 = vadd.f32 %v5316_v13, %v5281_v24  ;;  %v9068_v24 = vld [vmem:[#allocation15_spill] sm:$0xff] }
 0x31b   : > { %v5218_v13 = vsub.f32 %v9068_v24, %v8284_v63 }
 0x31c   : > { %v5318_v8 = vadd.f32 %v5317_v62, %v5282_v7  ;;  %v9070_v62 = vld [vmem:[#allocation18_spill] sm:$0xff] }
 0x31d   : > { %v5219_v18 = vsub.f32 %v9070_v62, %v8284_v63 }
 0x31e   : > { %v5319_v10 = vadd.f32 %v5318_v8, %v5283_v49  ;;  %v5289_v49 = vmul.f32 %v5252_v60, %v5252_v60  ;;  %v9077_v60 = vld [vmem:[#allocation26_spill] sm:$0xff] }
 0x320   : > { %v5320_v21 = vadd.f32 %v5319_v10, %v5284_v56  ;;  %v5255_v56 = vmul.f32 %v5218_v13, %v9073_v28  ;;  %v5290_v10 = vmul.f32 %v5253_v20, %v5253_v20 }
 0x322   : > { %v5321_v30 = vadd.f32 %v5320_v21, %v5285_v22  ;;  %v9075_v22 = vld [vmem:[#allocation21_spill] sm:$0xff]  ;;  %v5292_v36 = vmul.f32 %v5255_v56, %v5255_v56 }
 0x323   : > { %v5256_v21 = vmul.f32 %v5219_v18, %v9075_v22 }
 0x324   : > { %v5322_v44 = vadd.f32 %v5321_v30, %v5286_v12  ;;  %v9076_v12 = vld [vmem:[#allocation23_spill] sm:$0xff] }
 0x325   : > { %v5257_v30 = vmul.f32 %v5220_v14, %v9076_v12  ;;  %v5293_v9 = vmul.f32 %v5256_v21, %v5256_v21  ;;  %v9081_v14 = vld [vmem:[#allocation27_spill] sm:$0xff] }
 0x326   : > { %v5323_v7 = vadd.f32 %v5322_v44, %v5287_v35  ;;  %v5223_v35 = vsub.f32 %v9077_v60, %v8284_v63  ;;  %v9078_v44 = vld [vmem:[#allocation24_spill] sm:$0xff] }
 0x327   : > { %v5258_v13 = vmul.f32 %v5221_v29, %v9078_v44  ;;  %v5294_v54 = vmul.f32 %v5257_v30, %v5257_v30  ;;  %v9083_v29 = vld [vmem:[#allocation29_spill] sm:$0xff] }
 0x328   : > { %v5324_v8 = vadd.f32 %v5323_v7, %v5288_v40  ;;  %v5224_v40 = vsub.f32 %v8246_v23, %v8284_v63  ;;  %v9079_v7 = vld [vmem:[#allocation25_spill] sm:$0xff]  ;;  %v5260_v28 = vmul.f32 %v5223_v35, %v9081_v14 }
 0x329   : > { %v5259_v18 = vmul.f32 %v5222_v25, %v9079_v7  ;;  %v5295_v56 = vmul.f32 %v5258_v13, %v5258_v13  ;;  %v9084_v25 = vld [vmem:[#allocation30_spill] sm:$0xff]  ;;  %v9085_v7 = vld [vmem:[#allocation33_spill] sm:$0xff] }
 0x32a   : > { %v5325_v19 = vadd.f32 %v5324_v8, %v5289_v49  ;;  %v9080_v49 = vld [vmem:[#allocation31_spill] sm:$0xff]  ;;  %v5261_v21 = vmul.f32 %v5224_v40, %v9083_v29 }
 0x32b   : > { %v5225_v8 = vsub.f32 %v9080_v49, %v8284_v63 }
 0x32c   : > { %v5326_v53 = vadd.f32 %v5325_v19, %v5290_v10  ;;  %v9082_v19 = vld [vmem:[#allocation32_spill] sm:$0xff]  ;;  %v5298_v35 = vmul.f32 %v5261_v21, %v5261_v21 }
 0x32d   : > { %v5262_v30 = vmul.f32 %v5225_v8, %v9084_v25  ;;  %v5461_v25 = vld [vmem:[#allocation5 + $0x90] sm:$0xff] }
 0x32e   : > { %v5327_v61 = vadd.f32 %v5326_v53, %v5291_v15  ;;  %v5226_v15 = vsub.f32 %v9082_v19, %v8284_v63  ;;  %v5296_v53 = vmul.f32 %v5259_v18, %v5259_v18  ;;  %v5463_v19 = vld [vmem:[#allocation5 + $0xa0] sm:$0xff] }
 0x330   : > { %v5328_v20 = vadd.f32 %v5327_v61, %v5292_v36  ;;  %v5227_v61 = vsub.f32 %v8280_v43, %v8284_v63  ;;  %v5263_v44 = vmul.f32 %v5226_v15, %v9085_v7  ;;  %v5462_v43 = vld [vmem:[#allocation5 + $0x98] sm:$0xff] }
 0x332   : > { %v5329_v0 = vadd.f32 %v5328_v20, %v5293_v9  ;;  %v5297_v9 = vmul.f32 %v5260_v28, %v5260_v28  ;;  %v5300_v40 = vmul.f32 %v5263_v44, %v5263_v44  ;;  %v5358_v44 = vlaneseq }
 0x334   : > { %v5330_v10 = vadd.f32 %v5329_v0, %v5294_v54  ;;  %v5264_v54 = vmul.f32 %v5227_v61, %v8278_v59  ;;  %v5299_v0 = vmul.f32 %v5262_v30, %v5262_v30  ;;  %v5444_v61 = vld [vmem:[#allocation5 + $0x8] sm:$0xff]  ;;  %v5447_v30 = vld [vmem:[#allocation5 + $0x20] sm:$0xff] }
 0x336   : > { %v5331_v36 = vadd.f32 %v5330_v10, %v5295_v56  ;;  %v5301_v56 = vmul.f32 %v5264_v54, %v5264_v54  ;;  %v8407_v54 = vstv %s6380_s15 }
 0x337   : > { %v8419_v59 = vmul.f32 %v8407_v54, %v5444_v61  ;;  %v5464_v61 = vld [vmem:[#allocation5 + $0xa8] sm:$0xff] }
 0x338   : > { %v5332_v20 = vadd.f32 %v5331_v36, %v5296_v53 }
 0x339   : > { %9088 = vst [vmem:[#allocation6_spill] sm:$0xff] %v8419_v59  ;;  %v5465_v59 = vld [vmem:[#allocation5 + $0xb0] sm:$0xff] }
 0x33a   : > { %v5333_v13 = vadd.f32 %v5332_v20, %v5297_v9  ;;  %v5448_v9 = vld [vmem:[#allocation5 + $0x28] sm:$0xff]  ;;  %v5449_v20 = vld [vmem:[#allocation5 + $0x30] sm:$0xff] }
 0x33b   : > { %v8431_v23 = vmul.f32 %v8407_v54, %v5448_v9  ;;  %v5467_v9 = vld [vmem:[#allocation5 + $0xc0] sm:$0xff] }
 0x33c   : > { %v5334_v14 = vadd.f32 %v5333_v13, %v5298_v35  ;;  %v5450_v35 = vld [vmem:[#allocation5 + $0x38] sm:$0xff]  ;;  %v5451_v13 = vld [vmem:[#allocation5 + $0x40] sm:$0xff] }
 0x33d   : > { %9091 = vst [vmem:[#allocation9_spill] sm:$0xff] %v8431_v23  ;;  %v5468_v23 = vld [vmem:[#allocation5 + $0xc8] sm:$0xff] }
 0x33e   : > { %v5335_v18 = vadd.f32 %v5334_v14, %v5299_v0  ;;  %v5443_v14 = vld [vmem:[#allocation5] sm:$0xff]  ;;  %v5452_v0 = vld [vmem:[#allocation5 + $0x48] sm:$0xff] }
 0x340   : > { %v5336_v10 = vadd.f32 %v5335_v18, %v5300_v40  ;;  %v5453_v40 = vld [vmem:[#allocation5 + $0x50] sm:$0xff]  ;;  %v5454_v18 = vld [vmem:[#allocation5 + $0x58] sm:$0xff] }
 0x342   : > { %v5337_v29 = vadd.f32 %v5336_v10, %v5301_v56  ;;  %v5455_v56 = vld [vmem:[#allocation5 + $0x60] sm:$0xff]  ;;  %v5456_v10 = vld [vmem:[#allocation5 + $0x68] sm:$0xff] }
 0x344   : > { %v5338_v12 = vrot.slane %v5337_v29, 4 }
 0x346   : > { %v5339_v22 = vadd.f32 %v5338_v12, %v5337_v29  ;;  %v5445_v12 = vld [vmem:[#allocation5 + $0x10] sm:$0xff]  ;;  %v5446_v29 = vld [vmem:[#allocation5 + $0x18] sm:$0xff] }
 0x347   : > { %v8422_v7 = vmul.f32 %v8407_v54, %v5445_v12  ;;  %v8425_v49 = vmul.f32 %v8407_v54, %v5446_v29  ;;  %v8437_v12 = vmul.f32 %v8407_v54, %v5450_v35  ;;  %v8443_v29 = vmul.f32 %v8407_v54, %v5452_v0 }
 0x348   : > { %v5340_v8 = vrot.slane %v5339_v22, 2  ;;  %v8455_v35 = vmul.f32 %v8407_v54, %v5456_v10 }
 0x349   : > { %9089 = vst [vmem:[#allocation8_spill] sm:$0xff] %v8422_v7  ;;  %9093 = vst [vmem:[#allocation12_spill] sm:$0xff] %v8437_v12  ;;  %v8440_v7 = vmul.f32 %v8407_v54, %v5451_v13 }
 0x34a   : > { %v5341_v28 = vadd.f32 %v5340_v8, %v5339_v22  ;;  %v8405_v22 = vshrl.u32 %v5358_v44, 7  ;;  %v5457_v8 = vld [vmem:[#allocation5 + $0x70] sm:$0xff]  ;;  %v8416_v44 = vmul.f32 %v8407_v54, %v5443_v14  ;;  %v8434_v14 = vmul.f32 %v8407_v54, %v5449_v20  ;;  %9095 = vst [vmem:[#allocation14_spill] sm:$0xff] %v8443_v29  ;;  %9098 = vst [vmem:[#allocation18_spill] sm:$0xff] %v8455_v35  ;;  %v5470_v29 = vld [vmem:[#allocation5 + $0xd8] sm:$0xff] }
 0x34b   : > { %9094 = vst [vmem:[#allocation13_spill] sm:$0xff] %v8440_v7  ;;  %v8449_v20 = vmul.f32 %v8407_v54, %v5454_v18  ;;  %v8458_v13 = vmul.f32 %v8407_v54, %v5457_v8  ;;  %v5471_v7 = vld [vmem:[#allocation5 + $0xe0] sm:$0xff]  ;;  %v5473_v8 = vld [vmem:[#allocation5 + $0xf0] sm:$0xff] }
 0x34c   : > { %v5342_v53 = vrot.slane %v5341_v28, 1  ;;  %9087 = vst [vmem:[#allocation7_spill] sm:$0xff] %v8416_v44  ;;  %9092 = vst [vmem:[#allocation11_spill] sm:$0xff] %v8434_v14  ;;  %v5466_v44 = vld [vmem:[#allocation5 + $0xb8] sm:$0xff]  ;;  %v8452_v14 = vmul.f32 %v8407_v54, %v5455_v56  ;;  %v8470_v56 = vmul.f32 %v8407_v54, %v5461_v25  ;;  %v5475_v35 = vld [vmem:[#allocation5 + $0x100] sm:$0xff] }
 0x34d   : > { %9099 = vst [vmem:[#allocation17_spill] sm:$0xff] %v8458_v13  ;;  %v5474_v13 = vld [vmem:[#allocation5 + $0xf8] sm:$0xff]  ;;  %v8485_v25 = vmul.f32 %v8407_v54, %v5466_v44 }
 0x34e   : > { %v5343_v15 = vadd.f32 %v5342_v53, %v5341_v28  ;;  %v5345_v28 = vld [vmem:[%s234_s24] sm:$0x1]  ;;  %v8428_v53 = vmul.f32 %v8407_v54, %v5447_v30  ;;  %v8446_v30 = vmul.f32 %v8407_v54, %v5453_v40  ;;  %9097 = vst [vmem:[#allocation16_spill] sm:$0xff] %v8452_v14  ;;  %v5472_v40 = vld [vmem:[#allocation5 + $0xe8] sm:$0xff]  ;;  %v8473_v14 = vmul.f32 %v8407_v54, %v5462_v43 }
 0x34f   : > { %9105 = vst [vmem:[#allocation37_spill] sm:$0xff] %v8485_v25  ;;  %v8491_v43 = vmul.f32 %v8407_v54, %v5468_v23  ;;  %v8508_v23 = vmul.f32 %v8407_v54, %v5471_v7 }
 0x350   : > { %v5344_v21 = vmul.f32 0.0045454544, %v5343_v15  ;;  %v5458_v15 = vld [vmem:[#allocation5 + $0x78] sm:$0xff]  ;;  %9090 = vst [vmem:[#allocation10_spill] sm:$0xff] %v8428_v53  ;;  %9096 = vst [vmem:[#allocation15_spill] sm:$0xff] %v8446_v30  ;;  %v5469_v53 = vld [vmem:[#allocation5 + $0xd0] sm:$0xff] }
 0x351   : > { %v8461_v30 = vmul.f32 %v8407_v54, %v5458_v15  ;;  %v8476_v15 = vmul.f32 %v8407_v54, %v5463_v19  ;;  %9107 = vst [vmem:[#allocation39_spill] sm:$0xff] %v8491_v43  ;;  %v5349_v19 = vld [vmem:[%s237_s27] sm:$0x1]  ;;  %v8502_v44 = vmul.f32 %v8407_v54, %v5469_v53  ;;  %9111 = vst [vmem:[#allocation42_spill] sm:$0xff] %v8508_v23 }
 0x352   : > { %v5346_v36 = vadd.f32 1e-05, %v5344_v21  ;;  %v5459_v21 = vld [vmem:[#allocation5 + $0x80] sm:$0xff]  ;;  %v8511_v43 = vmul.f32 %v8407_v54, %v5472_v40 }
 0x353   : > { %9100 = vst [vmem:[#allocation19_spill] sm:$0xff] %v8461_v30  ;;  %v8464_v12 = vmul.f32 %v8407_v54, %v5459_v21  ;;  %v8479_v21 = vmul.f32 %v8407_v54, %v5464_v61  ;;  %v8482_v30 = vmul.f32 %v8407_v54, %v5465_v59  ;;  %9109 = vst [vmem:[#allocation40_spill] sm:$0xff] %v8502_v44 }
 0x354   : > { %7461 = vrsqrt.f32 %v5346_v36  ;;  %v5460_v36 = vld [vmem:[#allocation5 + $0x88] sm:$0xff]  ;;  %9112 = vst [vmem:[#allocation43_spill] sm:$0xff] %v8511_v43 }
 0x355   : > { %9101 = vst [vmem:[#allocation20_spill] sm:$0xff] %v8464_v12  ;;  %v8467_v18 = vmul.f32 %v8407_v54, %v5460_v36  ;;  %9103 = vst [vmem:[#allocation26_spill] sm:$0xff] %v8479_v21  ;;  %v5476_v12 = vld [vmem:[#allocation5 + $0x108] sm:$0xff]  ;;  %v5477_v36 = vld [vmem:[#allocation5 + $0x110] sm:$0xff] }
 0x356   : > { %9104 = vst [vmem:[#allocation36_spill] sm:$0xff] %v8482_v30  ;;  %v5479_v30 = vld [vmem:[#allocation5 + $0x120] sm:$0xff]  ;;  %v8523_v53 = vmul.f32 %v8407_v54, %v5476_v12 }
 0x357   : > { %9102 = vst [vmem:[#allocation22_spill] sm:$0xff] %v8467_v18  ;;  %v5478_v18 = vld [vmem:[#allocation5 + $0x118] sm:$0xff] }
 0x358   : > { %9116 = vst [vmem:[#allocation47_spill] sm:$0xff] %v8523_v53  ;;  %v8529_v7 = vmul.f32 %v8407_v54, %v5478_v18 }
 0x35a   : > { %9118 = vst [vmem:[#allocation49_spill] sm:$0xff] %v8529_v7 }
 0x35e   : > { %v7462_v0 = vpop.eup %7461 }
 0x35f   : > { %v5348_v10 = vmul.f32 %v7462_v0, %v5345_v28  ;;  %v8488_v28 = vmul.f32 %v8407_v54, %v5467_v9  ;;  %v9108_v0 = vsub.s32 0, %v8405_v22  ;;  %v8505_v9 = vmul.f32 %v8407_v54, %v5470_v29 }
 0x360   : > { %v8526_v29 = vmul.f32 %v8407_v54, %v5477_v36 }
 0x361   : > { %9106 = vst [vmem:[#allocation38_spill] sm:$0xff] %v8488_v28  ;;  %v5350_v61 = vmul.f32 %v5348_v10, %v8284_v63  ;;  %v5361_v59 = vrot.slane %v5348_v10, %v9108_v0  ;;  %9110 = vst [vmem:[#allocation41_spill] sm:$0xff] %v8505_v9  ;;  %v8514_v28 = vmul.f32 %v8407_v54, %v5473_v8 }
 0x362   : > { %v8517_v63 = vmul.f32 %v8407_v54, %v5474_v13  ;;  %v8520_v10 = vmul.f32 %v8407_v54, %v5475_v35  ;;  %9117 = vst [vmem:[#allocation48_spill] sm:$0xff] %v8526_v29  ;;  %v8534_v13 = vmul.f32 %v8407_v54, %v5479_v30 }
 0x363   : > { %9113 = vst [vmem:[#allocation44_spill] sm:$0xff] %v8514_v28  ;;  %v5351_v40 = vsub.f32 %v5349_v19, %v5350_v61  ;;  %v5363_v0 = vmul.f32 %v7943_v31, %v5361_v59  ;;  %v5364_v8 = vmul.f32 %v7945_v34, %v5361_v59  ;;  %v5365_v35 = vmul.f32 %v7947_v37, %v5361_v59 }
 0x364   : > { %9114 = vst [vmem:[#allocation45_spill] sm:$0xff] %v8517_v63  ;;  %9115 = vst [vmem:[#allocation46_spill] sm:$0xff] %v8520_v10  ;;  %v5366_v10 = vmul.f32 %v7949_v16, %v5361_v59  ;;  %v5367_v12 = vmul.f32 %v7951_v42, %v5361_v59  ;;  %v5368_v36 = vmul.f32 %v7953_v45, %v5361_v59 }
 0x365   : > { %9119 = vst [vmem:[#allocation50_spill] sm:$0xff] %v8534_v13  ;;  %v5369_v29 = vmul.f32 %v7955_v48, %v5361_v59  ;;  %v5370_v18 = vmul.f32 %v7957_v51, %v5361_v59  ;;  %v5371_v19 = vmul.f32 %v7959_v55, %v5361_v59  ;;  %v5372_v31 = vmul.f32 %v7961_v58, %v5361_v59 }
 0x366   : > { %v5373_v34 = vmul.f32 %v7980_v1, %v5361_v59  ;;  %v5374_v54 = vmul.f32 %v7986_v6, %v5361_v59  ;;  %v5375_v37 = vmul.f32 %v8003_v17, %v5361_v59  ;;  %v5376_v16 = vmul.f32 %v8011_v27, %v5361_v59 }
 0x367   : > { %v5377_v42 = vmul.f32 %v8028_v38, %v5361_v59  ;;  %v5378_v45 = vmul.f32 %v8038_v46, %v5361_v59  ;;  %v5379_v48 = vmul.f32 %v8055_v57, %v5361_v59  ;;  %v5380_v51 = vmul.f32 %v8060_v2, %v5361_v59 }
 0x368   : > { %v5381_v55 = vmul.f32 %v8077_v11, %v5361_v59  ;;  %v5382_v58 = vmul.f32 %v8085_v33, %v5361_v59  ;;  %v5383_v1 = vmul.f32 %v8101_v50, %v5361_v59  ;;  %v5384_v6 = vmul.f32 %v8110_v5, %v5361_v59 }
 0x369   : > { %v5385_v17 = vmul.f32 %v9060_v39, %v5361_v59  ;;  %v5386_v27 = vmul.f32 %v8130_v47, %v5361_v59  ;;  %v5387_v38 = vmul.f32 %v9063_v4, %v5361_v59  ;;  %v5388_v46 = vmul.f32 %v8153_v41, %v5361_v59  ;;  %v9121_v4 = vld [vmem:[#allocation28_spill] sm:$0xff]  ;;  %v9122_v41 = vld [vmem:[#allocation31_spill] sm:$0xff] }
 0x36a   : > { %v5389_v57 = vmul.f32 %v9066_v3, %v5361_v59  ;;  %v5390_v2 = vmul.f32 %v9068_v24, %v5361_v59  ;;  %v5391_v11 = vmul.f32 %v9070_v62, %v5361_v59  ;;  %v5392_v33 = vmul.f32 %v9072_v52, %v5361_v59  ;;  %v9123_v3 = vld [vmem:[#allocation32_spill] sm:$0xff]  ;;  %v9124_v24 = vld [vmem:[#allocation35_spill] sm:$0xff] }
 0x36b   : > { %v5393_v50 = vmul.f32 %v9074_v26, %v5361_v59  ;;  %v5394_v5 = vmul.f32 %v8221_v32, %v5361_v59  ;;  %v5395_v39 = vmul.f32 %v9077_v60, %v5361_v59  ;;  %v9120_v47 = vsub.s32 0, %v8405_v22 }
 0x36c   : > { %v5396_v61 = vmul.f32 %v9121_v4, %v5361_v59  ;;  %v5397_v13 = vmul.f32 %v9122_v41, %v5361_v59  ;;  %v5398_v7 = vmul.f32 %v9123_v3, %v5361_v59  ;;  %v5399_v53 = vmul.f32 %v9124_v24, %v5361_v59 }
 0x36d   : > { %v5404_v30 = vrot.slane %v5351_v40, %v9120_v47 }
 0x36f   : > { %v5406_v62 = vadd.f32 %v5404_v30, %v5363_v0  ;;  %v5407_v63 = vadd.f32 %v5404_v30, %v5364_v8  ;;  %v5408_v52 = vadd.f32 %v5404_v30, %v5365_v35  ;;  %v5409_v28 = vadd.f32 %v5404_v30, %v5366_v10 }
 0x370   : > { %v5410_v26 = vadd.f32 %v5404_v30, %v5367_v12  ;;  %v5411_v43 = vadd.f32 %v5404_v30, %v5368_v36  ;;  %v5412_v32 = vadd.f32 %v5404_v30, %v5369_v29  ;;  %v5413_v23 = vadd.f32 %v5404_v30, %v5370_v18 }
 0x371   : > { %v5414_v60 = vadd.f32 %v5404_v30, %v5371_v19  ;;  %v5415_v9 = vadd.f32 %v5404_v30, %v5372_v31  ;;  %v5416_v22 = vadd.f32 %v5404_v30, %v5373_v34  ;;  %v5417_v40 = vadd.f32 %v5404_v30, %v5374_v54 }
 0x372   : > { %v5418_v47 = vadd.f32 %v5404_v30, %v5375_v37  ;;  %v5419_v4 = vadd.f32 %v5404_v30, %v5376_v16  ;;  %v5420_v44 = vadd.f32 %v5404_v30, %v5377_v42  ;;  %v5421_v41 = vadd.f32 %v5404_v30, %v5378_v45 }
 0x373   : > { %v5422_v25 = vadd.f32 %v5404_v30, %v5379_v48  ;;  %v5423_v3 = vadd.f32 %v5404_v30, %v5380_v51  ;;  %v5424_v21 = vadd.f32 %v5404_v30, %v5381_v55  ;;  %v5425_v59 = vadd.f32 %v5404_v30, %v5382_v58  ;;  %v9125_v51 = vld [vmem:[#allocation7_spill] sm:$0xff]  ;;  %v9126_v58 = vld [vmem:[#allocation6_spill] sm:$0xff] }
 0x374   : > { %v5426_v0 = vadd.f32 %v5404_v30, %v5383_v1  ;;  %v5427_v8 = vadd.f32 %v5404_v30, %v5384_v6  ;;  %v5428_v35 = vadd.f32 %v5404_v30, %v5385_v17  ;;  %v5429_v10 = vadd.f32 %v5404_v30, %v5386_v27  ;;  %v9127_v6 = vld [vmem:[#allocation8_spill] sm:$0xff] }
 0x375   : > { %v5430_v12 = vadd.f32 %v5404_v30, %v5387_v38  ;;  %v5431_v36 = vadd.f32 %v5404_v30, %v5388_v46  ;;  %v5432_v29 = vadd.f32 %v5404_v30, %v5389_v57  ;;  %v5433_v18 = vadd.f32 %v5404_v30, %v5390_v2  ;;  %v9128_v38 = vld [vmem:[#allocation10_spill] sm:$0xff]  ;;  %v9129_v57 = vld [vmem:[#allocation9_spill] sm:$0xff] }
 0x376   : > { %v5434_v19 = vadd.f32 %v5404_v30, %v5391_v11  ;;  %v5435_v31 = vadd.f32 %v5404_v30, %v5392_v33  ;;  %v5436_v34 = vadd.f32 %v5404_v30, %v5393_v50  ;;  %v5437_v54 = vadd.f32 %v5404_v30, %v5394_v5  ;;  %v9133_v50 = vld [vmem:[#allocation14_spill] sm:$0xff] }
 0x377   : > { %v5438_v37 = vadd.f32 %v5404_v30, %v5395_v39  ;;  %v5439_v16 = vadd.f32 %v5404_v30, %v5396_v61  ;;  %v5440_v42 = vadd.f32 %v5404_v30, %v5397_v13  ;;  %v5441_v45 = vadd.f32 %v5404_v30, %v5398_v7  ;;  %v9130_v7 = vld [vmem:[#allocation11_spill] sm:$0xff]  ;;  %v9131_v13 = vld [vmem:[#allocation12_spill] sm:$0xff]  ;;  %v9136_v61 = vld [vmem:[#allocation18_spill] sm:$0xff] }
 0x378   : > { %v5442_v48 = vadd.f32 %v5404_v30, %v5399_v53  ;;  %v8574_v55 = vadd.f32 %v9125_v51, %v5406_v62  ;;  %v8577_v1 = vadd.f32 %v9126_v58, %v5407_v63  ;;  %v8580_v17 = vadd.f32 %v9127_v6, %v5408_v52  ;;  %v9132_v63 = vld [vmem:[#allocation13_spill] sm:$0xff]  ;;  %v9138_v52 = vld [vmem:[#allocation19_spill] sm:$0xff] }
 0x379   : > { %v8583_v27 = vadd.f32 %v8425_v49, %v5409_v28  ;;  %v8586_v46 = vadd.f32 %v9128_v38, %v5410_v26  ;;  %v8589_v2 = vadd.f32 %v9129_v57, %v5411_v43  ;;  %v8592_v53 = vadd.f32 %v9130_v7, %v5412_v32  ;;  %v9134_v49 = vld [vmem:[#allocation15_spill] sm:$0xff]  ;;  %v9135_v43 = vld [vmem:[#allocation16_spill] sm:$0xff] }
 0x37a   : > { %v8595_v11 = vadd.f32 %v9131_v13, %v5413_v23  ;;  %v8598_v33 = vadd.f32 %v9132_v63, %v5414_v60  ;;  %v8601_v5 = vadd.f32 %v9133_v50, %v5415_v9  ;;  %v8604_v28 = vadd.f32 %v9134_v49, %v5416_v22  ;;  %v9137_v23 = vld [vmem:[#allocation17_spill] sm:$0xff]  ;;  %v9139_v9 = vld [vmem:[#allocation20_spill] sm:$0xff]  ;;  %v9140_v60 = vld [vmem:[#allocation22_spill] sm:$0xff] }
 0x37b   : > { %v8607_v39 = vadd.f32 %v8449_v20, %v5417_v40  ;;  %v8610_v30 = vadd.f32 %v9135_v43, %v5418_v47  ;;  %v8613_v24 = vadd.f32 %v9136_v61, %v5419_v4  ;;  %v8616_v62 = vadd.f32 %v9137_v23, %v5420_v44  ;;  %v9141_v44 = vld [vmem:[#allocation26_spill] sm:$0xff] }
 0x37c   : > { %v8619_v26 = vadd.f32 %v9138_v52, %v5421_v41  ;;  %v8622_v32 = vadd.f32 %v9139_v9, %v5422_v25  ;;  %v8625_v22 = vadd.f32 %v9140_v60, %v5423_v3  ;;  %v8628_v20 = vadd.f32 %v8470_v56, %v5424_v21  ;;  %v9142_v41 = vld [vmem:[#allocation36_spill] sm:$0xff]  ;;  %v9143_v25 = vld [vmem:[#allocation37_spill] sm:$0xff]  ;;  %v9144_v3 = vld [vmem:[#allocation38_spill] sm:$0xff] }
 0x37d   : > { %v8631_v40 = vadd.f32 %v8473_v14, %v5425_v59  ;;  %v8634_v47 = vadd.f32 %v8476_v15, %v5426_v0  ;;  %v8637_v4 = vadd.f32 %v9141_v44, %v5427_v8  ;;  %v8640_v51 = vadd.f32 %v9142_v41, %v5428_v35  ;;  %v9145_v56 = vld [vmem:[#allocation39_spill] sm:$0xff]  ;;  %v9146_v14 = vld [vmem:[#allocation40_spill] sm:$0xff]  ;;  %v9147_v15 = vld [vmem:[#allocation41_spill] sm:$0xff] }
 0x37e   : > { %v8643_v58 = vadd.f32 %v9143_v25, %v5429_v10  ;;  %v8646_v6 = vadd.f32 %v9144_v3, %v5430_v12  ;;  %v8649_v21 = vadd.f32 %v9145_v56, %v5431_v36  ;;  %v8652_v59 = vadd.f32 %v9146_v14, %v5432_v29  ;;  %v9148_v8 = vld [vmem:[#allocation42_spill] sm:$0xff]  ;;  %v9149_v35 = vld [vmem:[#allocation43_spill] sm:$0xff]  ;;  %v9150_v10 = vld [vmem:[#allocation44_spill] sm:$0xff] }
 0x37f   : > { %v8655_v0 = vadd.f32 %v9147_v15, %v5433_v18  ;;  %v8658_v38 = vadd.f32 %v9148_v8, %v5434_v19  ;;  %v8661_v57 = vadd.f32 %v9149_v35, %v5435_v31  ;;  %v8664_v7 = vadd.f32 %v9150_v10, %v5436_v34  ;;  %v9151_v12 = vld [vmem:[#allocation45_spill] sm:$0xff]  ;;  %v9152_v36 = vld [vmem:[#allocation46_spill] sm:$0xff]  ;;  %v9153_v29 = vld [vmem:[#allocation47_spill] sm:$0xff] }
 0x380   : > { %v8667_v13 = vadd.f32 %v9151_v12, %v5437_v54  ;;  %v8670_v63 = vadd.f32 %v9152_v36, %v5438_v37  ;;  %v8673_v50 = vadd.f32 %v9153_v29, %v5439_v16  ;;  %v9154_v18 = vld [vmem:[#allocation48_spill] sm:$0xff]  ;;  %v9155_v19 = vld [vmem:[#allocation49_spill] sm:$0xff]  ;;  %v9156_v31 = vld [vmem:[#allocation50_spill] sm:$0xff]  ;;  %v5555_v34 = vmax.f32 %v8574_v55, 0.0 }
 0x381   : > { %v8676_v49 = vadd.f32 %v9154_v18, %v5440_v42  ;;  %v8679_v43 = vadd.f32 %v9155_v19, %v5441_v45  ;;  %v8682_v61 = vadd.f32 %v9156_v31, %v5442_v48  ;;  %v5556_v54 = vmax.f32 %v8577_v1, 0.0  ;;  %v7479_v10 = vld [vmem:[%s8976_s1] sm:$0xff]  ;;  %v7480_v36 = vld [vmem:[%s8976_s1 + $0x8] sm:$0xff]  ;;  %v7481_v18 = vld [vmem:[%s8976_s1 + $0x10] sm:$0xff] }
 0x382   : > { %v5557_v23 = vmax.f32 %v8580_v17, 0.0  ;;  %v5558_v37 = vmax.f32 %v8583_v27, 0.0  ;;  %v5559_v16 = vmax.f32 %v8586_v46, 0.0  ;;  %v5560_v52 = vmax.f32 %v8589_v2, 0.0  ;;  %v7482_v31 = vld [vmem:[%s8976_s1 + $0x18] sm:$0xff]  ;;  %v7483_v8 = vld [vmem:[%s8976_s1 + $0x20] sm:$0xff] }
 0x383   : > { %v5561_v42 = vmax.f32 %v8592_v53, 0.0  ;;  %v5562_v45 = vmax.f32 %v8595_v11, 0.0  ;;  %v5563_v9 = vmax.f32 %v8598_v33, 0.0  ;;  %v5564_v48 = vmax.f32 %v8601_v5, 0.0 }
 0x384   : > { %v5565_v55 = vmax.f32 %v8604_v28, 0.0  ;;  %v5566_v1 = vmax.f32 %v8607_v39, 0.0  ;;  %v5567_v17 = vmax.f32 %v8610_v30, 0.0  ;;  %v5568_v27 = vmax.f32 %v8613_v24, 0.0 }
 0x385   : > { %v5569_v46 = vmax.f32 %v8616_v62, 0.0  ;;  %v5570_v2 = vmax.f32 %v8619_v26, 0.0  ;;  %v5571_v53 = vmax.f32 %v8622_v32, 0.0  ;;  %v5572_v11 = vmax.f32 %v8625_v22, 0.0 }
 0x386   : > { %v5573_v33 = vmax.f32 %v8628_v20, 0.0  ;;  %v5574_v5 = vmax.f32 %v8631_v40, 0.0  ;;  %v5575_v28 = vmax.f32 %v8634_v47, 0.0  ;;  %v5576_v39 = vmax.f32 %v8637_v4, 0.0  ;;  %v7500_v20 = vld [vmem:[%s8976_s1 + $0xa8] sm:$0xff]  ;;  %v7501_v40 = vld [vmem:[%s8976_s1 + $0xb0] sm:$0xff] }
 0x387   : > { %v5577_v30 = vmax.f32 %v8640_v51, 0.0  ;;  %v5578_v24 = vmax.f32 %v8643_v58, 0.0  ;;  %v5579_v62 = vmax.f32 %v8646_v6, 0.0  ;;  %v5580_v26 = vmax.f32 %v8649_v21, 0.0  ;;  %v7502_v47 = vld [vmem:[%s8976_s1 + $0xb8] sm:$0xff]  ;;  %v7504_v51 = vld [vmem:[%s8976_s1 + $0xc8] sm:$0xff] }
 0x388   : > { %v5581_v32 = vmax.f32 %v8652_v59, 0.0  ;;  %v5582_v60 = vmax.f32 %v8655_v0, 0.0  ;;  %v5583_v44 = vmax.f32 %v8658_v38, 0.0  ;;  %v5584_v41 = vmax.f32 %v8661_v57, 0.0  ;;  %v7505_v58 = vld [vmem:[%s8976_s1 + $0xd0] sm:$0xff]  ;;  %v7506_v6 = vld [vmem:[%s8976_s1 + $0xd8] sm:$0xff] }
 0x389   : > { %v5585_v25 = vmax.f32 %v8664_v7, 0.0  ;;  %v5586_v3 = vmax.f32 %v8667_v13, 0.0  ;;  %v5587_v56 = vmax.f32 %v8670_v63, 0.0  ;;  %v5588_v14 = vmax.f32 %v8673_v50, 0.0  ;;  %v9158_v21 = vld [vmem:[#allocation23_spill] sm:$0xff] }
 0x38a   : > { %v5589_v15 = vmax.f32 %v8676_v49, 0.0  ;;  %v5592_v12 = vmul.f32 %v7479_v10, %v5555_v34  ;;  %v5593_v29 = vmul.f32 %v7480_v36, %v5556_v54  ;;  %v5594_v19 = vmul.f32 %v7481_v18, %v5557_v23  ;;  %v7484_v10 = vld [vmem:[%s8976_s1 + $0x28] sm:$0xff]  ;;  %v7485_v36 = vld [vmem:[%s8976_s1 + $0x30] sm:$0xff]  ;;  %v7486_v18 = vld [vmem:[%s8976_s1 + $0x38] sm:$0xff] }
 0x38b   : > { %v5595_v35 = vmul.f32 %v7482_v31, %v5558_v37  ;;  %v5596_v34 = vmul.f32 %v7483_v8, %v5559_v16  ;;  %v5597_v54 = vmul.f32 %v7484_v10, %v5560_v52  ;;  %v5598_v23 = vmul.f32 %v7485_v36, %v5561_v42  ;;  %v7487_v31 = vld [vmem:[%s8976_s1 + $0x40] sm:$0xff]  ;;  %v7488_v52 = vld [vmem:[%s8976_s1 + $0x48] sm:$0xff]  ;;  %v7489_v42 = vld [vmem:[%s8976_s1 + $0x50] sm:$0xff] }
 0x38c   : > { %v5599_v37 = vmul.f32 %v7486_v18, %v5562_v45  ;;  %v5600_v16 = vmul.f32 %v7487_v31, %v5563_v9  ;;  %5629 = vst [vmem:[#allocation2 + $0x10] sm:$0xff] %v5592_v12  ;;  %v5601_v8 = vmul.f32 %v7488_v52, %v5564_v48  ;;  %v5602_v10 = vmul.f32 %v7489_v42, %v5565_v55  ;;  %v7490_v45 = vld [vmem:[%s8976_s1 + $0x58] sm:$0xff]  ;;  %v7491_v9 = vld [vmem:[%s8976_s1 + $0x60] sm:$0xff]  ;;  %v7492_v48 = vld [vmem:[%s8976_s1 + $0x68] sm:$0xff] }
 0x38d   : > { %v5603_v36 = vmul.f32 %v7490_v45, %v5566_v1  ;;  %v5604_v12 = vmul.f32 %v7491_v9, %v5567_v17  ;;  %5630 = vst [vmem:[#allocation2 + $0x18] sm:$0xff] %v5593_v29  ;;  %5631 = vst [vmem:[#allocation2 + $0x20] sm:$0xff] %v5594_v19  ;;  %v5605_v18 = vmul.f32 %v7492_v48, %v5568_v27  ;;  %v7493_v55 = vld [vmem:[%s8976_s1 + $0x70] sm:$0xff]  ;;  %v7494_v1 = vld [vmem:[%s8976_s1 + $0x78] sm:$0xff]  ;;  %v9165_v13 = vmax.f32 %v8679_v43, 0.0 }
 0x38e   : > { %5632 = vst [vmem:[#allocation2 + $0x28] sm:$0xff] %v5595_v35  ;;  %5633 = vst [vmem:[#allocation2 + $0x30] sm:$0xff] %v5596_v34  ;;  %v5606_v31 = vmul.f32 %v7493_v55, %v5569_v46  ;;  %v5607_v52 = vmul.f32 %v7494_v1, %v5570_v2  ;;  %v7495_v17 = vld [vmem:[%s8976_s1 + $0x80] sm:$0xff]  ;;  %v7496_v27 = vld [vmem:[%s8976_s1 + $0x88] sm:$0xff]  ;;  %v5621_v59 = vmul.f32 %v5584_v41, %v9158_v21  ;;  %v9167_v63 = vmax.f32 %v8682_v61, 0.0 }
 0x38f   : > { %v5608_v35 = vmul.f32 %v7495_v17, %v5571_v53  ;;  %5634 = vst [vmem:[#allocation2 + $0x38] sm:$0xff] %v5597_v54  ;;  %5635 = vst [vmem:[#allocation2 + $0x40] sm:$0xff] %v5598_v23  ;;  %v5609_v46 = vmul.f32 %v7496_v27, %v5572_v11  ;;  %v7497_v2 = vld [vmem:[%s8976_s1 + $0x90] sm:$0xff]  ;;  %v7498_v53 = vld [vmem:[%s8976_s1 + $0x98] sm:$0xff]  ;;  %v5613_v11 = vmul.f32 %v7500_v20, %v5576_v39 }
 0x390   : > { %5636 = vst [vmem:[#allocation2 + $0x48] sm:$0xff] %v5599_v37  ;;  %5637 = vst [vmem:[#allocation2 + $0x50] sm:$0xff] %v5600_v16  ;;  %v5610_v29 = vmul.f32 %v7497_v2, %v5573_v33  ;;  %v5611_v19 = vmul.f32 %v7498_v53, %v5574_v5  ;;  %v7499_v34 = vld [vmem:[%s8976_s1 + $0xa0] sm:$0xff]  ;;  %v5614_v33 = vmul.f32 %v7501_v40, %v5577_v30  ;;  %v5670_v50 = vld [vmem:[#allocation2 + $0x8] sm:$0xff] (!%p6381_p11) }
 0x391   : > { %v5612_v22 = vmul.f32 %v7499_v34, %v5575_v28  ;;  %5638 = vst [vmem:[#allocation2 + $0x58] sm:$0xff] %v5601_v8  ;;  %5639 = vst [vmem:[#allocation2 + $0x60] sm:$0xff] %v5602_v10  ;;  %v5615_v5 = vmul.f32 %v7502_v47, %v5578_v24  ;;  %v7503_v28 = vld [vmem:[%s8976_s1 + $0xc0] sm:$0xff]  ;;  %v5617_v39 = vmul.f32 %v7504_v51, %v5580_v26  ;;  %v9159_v26 = vld [vmem:[#allocation24_spill] sm:$0xff] }
 0x392   : > { %5640 = vst [vmem:[#allocation2 + $0x68] sm:$0xff] %v5603_v36  ;;  %5641 = vst [vmem:[#allocation2 + $0x70] sm:$0xff] %v5604_v12  ;;  %v5616_v4 = vmul.f32 %v7503_v28, %v5579_v62  ;;  %v5618_v30 = vmul.f32 %v7505_v58, %v5581_v32  ;;  %v5619_v24 = vmul.f32 %v7506_v6, %v5582_v60  ;;  %v9157_v62 = vld [vmem:[#allocation21_spill] sm:$0xff]  ;;  %v9161_v60 = vld [vmem:[#allocation27_spill] sm:$0xff] }
 0x393   : > { %5642 = vst [vmem:[#allocation2 + $0x78] sm:$0xff] %v5605_v18  ;;  %5643 = vst [vmem:[#allocation2 + $0x80] sm:$0xff] %v5606_v31  ;;  %v5620_v54 = vmul.f32 %v5583_v44, %v9157_v62  ;;  %v5622_v32 = vmul.f32 %v5585_v25, %v9159_v26  ;;  %v9160_v23 = vld [vmem:[#allocation25_spill] sm:$0xff]  ;;  %v5624_v38 = vmul.f32 %v5587_v56, %v9161_v60  ;;  %v9163_v41 = vld [vmem:[#allocation30_spill] sm:$0xff] }
 0x394   : > { %5644 = vst [vmem:[#allocation2 + $0x88] sm:$0xff] %v5607_v52  ;;  %5645 = vst [vmem:[#allocation2 + $0x90] sm:$0xff] %v5608_v35  ;;  %v5623_v0 = vmul.f32 %v5586_v3, %v9160_v23  ;;  %v9162_v44 = vld [vmem:[#allocation29_spill] sm:$0xff]  ;;  %v5626_v7 = vmul.f32 %v5589_v15, %v9163_v41  ;;  %v9166_v37 = vld [vmem:[#allocation34_spill] sm:$0xff] }
 0x395   : > { %5646 = vst [vmem:[#allocation2 + $0x98] sm:$0xff] %v5609_v46  ;;  %5647 = vst [vmem:[#allocation2 + $0xa0] sm:$0xff] %v5610_v29  ;;  %v5625_v57 = vmul.f32 %v5588_v14, %v9162_v44  ;;  %v9164_v25 = vld [vmem:[#allocation33_spill] sm:$0xff]  ;;  %v5628_v56 = vmul.f32 %v9167_v63, %v9166_v37  ;;  %v5671_v49 = vld [vmem:[#allocation2 + $0x10] sm:$0xff] (!%p6381_p11) }
 0x396   : > { %5648 = vst [vmem:[#allocation2 + $0xa8] sm:$0xff] %v5611_v19  ;;  %5649 = vst [vmem:[#allocation2 + $0xb0] sm:$0xff] %v5612_v22  ;;  %v5627_v3 = vmul.f32 %v9165_v13, %v9164_v25  ;;  %v5672_v43 = vld [vmem:[#allocation2 + $0x18] sm:$0xff] (!%p6381_p11)  ;;  %v5673_v61 = vld [vmem:[#allocation2 + $0x20] sm:$0xff] (!%p6381_p11) }
 0x397   : > { %5650 = vst [vmem:[#allocation2 + $0xb8] sm:$0xff] %v5613_v11  ;;  %5651 = vst [vmem:[#allocation2 + $0xc0] sm:$0xff] %v5614_v33  ;;  %v5674_v14 = vld [vmem:[#allocation2 + $0x28] sm:$0xff] (!%p6381_p11)  ;;  %v5675_v15 = vld [vmem:[#allocation2 + $0x30] sm:$0xff] (!%p6381_p11) }
 0x398   : > { %5652 = vst [vmem:[#allocation2 + $0xc8] sm:$0xff] %v5615_v5  ;;  %5653 = vst [vmem:[#allocation2 + $0xd0] sm:$0xff] %v5616_v4  ;;  %5669 = sbr.rel (%p6381_p11) target bundleno = 947 (0x3b3), region = 52  ;;  %v5676_v16 = vld [vmem:[#allocation2 + $0x38] sm:$0xff] (!%p6381_p11)  ;;  %v5677_v8 = vld [vmem:[#allocation2 + $0x40] sm:$0xff] (!%p6381_p11) }
 0x399   : > { %5654 = vst [vmem:[#allocation2 + $0xd8] sm:$0xff] %v5617_v39  ;;  %5655 = vst [vmem:[#allocation2 + $0xe0] sm:$0xff] %v5618_v30  ;;  %v5678_v42 = vld [vmem:[#allocation2 + $0x48] sm:$0xff] (!%p6381_p11)  ;;  %v5679_v10 = vld [vmem:[#allocation2 + $0x50] sm:$0xff] (!%p6381_p11) }
 0x39a   : > { %5656 = vst [vmem:[#allocation2 + $0xe8] sm:$0xff] %v5619_v24  ;;  %5657 = vst [vmem:[#allocation2 + $0xf0] sm:$0xff] %v5620_v54  ;;  %v5680_v45 = vld [vmem:[#allocation2 + $0x58] sm:$0xff] (!%p6381_p11)  ;;  %v5681_v36 = vld [vmem:[#allocation2 + $0x60] sm:$0xff] (!%p6381_p11) }
 0x39b   : > { %5658 = vst [vmem:[#allocation2 + $0xf8] sm:$0xff] %v5621_v59  ;;  %5659 = vst [vmem:[#allocation2 + $0x100] sm:$0xff] %v5622_v32  ;;  %v5682_v9 = vld [vmem:[#allocation2 + $0x68] sm:$0xff] (!%p6381_p11)  ;;  %v5683_v12 = vld [vmem:[#allocation2 + $0x70] sm:$0xff] (!%p6381_p11) }
 0x39c   : > { %5660 = vst [vmem:[#allocation2 + $0x108] sm:$0xff] %v5623_v0  ;;  %5661 = vst [vmem:[#allocation2 + $0x110] sm:$0xff] %v5624_v38  ;;  %v5684_v48 = vld [vmem:[#allocation2 + $0x78] sm:$0xff] (!%p6381_p11)  ;;  %v5685_v18 = vld [vmem:[#allocation2 + $0x80] sm:$0xff] (!%p6381_p11) }
 0x39d   : > { %5662 = vst [vmem:[#allocation2 + $0x118] sm:$0xff] %v5625_v57  ;;  %5663 = vst [vmem:[#allocation2 + $0x120] sm:$0xff] %v5626_v7  ;;  %v5686_v55 = vld [vmem:[#allocation2 + $0x88] sm:$0xff] (!%p6381_p11)  ;;  %v5687_v31 = vld [vmem:[#allocation2 + $0x90] sm:$0xff] (!%p6381_p11) }
 0x39e   : > { %5664 = vst [vmem:[#allocation2 + $0x128] sm:$0xff] %v5627_v3  ;;  %5665 = vst [vmem:[#allocation2 + $0x130] sm:$0xff] %v5628_v56  ;;  %v5688_v1 = vld [vmem:[#allocation2 + $0x98] sm:$0xff] (!%p6381_p11)  ;;  %v5689_v52 = vld [vmem:[#allocation2 + $0xa0] sm:$0xff] (!%p6381_p11) }
 0x39f   : > { %5709 = vst [vmem:[%s8980_s5] sm:$0xff] %v5670_v50  ;;  %5710 = vst [vmem:[%s8980_s5 + $0x8] sm:$0xff] %v5671_v49  ;;  %v5690_v17 = vld [vmem:[#allocation2 + $0xa8] sm:$0xff]  ;;  %v5691_v35 = vld [vmem:[#allocation2 + $0xb0] sm:$0xff] }
 0x3a0   : > { %5711 = vst [vmem:[%s8980_s5 + $0x10] sm:$0xff] %v5672_v43  ;;  %5712 = vst [vmem:[%s8980_s5 + $0x18] sm:$0xff] %v5673_v61  ;;  %v5692_v27 = vld [vmem:[#allocation2 + $0xb8] sm:$0xff]  ;;  %v5693_v46 = vld [vmem:[#allocation2 + $0xc0] sm:$0xff] }
 0x3a1   : > { %5713 = vst [vmem:[%s8980_s5 + $0x20] sm:$0xff] %v5674_v14  ;;  %5714 = vst [vmem:[%s8980_s5 + $0x28] sm:$0xff] %v5675_v15  ;;  %v5694_v2 = vld [vmem:[#allocation2 + $0xc8] sm:$0xff]  ;;  %v5695_v29 = vld [vmem:[#allocation2 + $0xd0] sm:$0xff] }
 0x3a2   : > { %5715 = vst [vmem:[%s8980_s5 + $0x30] sm:$0xff] %v5676_v16  ;;  %5716 = vst [vmem:[%s8980_s5 + $0x38] sm:$0xff] %v5677_v8  ;;  %v5696_v53 = vld [vmem:[#allocation2 + $0xd8] sm:$0xff]  ;;  %v5697_v19 = vld [vmem:[#allocation2 + $0xe0] sm:$0xff] }
 0x3a3   : > { %5717 = vst [vmem:[%s8980_s5 + $0x40] sm:$0xff] %v5678_v42  ;;  %5718 = vst [vmem:[%s8980_s5 + $0x48] sm:$0xff] %v5679_v10  ;;  %v5698_v34 = vld [vmem:[#allocation2 + $0xe8] sm:$0xff]  ;;  %v5699_v22 = vld [vmem:[#allocation2 + $0xf0] sm:$0xff] }
 0x3a4   : > { %5719 = vst [vmem:[%s8980_s5 + $0x50] sm:$0xff] %v5680_v45  ;;  %5720 = vst [vmem:[%s8980_s5 + $0x58] sm:$0xff] %v5681_v36  ;;  %v5700_v20 = vld [vmem:[#allocation2 + $0xf8] sm:$0xff]  ;;  %v5701_v11 = vld [vmem:[#allocation2 + $0x100] sm:$0xff] }
 0x3a5   : > { %5721 = vst [vmem:[%s8980_s5 + $0x60] sm:$0xff] %v5682_v9  ;;  %5722 = vst [vmem:[%s8980_s5 + $0x68] sm:$0xff] %v5683_v12  ;;  %v5702_v40 = vld [vmem:[#allocation2 + $0x108] sm:$0xff]  ;;  %v5703_v33 = vld [vmem:[#allocation2 + $0x110] sm:$0xff] }
 0x3a6   : > { %5723 = vst [vmem:[%s8980_s5 + $0x70] sm:$0xff] %v5684_v48  ;;  %5724 = vst [vmem:[%s8980_s5 + $0x78] sm:$0xff] %v5685_v18  ;;  %v5704_v47 = vld [vmem:[#allocation2 + $0x118] sm:$0xff]  ;;  %v5705_v5 = vld [vmem:[#allocation2 + $0x120] sm:$0xff] }
 0x3a7   : > { %5725 = vst [vmem:[%s8980_s5 + $0x80] sm:$0xff] %v5686_v55  ;;  %5726 = vst [vmem:[%s8980_s5 + $0x88] sm:$0xff] %v5687_v31  ;;  %v5706_v28 = vld [vmem:[#allocation2 + $0x128] sm:$0xff]  ;;  %v5707_v4 = vld [vmem:[#allocation2 + $0x130] sm:$0xff] }
 0x3a8   : > { %5727 = vst [vmem:[%s8980_s5 + $0x90] sm:$0xff] %v5688_v1  ;;  %5728 = vst [vmem:[%s8980_s5 + $0x98] sm:$0xff] %v5689_v52  ;;  %v5708_v51 = vld [vmem:[#allocation2 + $0x138] sm:$0xff] }
 0x3a9   : > { %5729 = vst [vmem:[%s8980_s5 + $0xa0] sm:$0xff] %v5690_v17  ;;  %5730 = vst [vmem:[%s8980_s5 + $0xa8] sm:$0xff] %v5691_v35 }
 0x3aa   : > { %5731 = vst [vmem:[%s8980_s5 + $0xb0] sm:$0xff] %v5692_v27  ;;  %5732 = vst [vmem:[%s8980_s5 + $0xb8] sm:$0xff] %v5693_v46 }
 0x3ab   : > { %5733 = vst [vmem:[%s8980_s5 + $0xc0] sm:$0xff] %v5694_v2  ;;  %5734 = vst [vmem:[%s8980_s5 + $0xc8] sm:$0xff] %v5695_v29 }
 0x3ac   : > { %5735 = vst [vmem:[%s8980_s5 + $0xd0] sm:$0xff] %v5696_v53  ;;  %5736 = vst [vmem:[%s8980_s5 + $0xd8] sm:$0xff] %v5697_v19 }
 0x3ad   : > { %5737 = vst [vmem:[%s8980_s5 + $0xe0] sm:$0xff] %v5698_v34  ;;  %5738 = vst [vmem:[%s8980_s5 + $0xe8] sm:$0xff] %v5699_v22 }
 0x3ae   : > { %5739 = vst [vmem:[%s8980_s5 + $0xf0] sm:$0xff] %v5700_v20  ;;  %5740 = vst [vmem:[%s8980_s5 + $0xf8] sm:$0xff] %v5701_v11 }
 0x3af   : > { %5741 = vst [vmem:[%s8980_s5 + $0x100] sm:$0xff] %v5702_v40  ;;  %5742 = vst [vmem:[%s8980_s5 + $0x108] sm:$0xff] %v5703_v33 }
 0x3b0   : > { %5743 = vst [vmem:[%s8980_s5 + $0x110] sm:$0xff] %v5704_v47  ;;  %5744 = vst [vmem:[%s8980_s5 + $0x118] sm:$0xff] %v5705_v5 }
 0x3b1   : > { %5745 = vst [vmem:[%s8980_s5 + $0x120] sm:$0xff] %v5706_v28  ;;  %5746 = vst [vmem:[%s8980_s5 + $0x128] sm:$0xff] %v5707_v4 }
 0x3b2   : > { %5747 = vst [vmem:[%s8980_s5 + $0x130] sm:$0xff] %v5708_v51 }
 0x3b3 PF: > { %s15_s18 = sadd.s32 1, %s7513_s18  }
 0x3b4   : > { %p12_p12 = scmp.ge.s32.totalorder %s15_s18, 7  }
 0x3b6   :  { %14 = sbr.rel (!%p12_p12) target bundleno = 1 (0x1), region = 84 }

</bundles_post_ra>
